<compile_context>
chip_gen: v5e
topology: v5e:2x2
jax: 0.10.0
libtpu: 0.0.40
codegen_flags: <defaults>
</compile_context>

<pallas_src>
import jax
import jax.numpy as jnp
import numpy as np
from jax import lax
from jax.experimental import pallas as pl
from jax.experimental.pallas import tpu as pltpu

K = 10          # top-k size (fixed in the module)
N_FT = 64
N_FT2 = 128
EPS = 1e-5      # BatchNorm1d default eps
N_SMALL = 18    # number of packed (1, n) parameter vectors


def _bn_relu(x, g, b):
    """BatchNorm1d (training mode, biased var) + ReLU.

    Variance via E[x^2] - mean^2: the two batch reductions are independent and
    pipeline through the XLU instead of the second waiting on the first.
    """
    mean = jnp.mean(x, axis=0, keepdims=True)
    m2 = jnp.mean(x * x, axis=0, keepdims=True)
    var = jnp.maximum(m2 - mean * mean, 0.0)      # guard cancellation
    xn = (x - mean) * lax.rsqrt(var + EPS)
    return jnp.maximum(xn * g + b, 0.0)


def hybrid_router_kernel(logits_ref, ft_ref, w1_ref, wl_ref, w64_ref, small_ref,
                         out_ref):
    B, L = logits_ref.shape
    n_ft2 = w1_ref.shape[1]                       # 128
    n_ft = w64_ref.shape[1]                       # 64
    slot = small_ref.shape[1] // N_SMALL          # 128-lane aligned slot width

    def sp(i, n):
        """Static, lane-aligned view into the packed small-parameter array."""
        off = i * slot
        return small_ref[:, off:off + n]

    b1, g1, be1 = sp(0, n_ft2), sp(1, n_ft2), sp(2, n_ft2)
    b2, g2, be2 = sp(3, n_ft), sp(4, n_ft), sp(5, n_ft)
    w3e, b3, g3, be3 = sp(6, L), sp(7, L), sp(8, L), sp(9, L)
    b4, g4, be4 = sp(10, n_ft), sp(11, n_ft), sp(12, n_ft)
    b5, g5, be5 = sp(13, L), sp(14, L), sp(15, L)
    w6t = sp(16, L)                                # transposed final Linear weight
    b6 = sp(17, 1)

    # Packed weight views (row offsets 0 / 64 / 128 are sublane-aligned).
    w3f = wl_ref[0:n_ft, :]                        # (64, L)
    w5 = wl_ref[n_ft:2 * n_ft, :]                  # (64, L)
    margin_row0 = 2 * n_ft                         # start of W3_margin_eff rows
    w2 = w64_ref[0:n_ft2, :]                       # (128, 64)
    w4 = w64_ref[n_ft2:n_ft2 + L, :]               # (L, 64)

    # ---------------- transform_ft branch ----------------
    ft = ft_ref[...]
    h1 = _bn_relu(
        jnp.dot(ft, w1_ref[...], preferred_element_type=jnp.float32) + b1, g1, be1)
    h2 = _bn_relu(
        jnp.dot(h1, w2, preferred_element_type=jnp.float32) + b2, g2, be2)

    # ---------------- process_logits ----------------
    logits = logits_ref[...]

    # Parallel rank-based top-K, computed directly on the raw logits (ordering is
    # invariant under the per-row softmax) so it does NOT depend on the EUP chain.
    # beats[b, j, i] == True iff element i is strictly ahead of element j in the
    # descending order used by lax.top_k (ties broken by lower index).
    lj = logits[:, :, None]                                   # (B, L, 1), j on sublanes
    li = logits[:, None, :]                                   # (B, 1, L), i on lanes
    idx_i = lax.broadcasted_iota(jnp.int32, (L, L), 1)        # lane index i
    idx_j = lax.broadcasted_iota(jnp.int32, (L, L), 0)        # sublane index j
    tie_lt = idx_i < idx_j                                    # (L, L), batch-independent
    beats = jnp.logical_or(li > lj, jnp.logical_and(li == lj, tie_lt))
    rank = jnp.sum(beats.astype(jnp.int32), axis=-1)          # (B, L); 0 == largest

    # Softmax / entropy (EUP path, overlaps with the XLU rank work above).
    m0 = jnp.max(logits, axis=1, keepdims=True)
    sh = logits - m0
    e = jnp.exp(sh)
    s = jnp.sum(e, axis=1, keepdims=True)
    inv_s = pl.reciprocal(s, approx=True)                     # EUP, not VALU divide
    p = e * inv_s                                             # softmax
    # entropy = -sum(p*log p) = log(S) - sum(p*(logits-m0)); no (B,L) log,
    # no NaN when a probability underflows to 0.
    entropy = jnp.log(s) - jnp.sum(p * sh, axis=1, keepdims=True)   # (B, 1)

    # margin_contrib = topk(B,K) @ w3m_eff(K,L), built from K *independent*
    # masked row-sums (no serial dependency between iterations).
    margin = jnp.zeros((B, L), jnp.float32)
    for k in range(K):                                        # static unroll, K=10
        tk = jnp.sum(jnp.where(rank == k, p, 0.0), axis=1, keepdims=True)  # k-th largest
        margin = margin + tk * wl_ref[margin_row0 + k:margin_row0 + k + 1, :]

    # ---------------- routing head ----------------
    z3 = (entropy * w3e + margin
          + jnp.dot(h2, w3f, preferred_element_type=jnp.float32)
          + b3)
    r3 = _bn_relu(z3, g3, be3)
    r4 = _bn_relu(
        jnp.dot(r3, w4, preferred_element_type=jnp.float32) + b4, g4, be4)
    r5 = _bn_relu(
        jnp.dot(r4, w5, preferred_element_type=jnp.float32) + b5, g5, be5)

    # Final 1-column Linear on the VPU/XLU (no MXU push for a single output lane).
    out_ref[...] = jnp.sum(r5 * w6t, axis=1, keepdims=True) + b6


def init_params(key, num_features, n_labels):
    """Deterministic synthetic parameter init (PyTorch shapes, stored transposed)."""
    ks = jax.random.split(key, 12)
    logit_ft = 1 + K * K

    def lin(k, fan_in, fan_out):
        s = 1.0 / np.sqrt(fan_in)
        kw, kb = jax.random.split(k)
        W = jax.random.uniform(kw, (fan_in, fan_out), jnp.float32, -s, s)
        b = jax.random.uniform(kb, (1, fan_out), jnp.float32, -s, s)
        return W, b

    def bn(k, n):
        kg, kb = jax.random.split(k)
        g = 1.0 + 0.1 * jax.random.normal(kg, (1, n), jnp.float32)
        be = 0.1 * jax.random.normal(kb, (1, n), jnp.float32)
        return g, be

    p = {}
    p['W1'], p['b1'] = lin(ks[0], num_features, N_FT2); p['g1'], p['be1'] = bn(ks[1], N_FT2)
    p['W2'], p['b2'] = lin(ks[2], N_FT2, N_FT);         p['g2'], p['be2'] = bn(ks[3], N_FT)
    p['W3'], p['b3'] = lin(ks[4], logit_ft + N_FT, n_labels); p['g3'], p['be3'] = bn(ks[5], n_labels)
    p['W4'], p['b4'] = lin(ks[6], n_labels, N_FT);      p['g4'], p['be4'] = bn(ks[7], N_FT)
    p['W5'], p['b5'] = lin(ks[8], N_FT, n_labels);      p['g5'], p['be5'] = bn(ks[9], n_labels)
    p['W6'], p['b6'] = lin(ks[10], n_labels, 1)
    return p


def prepare_params(params):
    """One-time kernel-side parameter prep (hoisted out of the launch path)."""
    W3 = params['W3']
    L = W3.shape[1]
    assert L >= K, "n_labels must be >= K for the top-K extraction"

    # Split the first routing Linear: [entropy | y_margin | transformed_ft] rows.
    w3_ent = W3[0:1, :]                                      # (1, L)
    w3_m = W3[1:1 + K * K, :].reshape(K, K, L)               # (K, K, L)
    # Exact rewrite of y_margin @ W_margin, since y_margin[b,i*K+j] = t[b,i]-t[b,j].
    w3_margin_eff = w3_m.sum(axis=1) - w3_m.sum(axis=0)      # (K, L)
    w3_ft = W3[1 + K * K:, :]                                # (64, L)
    w6t = params['W6'].T                                     # (1, L)

    # Pack all lane-width-L weights row-wise into one DMA:
    #   rows [0:64] = W3_ft, [64:128] = W5, [128:128+K] = W3_margin_eff.
    wL = jnp.concatenate([w3_ft, params['W5'], w3_margin_eff], axis=0)
    # Pack the lane-width-64 weights: rows [0:128] = W2, [128:128+L] = W4.
    w64 = jnp.concatenate([params['W2'], params['W4']], axis=0)

    slot = max(128, ((L + 127) // 128) * 128)

    def pad(x):
        return jnp.pad(x, ((0, 0), (0, slot - x.shape[1])))

    small_list = [
        params['b1'], params['g1'], params['be1'],
        params['b2'], params['g2'], params['be2'],
        w3_ent, params['b3'], params['g3'], params['be3'],
        params['b4'], params['g4'], params['be4'],
        params['b5'], params['g5'], params['be5'],
        w6t, params['b6'],
    ]
    assert len(small_list) == N_SMALL
    small = jnp.concatenate([pad(x) for x in small_list], axis=1)   # (1, N_SMALL*slot)

    return {'W1': params['W1'], 'WL': wL, 'W64': w64, 'small': small}


def hybrid_router_forward(s_logits, s_ft, prep):
    B, L = s_logits.shape
    args = (s_logits, s_ft, prep['W1'], prep['WL'], prep['W64'], prep['small'])
    vmem = pl.BlockSpec(memory_space=pltpu.MemorySpace.VMEM)
    return pl.pallas_call(
        hybrid_router_kernel,
        out_shape=jax.ShapeDtypeStruct((B, 1), jnp.float32),
        in_specs=[vmem] * len(args),
        out_specs=vmem,
        compiler_params=pltpu.CompilerParams(
            # Explicit limit so the all-resident layout also fits v5e's smaller
            # default scoped-VMEM (16 MiB); well under every chip's physical VMEM.
            vmem_limit_bytes=32 * 1024 * 1024),
    )(*args)


def reference_forward(s_logits, s_ft, p):
    """Pure-JAX reference mirroring the PyTorch forward."""
    def bn_relu(x, g, b):
        mean = x.mean(0, keepdims=True)
        var = ((x - mean) ** 2).mean(0, keepdims=True)
        return jnp.maximum((x - mean) / jnp.sqrt(var + EPS) * g + b, 0.0)

    h1 = bn_relu(s_ft @ p['W1'] + p['b1'], p['g1'], p['be1'])
    h2 = bn_relu(h1 @ p['W2'] + p['b2'], p['g2'], p['be2'])
    sm = jax.nn.softmax(s_logits, axis=1)
    lse = jax.scipy.special.logsumexp(s_logits, axis=1, keepdims=True)
    ent = lse - (sm * s_logits).sum(1, keepdims=True)        # == -sum(p*log p)
    topk = lax.top_k(sm, K)[0]
    B = s_logits.shape[0]
    ym = (topk.reshape(B, K, 1) - topk.reshape(B, 1, K)).reshape(B, K * K)
    x = jnp.concatenate([ent, ym, h2], axis=1)
    r3 = bn_relu(x @ p['W3'] + p['b3'], p['g3'], p['be3'])
    r4 = bn_relu(r3 @ p['W4'] + p['b4'], p['g4'], p['be4'])
    r5 = bn_relu(r4 @ p['W5'] + p['b5'], p['g5'], p['be5'])
    return r5 @ p['W6'] + p['b6']


if __name__ == "__main__":
    B, NUM_FEATURES, N_LABELS = 8, 32, 32        # small test shapes (N_LABELS >= K)

    key = jax.random.PRNGKey(0)
    k_logits, k_ft, k_params = jax.random.split(key, 3)
    s_logits = jax.random.normal(k_logits, (B, N_LABELS), jnp.float32)
    s_ft = jax.random.normal(k_ft, (B, NUM_FEATURES), jnp.float32)
    params = init_params(k_params, NUM_FEATURES, N_LABELS)

    prep = prepare_params(params)                # one-time, off the launch path
    out = hybrid_router_forward(s_logits, s_ft, prep)
    out = jax.block_until_ready(out)

    ref = reference_forward(s_logits, s_ft, params)
    assert out.shape == (B, 1), out.shape
    # 5e-3 tolerance covers the ~1e-4 relative perturbation from the EUP
    # approximate-reciprocal softmax denominator propagated through 3 BN layers.
    np.testing.assert_allclose(np.asarray(out), np.asarray(ref), rtol=5e-3, atol=5e-3)

    print("KERNEL_OK")
</pallas_src>

<mosaic_0001>
module attributes {stable_mosaic.version = 11 : i64} {
  func.func @hybrid_router_kernel(%arg0: memref<8x32xf32, #tpu.memory_space<vmem>>, %arg1: memref<8x32xf32, #tpu.memory_space<vmem>>, %arg2: memref<32x128xf32, #tpu.memory_space<vmem>>, %arg3: memref<138x32xf32, #tpu.memory_space<vmem>>, %arg4: memref<160x64xf32, #tpu.memory_space<vmem>>, %arg5: memref<1x2304xf32, #tpu.memory_space<vmem>>, %arg6: memref<8x1xf32, #tpu.memory_space<vmem>>) attributes {dimension_semantics = [], scalar_prefetch = 0 : i64, scratch_operands = 0 : i64, tpu.core_type = #tpu.core_type<tc>} {
    %c0 = arith.constant 0 : index
    %c0_0 = arith.constant 0 : index
    %0 = vector.load %arg5[%c0, %c0_0] : memref<1x2304xf32, #tpu.memory_space<vmem>>, vector<1x128xf32>
    %c0_1 = arith.constant 0 : index
    %c128 = arith.constant 128 : index
    %1 = vector.load %arg5[%c0_1, %c128] : memref<1x2304xf32, #tpu.memory_space<vmem>>, vector<1x128xf32>
    %c0_2 = arith.constant 0 : index
    %c256 = arith.constant 256 : index
    %2 = vector.load %arg5[%c0_2, %c256] : memref<1x2304xf32, #tpu.memory_space<vmem>>, vector<1x128xf32>
    %c0_3 = arith.constant 0 : index
    %c384 = arith.constant 384 : index
    %3 = vector.load %arg5[%c0_3, %c384] : memref<1x2304xf32, #tpu.memory_space<vmem>>, vector<1x64xf32>
    %c0_4 = arith.constant 0 : index
    %c512 = arith.constant 512 : index
    %4 = vector.load %arg5[%c0_4, %c512] : memref<1x2304xf32, #tpu.memory_space<vmem>>, vector<1x64xf32>
    %c0_5 = arith.constant 0 : index
    %c640 = arith.constant 640 : index
    %5 = vector.load %arg5[%c0_5, %c640] : memref<1x2304xf32, #tpu.memory_space<vmem>>, vector<1x64xf32>
    %c0_6 = arith.constant 0 : index
    %c768 = arith.constant 768 : index
    %6 = vector.load %arg5[%c0_6, %c768] : memref<1x2304xf32, #tpu.memory_space<vmem>>, vector<1x32xf32>
    %c0_7 = arith.constant 0 : index
    %c896 = arith.constant 896 : index
    %7 = vector.load %arg5[%c0_7, %c896] : memref<1x2304xf32, #tpu.memory_space<vmem>>, vector<1x32xf32>
    %c0_8 = arith.constant 0 : index
    %c1024 = arith.constant 1024 : index
    %8 = vector.load %arg5[%c0_8, %c1024] : memref<1x2304xf32, #tpu.memory_space<vmem>>, vector<1x32xf32>
    %c0_9 = arith.constant 0 : index
    %c1152 = arith.constant 1152 : index
    %9 = vector.load %arg5[%c0_9, %c1152] : memref<1x2304xf32, #tpu.memory_space<vmem>>, vector<1x32xf32>
    %c0_10 = arith.constant 0 : index
    %c1280 = arith.constant 1280 : index
    %10 = vector.load %arg5[%c0_10, %c1280] : memref<1x2304xf32, #tpu.memory_space<vmem>>, vector<1x64xf32>
    %c0_11 = arith.constant 0 : index
    %c1408 = arith.constant 1408 : index
    %11 = vector.load %arg5[%c0_11, %c1408] : memref<1x2304xf32, #tpu.memory_space<vmem>>, vector<1x64xf32>
    %c0_12 = arith.constant 0 : index
    %c1536 = arith.constant 1536 : index
    %12 = vector.load %arg5[%c0_12, %c1536] : memref<1x2304xf32, #tpu.memory_space<vmem>>, vector<1x64xf32>
    %c0_13 = arith.constant 0 : index
    %c1664 = arith.constant 1664 : index
    %13 = vector.load %arg5[%c0_13, %c1664] : memref<1x2304xf32, #tpu.memory_space<vmem>>, vector<1x32xf32>
    %c0_14 = arith.constant 0 : index
    %c1792 = arith.constant 1792 : index
    %14 = vector.load %arg5[%c0_14, %c1792] : memref<1x2304xf32, #tpu.memory_space<vmem>>, vector<1x32xf32>
    %c0_15 = arith.constant 0 : index
    %c1920 = arith.constant 1920 : index
    %15 = vector.load %arg5[%c0_15, %c1920] : memref<1x2304xf32, #tpu.memory_space<vmem>>, vector<1x32xf32>
    %c0_16 = arith.constant 0 : index
    %c2048 = arith.constant 2048 : index
    %16 = vector.load %arg5[%c0_16, %c2048] : memref<1x2304xf32, #tpu.memory_space<vmem>>, vector<1x32xf32>
    %c0_17 = arith.constant 0 : index
    %c2176 = arith.constant 2176 : index
    %17 = vector.load %arg5[%c0_17, %c2176] : memref<1x2304xf32, #tpu.memory_space<vmem>>, vector<1x1xf32>
    %c0_18 = arith.constant 0 : index
    %c0_19 = arith.constant 0 : index
    %18 = vector.load %arg3[%c0_18, %c0_19] : memref<138x32xf32, #tpu.memory_space<vmem>>, vector<64x32xf32>
    %c64 = arith.constant 64 : index
    %c0_20 = arith.constant 0 : index
    %19 = vector.load %arg3[%c64, %c0_20] : memref<138x32xf32, #tpu.memory_space<vmem>>, vector<64x32xf32>
    %c0_21 = arith.constant 0 : index
    %c0_22 = arith.constant 0 : index
    %20 = vector.load %arg4[%c0_21, %c0_22] : memref<160x64xf32, #tpu.memory_space<vmem>>, vector<128x64xf32>
    %c128_23 = arith.constant 128 : index
    %c0_24 = arith.constant 0 : index
    %21 = vector.load %arg4[%c128_23, %c0_24] : memref<160x64xf32, #tpu.memory_space<vmem>>, vector<32x64xf32>
    %c0_25 = arith.constant 0 : index
    %c0_26 = arith.constant 0 : index
    %22 = vector.load %arg1[%c0_25, %c0_26] : memref<8x32xf32, #tpu.memory_space<vmem>>, vector<8x32xf32>
    %c0_27 = arith.constant 0 : index
    %c0_28 = arith.constant 0 : index
    %23 = vector.load %arg2[%c0_27, %c0_28] : memref<32x128xf32, #tpu.memory_space<vmem>>, vector<32x128xf32>
    %cst = arith.constant dense<0.000000e+00> : vector<8x128xf32>
    %24 = tpu.matmul %22, %23, %cst {dimension_numbers = #tpu.dot_dimension_numbers<[1], [0], [0], [1], [0, 0, 1, 1], [], []>} : vector<8x32xf32>, vector<32x128xf32>, vector<8x128xf32> -> vector<8x128xf32>
    %25 = vector.broadcast %0 : vector<1x128xf32> to vector<8x128xf32>
    %26 = arith.addf %24, %25 : vector<8x128xf32>
    %cst_29 = arith.constant dense<0.000000e+00> : vector<128xf32>
    %27 = vector.multi_reduction <add>, %26, %cst_29 [0] : vector<8x128xf32> to vector<128xf32>
    %28 = vector.shape_cast %27 : vector<128xf32> to vector<1x128xf32>
    %cst_30 = arith.constant 8.000000e+00 : f32
    %29 = vector.broadcast %cst_30 : f32 to vector<1x128xf32>
    %30 = arith.divf %28, %29 : vector<1x128xf32>
    %31 = arith.mulf %26, %26 : vector<8x128xf32>
    %cst_31 = arith.constant dense<0.000000e+00> : vector<128xf32>
    %32 = vector.multi_reduction <add>, %31, %cst_31 [0] : vector<8x128xf32> to vector<128xf32>
    %33 = vector.shape_cast %32 : vector<128xf32> to vector<1x128xf32>
    %cst_32 = arith.constant 8.000000e+00 : f32
    %34 = vector.broadcast %cst_32 : f32 to vector<1x128xf32>
    %35 = arith.divf %33, %34 : vector<1x128xf32>
    %36 = arith.mulf %30, %30 : vector<1x128xf32>
    %37 = arith.subf %35, %36 : vector<1x128xf32>
    %cst_33 = arith.constant 0.000000e+00 : f32
    %38 = vector.broadcast %cst_33 : f32 to vector<1x128xf32>
    %39 = arith.maximumf %37, %38 : vector<1x128xf32>
    %40 = vector.broadcast %30 : vector<1x128xf32> to vector<8x128xf32>
    %41 = arith.subf %26, %40 : vector<8x128xf32>
    %cst_34 = arith.constant 9.99999974E-6 : f32
    %42 = vector.broadcast %cst_34 : f32 to vector<1x128xf32>
    %43 = arith.addf %39, %42 : vector<1x128xf32>
    %44 = math.rsqrt %43 : vector<1x128xf32>
    %45 = vector.broadcast %44 : vector<1x128xf32> to vector<8x128xf32>
    %46 = arith.mulf %41, %45 : vector<8x128xf32>
    %47 = vector.broadcast %1 : vector<1x128xf32> to vector<8x128xf32>
    %48 = arith.mulf %46, %47 : vector<8x128xf32>
    %49 = vector.broadcast %2 : vector<1x128xf32> to vector<8x128xf32>
    %50 = arith.addf %48, %49 : vector<8x128xf32>
    %cst_35 = arith.constant 0.000000e+00 : f32
    %51 = vector.broadcast %cst_35 : f32 to vector<8x128xf32>
    %52 = arith.maximumf %50, %51 : vector<8x128xf32>
    %cst_36 = arith.constant dense<0.000000e+00> : vector<8x64xf32>
    %53 = tpu.matmul %52, %20, %cst_36 {dimension_numbers = #tpu.dot_dimension_numbers<[1], [0], [0], [1], [0, 0, 1, 1], [], []>} : vector<8x128xf32>, vector<128x64xf32>, vector<8x64xf32> -> vector<8x64xf32>
    %54 = vector.broadcast %3 : vector<1x64xf32> to vector<8x64xf32>
    %55 = arith.addf %53, %54 : vector<8x64xf32>
    %cst_37 = arith.constant dense<0.000000e+00> : vector<64xf32>
    %56 = vector.multi_reduction <add>, %55, %cst_37 [0] : vector<8x64xf32> to vector<64xf32>
    %57 = vector.shape_cast %56 : vector<64xf32> to vector<1x64xf32>
    %cst_38 = arith.constant 8.000000e+00 : f32
    %58 = vector.broadcast %cst_38 : f32 to vector<1x64xf32>
    %59 = arith.divf %57, %58 : vector<1x64xf32>
    %60 = arith.mulf %55, %55 : vector<8x64xf32>
    %cst_39 = arith.constant dense<0.000000e+00> : vector<64xf32>
    %61 = vector.multi_reduction <add>, %60, %cst_39 [0] : vector<8x64xf32> to vector<64xf32>
    %62 = vector.shape_cast %61 : vector<64xf32> to vector<1x64xf32>
    %cst_40 = arith.constant 8.000000e+00 : f32
    %63 = vector.broadcast %cst_40 : f32 to vector<1x64xf32>
    %64 = arith.divf %62, %63 : vector<1x64xf32>
    %65 = arith.mulf %59, %59 : vector<1x64xf32>
    %66 = arith.subf %64, %65 : vector<1x64xf32>
    %cst_41 = arith.constant 0.000000e+00 : f32
    %67 = vector.broadcast %cst_41 : f32 to vector<1x64xf32>
    %68 = arith.maximumf %66, %67 : vector<1x64xf32>
    %69 = vector.broadcast %59 : vector<1x64xf32> to vector<8x64xf32>
    %70 = arith.subf %55, %69 : vector<8x64xf32>
    %cst_42 = arith.constant 9.99999974E-6 : f32
    %71 = vector.broadcast %cst_42 : f32 to vector<1x64xf32>
    %72 = arith.addf %68, %71 : vector<1x64xf32>
    %73 = math.rsqrt %72 : vector<1x64xf32>
    %74 = vector.broadcast %73 : vector<1x64xf32> to vector<8x64xf32>
    %75 = arith.mulf %70, %74 : vector<8x64xf32>
    %76 = vector.broadcast %4 : vector<1x64xf32> to vector<8x64xf32>
    %77 = arith.mulf %75, %76 : vector<8x64xf32>
    %78 = vector.broadcast %5 : vector<1x64xf32> to vector<8x64xf32>
    %79 = arith.addf %77, %78 : vector<8x64xf32>
    %cst_43 = arith.constant 0.000000e+00 : f32
    %80 = vector.broadcast %cst_43 : f32 to vector<8x64xf32>
    %81 = arith.maximumf %79, %80 : vector<8x64xf32>
    %c0_44 = arith.constant 0 : index
    %c0_45 = arith.constant 0 : index
    %82 = vector.load %arg0[%c0_44, %c0_45] : memref<8x32xf32, #tpu.memory_space<vmem>>, vector<8x32xf32>
    %83 = vector.shape_cast %82 : vector<8x32xf32> to vector<8x32x1xf32>
    %84 = vector.shape_cast %82 : vector<8x32xf32> to vector<8x1x32xf32>
    %85 = tpu.iota {dimensions = array<i32: 1>} : vector<32x32xi32>
    %86 = tpu.iota {dimensions = array<i32: 0>} : vector<32x32xi32>
    %87 = arith.cmpi slt, %85, %86 : vector<32x32xi32>
    %88 = vector.broadcast %84 : vector<8x1x32xf32> to vector<8x32x32xf32>
    %89 = vector.broadcast %83 : vector<8x32x1xf32> to vector<8x32x32xf32>
    %90 = arith.cmpf ogt, %88, %89 : vector<8x32x32xf32>
    %91 = vector.broadcast %84 : vector<8x1x32xf32> to vector<8x32x32xf32>
    %92 = vector.broadcast %83 : vector<8x32x1xf32> to vector<8x32x32xf32>
    %93 = arith.cmpf oeq, %91, %92 : vector<8x32x32xf32>
    %94 = vector.shape_cast %87 : vector<32x32xi1> to vector<1x32x32xi1>
    %95 = vector.broadcast %94 : vector<1x32x32xi1> to vector<8x32x32xi1>
    %96 = arith.andi %93, %95 : vector<8x32x32xi1>
    %97 = arith.ori %90, %96 : vector<8x32x32xi1>
    %98 = arith.extui %97 : vector<8x32x32xi1> to vector<8x32x32xi32>
    %cst_46 = arith.constant dense<0> : vector<8x32xi32>
    %99 = vector.multi_reduction <add>, %98, %cst_46 [2] : vector<8x32x32xi32> to vector<8x32xi32>
    %cst_47 = arith.constant dense<0xFF800000> : vector<8xf32>
    %100 = vector.multi_reduction <maximumf>, %82, %cst_47 [1] : vector<8x32xf32> to vector<8xf32>
    %101 = vector.shape_cast %100 : vector<8xf32> to vector<8x1xf32>
    %102 = vector.broadcast %101 : vector<8x1xf32> to vector<8x32xf32>
    %103 = arith.subf %82, %102 : vector<8x32xf32>
    %104 = math.exp %103 : vector<8x32xf32>
    %cst_48 = arith.constant dense<0.000000e+00> : vector<8xf32>
    %105 = vector.multi_reduction <add>, %104, %cst_48 [1] : vector<8x32xf32> to vector<8xf32>
    %106 = vector.shape_cast %105 : vector<8xf32> to vector<8x1xf32>
    %107 = tpu.reciprocal %106 {approx = true} : vector<8x1xf32> -> vector<8x1xf32>
    %108 = vector.broadcast %107 : vector<8x1xf32> to vector<8x32xf32>
    %109 = arith.mulf %104, %108 : vector<8x32xf32>
    %110 = math.log %106 : vector<8x1xf32>
    %111 = arith.mulf %109, %103 : vector<8x32xf32>
    %cst_49 = arith.constant dense<0.000000e+00> : vector<8xf32>
    %112 = vector.multi_reduction <add>, %111, %cst_49 [1] : vector<8x32xf32> to vector<8xf32>
    %113 = vector.shape_cast %112 : vector<8xf32> to vector<8x1xf32>
    %114 = arith.subf %110, %113 : vector<8x1xf32>
    %cst_50 = arith.constant 0.000000e+00 : f32
    %115 = vector.broadcast %cst_50 : f32 to vector<8x32xf32>
    %c0_i32 = arith.constant 0 : i32
    %116 = vector.broadcast %c0_i32 : i32 to vector<8x32xi32>
    %117 = arith.cmpi eq, %99, %116 : vector<8x32xi32>
    %cst_51 = arith.constant 0.000000e+00 : f32
    %118 = vector.broadcast %cst_51 : f32 to vector<8x32xf32>
    %119 = arith.select %117, %109, %118 : vector<8x32xi1>, vector<8x32xf32>
    %cst_52 = arith.constant dense<0.000000e+00> : vector<8xf32>
    %120 = vector.multi_reduction <add>, %119, %cst_52 [1] : vector<8x32xf32> to vector<8xf32>
    %121 = vector.shape_cast %120 : vector<8xf32> to vector<8x1xf32>
    %c128_53 = arith.constant 128 : index
    %c0_54 = arith.constant 0 : index
    %122 = vector.load %arg3[%c128_53, %c0_54] : memref<138x32xf32, #tpu.memory_space<vmem>>, vector<1x32xf32>
    %123 = vector.broadcast %121 : vector<8x1xf32> to vector<8x32xf32>
    %124 = vector.broadcast %122 : vector<1x32xf32> to vector<8x32xf32>
    %125 = arith.mulf %123, %124 : vector<8x32xf32>
    %126 = arith.addf %115, %125 : vector<8x32xf32>
    %c1_i32 = arith.constant 1 : i32
    %127 = vector.broadcast %c1_i32 : i32 to vector<8x32xi32>
    %128 = arith.cmpi eq, %99, %127 : vector<8x32xi32>
    %cst_55 = arith.constant 0.000000e+00 : f32
    %129 = vector.broadcast %cst_55 : f32 to vector<8x32xf32>
    %130 = arith.select %128, %109, %129 : vector<8x32xi1>, vector<8x32xf32>
    %cst_56 = arith.constant dense<0.000000e+00> : vector<8xf32>
    %131 = vector.multi_reduction <add>, %130, %cst_56 [1] : vector<8x32xf32> to vector<8xf32>
    %132 = vector.shape_cast %131 : vector<8xf32> to vector<8x1xf32>
    %c129 = arith.constant 129 : index
    %c0_57 = arith.constant 0 : index
    %133 = vector.load %arg3[%c129, %c0_57] : memref<138x32xf32, #tpu.memory_space<vmem>>, vector<1x32xf32>
    %134 = vector.broadcast %132 : vector<8x1xf32> to vector<8x32xf32>
    %135 = vector.broadcast %133 : vector<1x32xf32> to vector<8x32xf32>
    %136 = arith.mulf %134, %135 : vector<8x32xf32>
    %137 = arith.addf %126, %136 : vector<8x32xf32>
    %c2_i32 = arith.constant 2 : i32
    %138 = vector.broadcast %c2_i32 : i32 to vector<8x32xi32>
    %139 = arith.cmpi eq, %99, %138 : vector<8x32xi32>
    %cst_58 = arith.constant 0.000000e+00 : f32
    %140 = vector.broadcast %cst_58 : f32 to vector<8x32xf32>
    %141 = arith.select %139, %109, %140 : vector<8x32xi1>, vector<8x32xf32>
    %cst_59 = arith.constant dense<0.000000e+00> : vector<8xf32>
    %142 = vector.multi_reduction <add>, %141, %cst_59 [1] : vector<8x32xf32> to vector<8xf32>
    %143 = vector.shape_cast %142 : vector<8xf32> to vector<8x1xf32>
    %c130 = arith.constant 130 : index
    %c0_60 = arith.constant 0 : index
    %144 = vector.load %arg3[%c130, %c0_60] : memref<138x32xf32, #tpu.memory_space<vmem>>, vector<1x32xf32>
    %145 = vector.broadcast %143 : vector<8x1xf32> to vector<8x32xf32>
    %146 = vector.broadcast %144 : vector<1x32xf32> to vector<8x32xf32>
    %147 = arith.mulf %145, %146 : vector<8x32xf32>
    %148 = arith.addf %137, %147 : vector<8x32xf32>
    %c3_i32 = arith.constant 3 : i32
    %149 = vector.broadcast %c3_i32 : i32 to vector<8x32xi32>
    %150 = arith.cmpi eq, %99, %149 : vector<8x32xi32>
    %cst_61 = arith.constant 0.000000e+00 : f32
    %151 = vector.broadcast %cst_61 : f32 to vector<8x32xf32>
    %152 = arith.select %150, %109, %151 : vector<8x32xi1>, vector<8x32xf32>
    %cst_62 = arith.constant dense<0.000000e+00> : vector<8xf32>
    %153 = vector.multi_reduction <add>, %152, %cst_62 [1] : vector<8x32xf32> to vector<8xf32>
    %154 = vector.shape_cast %153 : vector<8xf32> to vector<8x1xf32>
    %c131 = arith.constant 131 : index
    %c0_63 = arith.constant 0 : index
    %155 = vector.load %arg3[%c131, %c0_63] : memref<138x32xf32, #tpu.memory_space<vmem>>, vector<1x32xf32>
    %156 = vector.broadcast %154 : vector<8x1xf32> to vector<8x32xf32>
    %157 = vector.broadcast %155 : vector<1x32xf32> to vector<8x32xf32>
    %158 = arith.mulf %156, %157 : vector<8x32xf32>
    %159 = arith.addf %148, %158 : vector<8x32xf32>
    %c4_i32 = arith.constant 4 : i32
    %160 = vector.broadcast %c4_i32 : i32 to vector<8x32xi32>
    %161 = arith.cmpi eq, %99, %160 : vector<8x32xi32>
    %cst_64 = arith.constant 0.000000e+00 : f32
    %162 = vector.broadcast %cst_64 : f32 to vector<8x32xf32>
    %163 = arith.select %161, %109, %162 : vector<8x32xi1>, vector<8x32xf32>
    %cst_65 = arith.constant dense<0.000000e+00> : vector<8xf32>
    %164 = vector.multi_reduction <add>, %163, %cst_65 [1] : vector<8x32xf32> to vector<8xf32>
    %165 = vector.shape_cast %164 : vector<8xf32> to vector<8x1xf32>
    %c132 = arith.constant 132 : index
    %c0_66 = arith.constant 0 : index
    %166 = vector.load %arg3[%c132, %c0_66] : memref<138x32xf32, #tpu.memory_space<vmem>>, vector<1x32xf32>
    %167 = vector.broadcast %165 : vector<8x1xf32> to vector<8x32xf32>
    %168 = vector.broadcast %166 : vector<1x32xf32> to vector<8x32xf32>
    %169 = arith.mulf %167, %168 : vector<8x32xf32>
    %170 = arith.addf %159, %169 : vector<8x32xf32>
    %c5_i32 = arith.constant 5 : i32
    %171 = vector.broadcast %c5_i32 : i32 to vector<8x32xi32>
    %172 = arith.cmpi eq, %99, %171 : vector<8x32xi32>
    %cst_67 = arith.constant 0.000000e+00 : f32
    %173 = vector.broadcast %cst_67 : f32 to vector<8x32xf32>
    %174 = arith.select %172, %109, %173 : vector<8x32xi1>, vector<8x32xf32>
    %cst_68 = arith.constant dense<0.000000e+00> : vector<8xf32>
    %175 = vector.multi_reduction <add>, %174, %cst_68 [1] : vector<8x32xf32> to vector<8xf32>
    %176 = vector.shape_cast %175 : vector<8xf32> to vector<8x1xf32>
    %c133 = arith.constant 133 : index
    %c0_69 = arith.constant 0 : index
    %177 = vector.load %arg3[%c133, %c0_69] : memref<138x32xf32, #tpu.memory_space<vmem>>, vector<1x32xf32>
    %178 = vector.broadcast %176 : vector<8x1xf32> to vector<8x32xf32>
    %179 = vector.broadcast %177 : vector<1x32xf32> to vector<8x32xf32>
    %180 = arith.mulf %178, %179 : vector<8x32xf32>
    %181 = arith.addf %170, %180 : vector<8x32xf32>
    %c6_i32 = arith.constant 6 : i32
    %182 = vector.broadcast %c6_i32 : i32 to vector<8x32xi32>
    %183 = arith.cmpi eq, %99, %182 : vector<8x32xi32>
    %cst_70 = arith.constant 0.000000e+00 : f32
    %184 = vector.broadcast %cst_70 : f32 to vector<8x32xf32>
    %185 = arith.select %183, %109, %184 : vector<8x32xi1>, vector<8x32xf32>
    %cst_71 = arith.constant dense<0.000000e+00> : vector<8xf32>
    %186 = vector.multi_reduction <add>, %185, %cst_71 [1] : vector<8x32xf32> to vector<8xf32>
    %187 = vector.shape_cast %186 : vector<8xf32> to vector<8x1xf32>
    %c134 = arith.constant 134 : index
    %c0_72 = arith.constant 0 : index
    %188 = vector.load %arg3[%c134, %c0_72] : memref<138x32xf32, #tpu.memory_space<vmem>>, vector<1x32xf32>
    %189 = vector.broadcast %187 : vector<8x1xf32> to vector<8x32xf32>
    %190 = vector.broadcast %188 : vector<1x32xf32> to vector<8x32xf32>
    %191 = arith.mulf %189, %190 : vector<8x32xf32>
    %192 = arith.addf %181, %191 : vector<8x32xf32>
    %c7_i32 = arith.constant 7 : i32
    %193 = vector.broadcast %c7_i32 : i32 to vector<8x32xi32>
    %194 = arith.cmpi eq, %99, %193 : vector<8x32xi32>
    %cst_73 = arith.constant 0.000000e+00 : f32
    %195 = vector.broadcast %cst_73 : f32 to vector<8x32xf32>
    %196 = arith.select %194, %109, %195 : vector<8x32xi1>, vector<8x32xf32>
    %cst_74 = arith.constant dense<0.000000e+00> : vector<8xf32>
    %197 = vector.multi_reduction <add>, %196, %cst_74 [1] : vector<8x32xf32> to vector<8xf32>
    %198 = vector.shape_cast %197 : vector<8xf32> to vector<8x1xf32>
    %c135 = arith.constant 135 : index
    %c0_75 = arith.constant 0 : index
    %199 = vector.load %arg3[%c135, %c0_75] : memref<138x32xf32, #tpu.memory_space<vmem>>, vector<1x32xf32>
    %200 = vector.broadcast %198 : vector<8x1xf32> to vector<8x32xf32>
    %201 = vector.broadcast %199 : vector<1x32xf32> to vector<8x32xf32>
    %202 = arith.mulf %200, %201 : vector<8x32xf32>
    %203 = arith.addf %192, %202 : vector<8x32xf32>
    %c8_i32 = arith.constant 8 : i32
    %204 = vector.broadcast %c8_i32 : i32 to vector<8x32xi32>
    %205 = arith.cmpi eq, %99, %204 : vector<8x32xi32>
    %cst_76 = arith.constant 0.000000e+00 : f32
    %206 = vector.broadcast %cst_76 : f32 to vector<8x32xf32>
    %207 = arith.select %205, %109, %206 : vector<8x32xi1>, vector<8x32xf32>
    %cst_77 = arith.constant dense<0.000000e+00> : vector<8xf32>
    %208 = vector.multi_reduction <add>, %207, %cst_77 [1] : vector<8x32xf32> to vector<8xf32>
    %209 = vector.shape_cast %208 : vector<8xf32> to vector<8x1xf32>
    %c136 = arith.constant 136 : index
    %c0_78 = arith.constant 0 : index
    %210 = vector.load %arg3[%c136, %c0_78] : memref<138x32xf32, #tpu.memory_space<vmem>>, vector<1x32xf32>
    %211 = vector.broadcast %209 : vector<8x1xf32> to vector<8x32xf32>
    %212 = vector.broadcast %210 : vector<1x32xf32> to vector<8x32xf32>
    %213 = arith.mulf %211, %212 : vector<8x32xf32>
    %214 = arith.addf %203, %213 : vector<8x32xf32>
    %c9_i32 = arith.constant 9 : i32
    %215 = vector.broadcast %c9_i32 : i32 to vector<8x32xi32>
    %216 = arith.cmpi eq, %99, %215 : vector<8x32xi32>
    %cst_79 = arith.constant 0.000000e+00 : f32
    %217 = vector.broadcast %cst_79 : f32 to vector<8x32xf32>
    %218 = arith.select %216, %109, %217 : vector<8x32xi1>, vector<8x32xf32>
    %cst_80 = arith.constant dense<0.000000e+00> : vector<8xf32>
    %219 = vector.multi_reduction <add>, %218, %cst_80 [1] : vector<8x32xf32> to vector<8xf32>
    %220 = vector.shape_cast %219 : vector<8xf32> to vector<8x1xf32>
    %c137 = arith.constant 137 : index
    %c0_81 = arith.constant 0 : index
    %221 = vector.load %arg3[%c137, %c0_81] : memref<138x32xf32, #tpu.memory_space<vmem>>, vector<1x32xf32>
    %222 = vector.broadcast %220 : vector<8x1xf32> to vector<8x32xf32>
    %223 = vector.broadcast %221 : vector<1x32xf32> to vector<8x32xf32>
    %224 = arith.mulf %222, %223 : vector<8x32xf32>
    %225 = arith.addf %214, %224 : vector<8x32xf32>
    %226 = vector.broadcast %114 : vector<8x1xf32> to vector<8x32xf32>
    %227 = vector.broadcast %6 : vector<1x32xf32> to vector<8x32xf32>
    %228 = arith.mulf %226, %227 : vector<8x32xf32>
    %229 = arith.addf %228, %225 : vector<8x32xf32>
    %cst_82 = arith.constant dense<0.000000e+00> : vector<8x32xf32>
    %230 = tpu.matmul %81, %18, %cst_82 {dimension_numbers = #tpu.dot_dimension_numbers<[1], [0], [0], [1], [0, 0, 1, 1], [], []>} : vector<8x64xf32>, vector<64x32xf32>, vector<8x32xf32> -> vector<8x32xf32>
    %231 = arith.addf %229, %230 : vector<8x32xf32>
    %232 = vector.broadcast %7 : vector<1x32xf32> to vector<8x32xf32>
    %233 = arith.addf %231, %232 : vector<8x32xf32>
    %cst_83 = arith.constant dense<0.000000e+00> : vector<32xf32>
    %234 = vector.multi_reduction <add>, %233, %cst_83 [0] : vector<8x32xf32> to vector<32xf32>
    %235 = vector.shape_cast %234 : vector<32xf32> to vector<1x32xf32>
    %cst_84 = arith.constant 8.000000e+00 : f32
    %236 = vector.broadcast %cst_84 : f32 to vector<1x32xf32>
    %237 = arith.divf %235, %236 : vector<1x32xf32>
    %238 = arith.mulf %233, %233 : vector<8x32xf32>
    %cst_85 = arith.constant dense<0.000000e+00> : vector<32xf32>
    %239 = vector.multi_reduction <add>, %238, %cst_85 [0] : vector<8x32xf32> to vector<32xf32>
    %240 = vector.shape_cast %239 : vector<32xf32> to vector<1x32xf32>
    %cst_86 = arith.constant 8.000000e+00 : f32
    %241 = vector.broadcast %cst_86 : f32 to vector<1x32xf32>
    %242 = arith.divf %240, %241 : vector<1x32xf32>
    %243 = arith.mulf %237, %237 : vector<1x32xf32>
    %244 = arith.subf %242, %243 : vector<1x32xf32>
    %cst_87 = arith.constant 0.000000e+00 : f32
    %245 = vector.broadcast %cst_87 : f32 to vector<1x32xf32>
    %246 = arith.maximumf %244, %245 : vector<1x32xf32>
    %247 = vector.broadcast %237 : vector<1x32xf32> to vector<8x32xf32>
    %248 = arith.subf %233, %247 : vector<8x32xf32>
    %cst_88 = arith.constant 9.99999974E-6 : f32
    %249 = vector.broadcast %cst_88 : f32 to vector<1x32xf32>
    %250 = arith.addf %246, %249 : vector<1x32xf32>
    %251 = math.rsqrt %250 : vector<1x32xf32>
    %252 = vector.broadcast %251 : vector<1x32xf32> to vector<8x32xf32>
    %253 = arith.mulf %248, %252 : vector<8x32xf32>
    %254 = vector.broadcast %8 : vector<1x32xf32> to vector<8x32xf32>
    %255 = arith.mulf %253, %254 : vector<8x32xf32>
    %256 = vector.broadcast %9 : vector<1x32xf32> to vector<8x32xf32>
    %257 = arith.addf %255, %256 : vector<8x32xf32>
    %cst_89 = arith.constant 0.000000e+00 : f32
    %258 = vector.broadcast %cst_89 : f32 to vector<8x32xf32>
    %259 = arith.maximumf %257, %258 : vector<8x32xf32>
    %cst_90 = arith.constant dense<0.000000e+00> : vector<8x64xf32>
    %260 = tpu.matmul %259, %21, %cst_90 {dimension_numbers = #tpu.dot_dimension_numbers<[1], [0], [0], [1], [0, 0, 1, 1], [], []>} : vector<8x32xf32>, vector<32x64xf32>, vector<8x64xf32> -> vector<8x64xf32>
    %261 = vector.broadcast %10 : vector<1x64xf32> to vector<8x64xf32>
    %262 = arith.addf %260, %261 : vector<8x64xf32>
    %cst_91 = arith.constant dense<0.000000e+00> : vector<64xf32>
    %263 = vector.multi_reduction <add>, %262, %cst_91 [0] : vector<8x64xf32> to vector<64xf32>
    %264 = vector.shape_cast %263 : vector<64xf32> to vector<1x64xf32>
    %cst_92 = arith.constant 8.000000e+00 : f32
    %265 = vector.broadcast %cst_92 : f32 to vector<1x64xf32>
    %266 = arith.divf %264, %265 : vector<1x64xf32>
    %267 = arith.mulf %262, %262 : vector<8x64xf32>
    %cst_93 = arith.constant dense<0.000000e+00> : vector<64xf32>
    %268 = vector.multi_reduction <add>, %267, %cst_93 [0] : vector<8x64xf32> to vector<64xf32>
    %269 = vector.shape_cast %268 : vector<64xf32> to vector<1x64xf32>
    %cst_94 = arith.constant 8.000000e+00 : f32
    %270 = vector.broadcast %cst_94 : f32 to vector<1x64xf32>
    %271 = arith.divf %269, %270 : vector<1x64xf32>
    %272 = arith.mulf %266, %266 : vector<1x64xf32>
    %273 = arith.subf %271, %272 : vector<1x64xf32>
    %cst_95 = arith.constant 0.000000e+00 : f32
    %274 = vector.broadcast %cst_95 : f32 to vector<1x64xf32>
    %275 = arith.maximumf %273, %274 : vector<1x64xf32>
    %276 = vector.broadcast %266 : vector<1x64xf32> to vector<8x64xf32>
    %277 = arith.subf %262, %276 : vector<8x64xf32>
    %cst_96 = arith.constant 9.99999974E-6 : f32
    %278 = vector.broadcast %cst_96 : f32 to vector<1x64xf32>
    %279 = arith.addf %275, %278 : vector<1x64xf32>
    %280 = math.rsqrt %279 : vector<1x64xf32>
    %281 = vector.broadcast %280 : vector<1x64xf32> to vector<8x64xf32>
    %282 = arith.mulf %277, %281 : vector<8x64xf32>
    %283 = vector.broadcast %11 : vector<1x64xf32> to vector<8x64xf32>
    %284 = arith.mulf %282, %283 : vector<8x64xf32>
    %285 = vector.broadcast %12 : vector<1x64xf32> to vector<8x64xf32>
    %286 = arith.addf %284, %285 : vector<8x64xf32>
    %cst_97 = arith.constant 0.000000e+00 : f32
    %287 = vector.broadcast %cst_97 : f32 to vector<8x64xf32>
    %288 = arith.maximumf %286, %287 : vector<8x64xf32>
    %cst_98 = arith.constant dense<0.000000e+00> : vector<8x32xf32>
    %289 = tpu.matmul %288, %19, %cst_98 {dimension_numbers = #tpu.dot_dimension_numbers<[1], [0], [0], [1], [0, 0, 1, 1], [], []>} : vector<8x64xf32>, vector<64x32xf32>, vector<8x32xf32> -> vector<8x32xf32>
    %290 = vector.broadcast %13 : vector<1x32xf32> to vector<8x32xf32>
    %291 = arith.addf %289, %290 : vector<8x32xf32>
    %cst_99 = arith.constant dense<0.000000e+00> : vector<32xf32>
    %292 = vector.multi_reduction <add>, %291, %cst_99 [0] : vector<8x32xf32> to vector<32xf32>
    %293 = vector.shape_cast %292 : vector<32xf32> to vector<1x32xf32>
    %cst_100 = arith.constant 8.000000e+00 : f32
    %294 = vector.broadcast %cst_100 : f32 to vector<1x32xf32>
    %295 = arith.divf %293, %294 : vector<1x32xf32>
    %296 = arith.mulf %291, %291 : vector<8x32xf32>
    %cst_101 = arith.constant dense<0.000000e+00> : vector<32xf32>
    %297 = vector.multi_reduction <add>, %296, %cst_101 [0] : vector<8x32xf32> to vector<32xf32>
    %298 = vector.shape_cast %297 : vector<32xf32> to vector<1x32xf32>
    %cst_102 = arith.constant 8.000000e+00 : f32
    %299 = vector.broadcast %cst_102 : f32 to vector<1x32xf32>
    %300 = arith.divf %298, %299 : vector<1x32xf32>
    %301 = arith.mulf %295, %295 : vector<1x32xf32>
    %302 = arith.subf %300, %301 : vector<1x32xf32>
    %cst_103 = arith.constant 0.000000e+00 : f32
    %303 = vector.broadcast %cst_103 : f32 to vector<1x32xf32>
    %304 = arith.maximumf %302, %303 : vector<1x32xf32>
    %305 = vector.broadcast %295 : vector<1x32xf32> to vector<8x32xf32>
    %306 = arith.subf %291, %305 : vector<8x32xf32>
    %cst_104 = arith.constant 9.99999974E-6 : f32
    %307 = vector.broadcast %cst_104 : f32 to vector<1x32xf32>
    %308 = arith.addf %304, %307 : vector<1x32xf32>
    %309 = math.rsqrt %308 : vector<1x32xf32>
    %310 = vector.broadcast %309 : vector<1x32xf32> to vector<8x32xf32>
    %311 = arith.mulf %306, %310 : vector<8x32xf32>
    %312 = vector.broadcast %14 : vector<1x32xf32> to vector<8x32xf32>
    %313 = arith.mulf %311, %312 : vector<8x32xf32>
    %314 = vector.broadcast %15 : vector<1x32xf32> to vector<8x32xf32>
    %315 = arith.addf %313, %314 : vector<8x32xf32>
    %cst_105 = arith.constant 0.000000e+00 : f32
    %316 = vector.broadcast %cst_105 : f32 to vector<8x32xf32>
    %317 = arith.maximumf %315, %316 : vector<8x32xf32>
    %318 = vector.broadcast %16 : vector<1x32xf32> to vector<8x32xf32>
    %319 = arith.mulf %317, %318 : vector<8x32xf32>
    %cst_106 = arith.constant dense<0.000000e+00> : vector<8xf32>
    %320 = vector.multi_reduction <add>, %319, %cst_106 [1] : vector<8x32xf32> to vector<8xf32>
    %321 = vector.shape_cast %320 : vector<8xf32> to vector<8x1xf32>
    %322 = vector.broadcast %17 : vector<1x1xf32> to vector<8x1xf32>
    %323 = arith.addf %321, %322 : vector<8x1xf32>
    %c0_107 = arith.constant 0 : index
    %c0_108 = arith.constant 0 : index
    %324 = vector.load %arg6[%c0_107, %c0_108] : memref<8x1xf32, #tpu.memory_space<vmem>>, vector<8x1xf32>
    tpu.vector_store %arg6[%c0_107, %c0_108], %323 {strides = array<i32>} : memref<8x1xf32, #tpu.memory_space<vmem>>, vector<8x1xf32>,
    return
  }
}

</mosaic_0001>

<bundles_post_ra>
// kernel: tpu_custom_call.1
= control target key start
LH: loop header
LB: loop body
LE: loop exit
PB: predicated region body
PF: predicated region fallthrough
CT: control target
= control target key end

     0   :  { %v224_v0 = vlaneseq  ;;  %vm85_vm10 = vcmask 261120   ;;  %v7329_v24 = vmov 0   ;;  %s7322_s0 = inlined_call_operand.vmem [shape: f32[8,32], index: 0, kind: input, shape index: {}]   ;;  %s7323_s5 = inlined_call_operand.vmem [shape: f32[1,2304], index: 5, kind: input, shape index: {}]   ;;  %s7324_s3 = inlined_call_operand.vmem [shape: f32[138,32], index: 3, kind: input, shape index: {}]   ;;  %s7325_s2 = inlined_call_operand.vmem [shape: f32[32,128], index: 2, kind: input, shape index: {}]   ;;  %s7326_s1 = inlined_call_operand.vmem [shape: f32[8,32], index: 1, kind: input, shape index: {}]   ;;  %s7327_s4 = inlined_call_operand.vmem [shape: f32[160,64], index: 4, kind: input, shape index: {}]   ;;  %s7328_s6 = inlined_call_operand.vmem [shape: f32[8,1], index: 6, kind: output, shape index: {}]  }
   0x1   :  { %v4325_v3 = vld [vmem:[%s7322_s0] sm:$0xff] }
   0x2   :  { %v4316_v1 = vshrl.u32 %v224_v0, 7  ;;  %v248_v4 = vperm.slane %v4325_v3, 1  ;;  %v323_v5 = vperm.slane %v4325_v3, 4  ;;  %v4332_v6 = vperm.slane %v4325_v3, 0 }
   0x3   :  { %v348_v9 = vperm.slane %v4325_v3, 5  ;;  %v273_v10 = vperm.slane %v4325_v3, 2  ;;  %v4354_v11 = vperm.slane %v4325_v3, 7  ;;  %v298_v12 = vperm.slane %v4325_v3, 3 }
   0x4   :  { %4170 = vset.pattern.permute.xlu2 %v4316_v1  ;;  %v4320_v2 = vadd.s32 16, %v4316_v1  ;;  %v4336_v7 = vadd.s32 8, %v4316_v1  ;;  %v4339_v8 = vadd.s32 24, %v4316_v1  ;;  %v373_v15 = vperm.slane %v4325_v3, 6 }
   0x5   :  { %v4378_v17 = vand.u32 127, %v224_v0  ;;  %v424_v18 = vrot.slane %v4325_v3, 1  ;;  %v425_v44 = vrot.slane %v4325_v3, 2  ;;  %v426_v62 = vrot.slane %v4325_v3, 3 }
   0x6   :  { %4184 = vset.pattern.permute.xlu0 %v4320_v2  ;;  %4171 = vset.pattern.permute.xlu1 %v4320_v2 }
   0x7   :  { %7539 = vst [vmem:[#allocation2_spill] sm:$0xff] %v4378_v17  ;;  %vm4384_vm1 = vcmp.lt.s32.totalorder %v4378_v17, %v4320_v2  ;;  %vm4393_vm4 = vcmp.lt.s32.totalorder %v4378_v17, %v4316_v1  ;;  %v4397_v22 = vperm.slane %v424_v18, 0  ;;  %vm4423_vm15 = vcmp.lt.s32.totalorder %v4378_v17, %v4336_v7 }
   0x8   :  { %v4455_v47 = vperm.slane %v425_v44, 0 }
   0xc   :  { %253 = vperm.xlu2 %4170, %v248_v4  }
   0xe   :  { %340 = vperm.xlu0 %4184, %v323_v5   ;;  %240 = vperm.xlu1 %4171, %v4332_v6  }
  0x14   :  { %4173 = vset.pattern.permute.xlu2 %v4336_v7 }
  0x16   :  { %4189 = vset.pattern.permute.xlu0 %v4339_v8  ;;  %4172 = vset.pattern.permute.xlu1 %v4339_v8 }
  0x1c   :  { %259 = vperm.xlu2 %4173, %v248_v4  }
  0x1e   :  { %371 = vperm.xlu0 %4189, %v348_v9   ;;  %246 = vperm.xlu1 %4172, %v4332_v6  }
  0x24   :  { %4175 = vset.pattern.permute.xlu2 %v4339_v8 }
  0x26   :  { %4190 = vset.pattern.permute.xlu0 %v4316_v1  ;;  %4174 = vset.pattern.permute.xlu1 %v4320_v2 }
  0x2c   :  { %271 = vperm.xlu2 %4175, %v248_v4  }
  0x2e   :  { %228 = vperm.xlu0 %4190, %v4332_v6   ;;  %265 = vperm.xlu1 %4174, %v248_v4  }
  0x34   :  { %4177 = vset.pattern.permute.xlu2 %v4320_v2 }
  0x36   :  { %4176 = vset.pattern.permute.xlu1 %v4336_v7  ;;  %278 = vperm.xlu0 %4190, %v273_v10  }
  0x3c   :  { %290 = vperm.xlu2 %4177, %v273_v10  }
  0x3e   :  { %284 = vperm.xlu1 %4176, %v273_v10   ;;  %403 = vperm.xlu0 %4190, %v4354_v11  }
  0x44   :  { %4179 = vset.pattern.permute.xlu2 %v4316_v1 }
  0x46   :  { %4178 = vset.pattern.permute.xlu1 %v4339_v8  ;;  %4195 = vset.pattern.permute.xlu0 %v4336_v7 }
  0x4c   :  { %303 = vperm.xlu2 %4179, %v298_v12  }
  0x4e   :  { %296 = vperm.xlu1 %4178, %v273_v10   ;;  %234 = vperm.xlu0 %4195, %v4332_v6  }
  0x54   :  { %4181 = vset.pattern.permute.xlu2 %v4339_v8 }
  0x56   :  { %4180 = vset.pattern.permute.xlu1 %v4320_v2  ;;  %309 = vperm.xlu0 %4195, %v298_v12  }
  0x5c   :  { %321 = vperm.xlu2 %4181, %v298_v12  }
  0x5e   :  { %315 = vperm.xlu1 %4180, %v298_v12  }
  0x64   :  { %4183 = vset.pattern.permute.xlu2 %v4336_v7 }
  0x66   :  { %4182 = vset.pattern.permute.xlu1 %v4316_v1  ;;  %v254_v23 = vpop.permute.xlu2 %253 }
  0x67   :  { %vm494_vm11 = vcmp.eq.f32.partialorder %v4397_v22, %v254_v23  ;;  %vm462_vm12 = vcmp.gt.f32.partialorder %v4397_v22, %v254_v23 }
  0x68   :  { %vm534_vm13 = vmand %vm494_vm11, %vm4393_vm4 }
  0x69   :  { %vm566_vm14 = vmor %vm462_vm12, %vm534_vm13 }
  0x6a   :  { %v598_v36 = vsel %vm566_vm14, 1, %v7329_v24 }
  0x6b   :  { %v4433_v37 = vsel %vm85_vm10, %v598_v36, 0 }
  0x6c   :  { %334 = vperm.xlu2 %4183, %v323_v5   ;;  %v679_v40 = vand.u32 65535, %v4433_v37 }
  0x6e   :  { %328 = vperm.xlu1 %4182, %v323_v5   ;;  %v681_v45 = vcvt.s32.f32 %v679_v40 }
  0x74   :  { %4186 = vset.pattern.permute.xlu2 %v4316_v1 }
  0x76   :  { %4185 = vset.pattern.permute.xlu1 %v4339_v8  ;;  %v260_v31 = vpop.permute.xlu2 %259 }
  0x7c   :  { %353 = vperm.xlu2 %4186, %v348_v9  }
  0x7e   :  { %346 = vperm.xlu1 %4185, %v323_v5   ;;  %v4491_v5 = vperm.slane %v426_v62, 0 }
  0x80   :  { %v4370_v13 = vpop.permute.xlu0 %340  ;;  %v241_v16 = vpop.permute.xlu1 %240 }
  0x81   :  { %vm492_vm0 = vcmp.eq.f32.partialorder %v4332_v6, %v241_v16  ;;  %vm460_vm2 = vcmp.gt.f32.partialorder %v4332_v6, %v241_v16 }
  0x82   :  { %vm532_vm3 = vmand %vm492_vm0, %vm4384_vm1  ;;  %vm495_vm0 = vcmp.eq.f32.partialorder %v4397_v22, %v260_v31 }
  0x83   :  { %vm564_vm7 = vmor %vm460_vm2, %vm532_vm3  ;;  %vm463_vm2 = vcmp.gt.f32.partialorder %v4397_v22, %v260_v31 }
  0x84   :  { %4188 = vset.pattern.permute.xlu2 %v4320_v2  ;;  %v596_v26 = vsel %vm564_vm7, 1, %v7329_v24  ;;  %vm535_vm3 = vmand %vm495_vm0, %vm4423_vm15 }
  0x85   :  { %v4413_v29 = vsel %vm85_vm10, %v596_v26, 0 }
  0x86   :  { %4187 = vset.pattern.permute.xlu1 %v4336_v7  ;;  %v654_v32 = vshrl.u32 %v4413_v29, 16  ;;  %v272_v38 = vpop.permute.xlu2 %271 }
  0x87   :  { %vm497_vm7 = vcmp.eq.f32.partialorder %v4397_v22, %v272_v38 }
  0x88   :  { %v656_v35 = vcvt.s32.f32 %v654_v32 }
  0x8c   :  { %365 = vperm.xlu2 %4188, %v348_v9  }
  0x8e   :  { %359 = vperm.xlu1 %4187, %v348_v9  }
  0x90   :  { %v4374_v14 = vpop.permute.xlu0 %371  ;;  %v4419_v33 = vpop.permute.xlu1 %246 }
  0x94   :  { %4192 = vset.pattern.permute.xlu2 %v4336_v7 }
  0x96   :  { %4191 = vset.pattern.permute.xlu1 %v4316_v1  ;;  %v291_v54 = vpop.permute.xlu2 %290 }
  0x9c   :  { %384 = vperm.xlu2 %4192, %v373_v15  }
  0x9e   :  { %378 = vperm.xlu1 %4191, %v373_v15  }
  0xa0   :  { %v229_v20 = vpop.permute.xlu0 %228  ;;  %v4437_v41 = vpop.permute.xlu1 %265 }
  0xa1   :  { %vm458_vm5 = vcmp.gt.f32.partialorder %v4332_v6, %v229_v20  ;;  %vm490_vm6 = vcmp.eq.f32.partialorder %v4332_v6, %v229_v20 }
  0xa2   :  { %vm530_vm8 = vmand %vm490_vm6, %vm4393_vm4  ;;  %vm4441_vm6 = vcmp.lt.s32.totalorder %v4378_v17, %v4339_v8 }
  0xa3   :  { %vm562_vm9 = vmor %vm458_vm5, %vm530_vm8  ;;  %vm465_vm8 = vcmp.gt.f32.partialorder %v4397_v22, %v272_v38 }
  0xa4   :  { %4194 = vset.pattern.permute.xlu2 %v4339_v8  ;;  %v594_v25 = vsel %vm562_vm9, 1, %v7329_v24  ;;  %vm567_vm5 = vmor %vm463_vm2, %vm535_vm3  ;;  %vm500_vm2 = vcmp.eq.f32.partialorder %v4455_v47, %v291_v54  ;;  %vm468_vm3 = vcmp.gt.f32.partialorder %v4455_v47, %v291_v54 }
  0xa5   :  { %v4408_v27 = vsel %vm85_vm10, %v594_v25, 0  ;;  %v599_v43 = vsel %vm567_vm5, 1, %v7329_v24  ;;  %vm537_vm9 = vmand %vm497_vm7, %vm4441_vm6  ;;  %v427_v25 = vrot.slane %v4325_v3, 4 }
  0xa6   :  { %4193 = vset.pattern.permute.xlu1 %v4320_v2  ;;  %v628_v28 = vshrl.u32 %v4408_v27, 16  ;;  %v4453_v46 = vsel %vm85_vm10, %v599_v43, 0  ;;  %vm569_vm11 = vmor %vm465_vm8, %vm537_vm9  ;;  %v4510_v18 = vpop.permute.xlu2 %303 }
  0xa7   :  { %v693_v48 = vshrl.u32 %v4453_v46, 16  ;;  %v601_v50 = vsel %vm569_vm11, 1, %v7329_v24  ;;  %vm540_vm5 = vmand %vm500_vm2, %vm4384_vm1 }
  0xa8   :  { %v630_v30 = vcvt.s32.f32 %v628_v28  ;;  %v279_v39 = vpop.permute.xlu0 %278  ;;  %v4470_v53 = vsel %vm85_vm10, %v601_v50, 0  ;;  %vm572_vm7 = vmor %vm468_vm3, %vm540_vm5  ;;  %v627_v28 = vand.u32 65535, %v4408_v27 }
  0xa9   :  { %vm498_vm12 = vcmp.eq.f32.partialorder %v4455_v47, %v279_v39  ;;  %vm466_vm13 = vcmp.gt.f32.partialorder %v4455_v47, %v279_v39  ;;  %v695_v52 = vcvt.s32.f32 %v693_v48  ;;  %v718_v55 = vand.u32 65535, %v4470_v53 }
  0xaa   :  { %633 = vadd.xlane.f32.xlu0 %v630_v30  ;;  %vm538_vm14 = vmand %vm498_vm12, %vm4393_vm4  ;;  %v604_v63 = vsel %vm572_vm7, 1, %v7329_v24  ;;  %v629_v40 = vcvt.s32.f32 %v627_v28 }
  0xab   :  { %vm570_vm0 = vmor %vm466_vm13, %vm538_vm14  ;;  %v720_v58 = vcvt.s32.f32 %v718_v55  ;;  %v4494_v9 = vsel %vm85_vm10, %v604_v63, 0 }
  0xac   :  { %396 = vperm.xlu2 %4194, %v373_v15   ;;  %v602_v56 = vsel %vm570_vm0, 1, %v7329_v24  ;;  %v757_v10 = vand.u32 65535, %v4494_v9 }
  0xad   :  { %v4481_v60 = vsel %vm85_vm10, %v602_v56, 0  ;;  %v653_v56 = vand.u32 65535, %v4413_v29 }
  0xae   :  { %390 = vperm.xlu1 %4193, %v373_v15   ;;  %v732_v61 = vshrl.u32 %v4481_v60, 16  ;;  %v759_v16 = vcvt.s32.f32 %v757_v10 }
  0xb0   :  { %v4461_v49 = vpop.permute.xlu0 %403  ;;  %v4464_v51 = vpop.permute.xlu1 %284  ;;  %v734_v0 = vcvt.s32.f32 %v732_v61  ;;  %v655_v61 = vcvt.s32.f32 %v653_v56 }
  0xb2   :  { %659 = vadd.xlane.f32.xlu0 %v656_v35  ;;  %v4524_v35 = vperm.slane %v427_v25, 0 }
  0xb4   :  { %4197 = vset.pattern.permute.xlu2 %v4320_v2 }
  0xb6   :  { %4196 = vset.pattern.permute.xlu1 %v4336_v7  ;;  %v4526_v36 = vpop.permute.xlu2 %321 }
  0xba   :  { %683 = vadd.xlane.f32.xlu0 %v681_v45 }
  0xbc   :  { %415 = vperm.xlu2 %4197, %v4354_v11  }
  0xbe   :  { %409 = vperm.xlu1 %4196, %v4354_v11  }
  0xc0   :  { %v235_v57 = vpop.permute.xlu0 %234  ;;  %v297_v59 = vpop.permute.xlu1 %296 }
  0xc1   :  { %vm501_vm8 = vcmp.eq.f32.partialorder %v4455_v47, %v297_v59  ;;  %vm469_vm9 = vcmp.gt.f32.partialorder %v4455_v47, %v297_v59  ;;  %vm491_vm14 = vcmp.eq.f32.partialorder %v4332_v6, %v235_v57  ;;  %vm459_vm5 = vcmp.gt.f32.partialorder %v4332_v6, %v235_v57 }
  0xc2   :  { %698 = vadd.xlane.f32.xlu0 %v695_v52  ;;  %vm541_vm11 = vmand %vm501_vm8, %vm4441_vm6 }
  0xc3   :  { %vm573_vm12 = vmor %vm469_vm9, %vm541_vm11 }
  0xc4   :  { %4199 = vset.pattern.permute.xlu2 %v4316_v1  ;;  %vm531_vm3 = vmand %vm491_vm14, %vm4423_vm15 }
  0xc5   :  { %vm563_vm9 = vmor %vm459_vm5, %vm531_vm3  ;;  %vm493_vm3 = vcmp.eq.f32.partialorder %v4332_v6, %v4419_v33 }
  0xc6   :  { %4198 = vset.pattern.permute.xlu1 %v4339_v8  ;;  %v595_v31 = vsel %vm563_vm9, 1, %v7329_v24  ;;  %v335_v50 = vpop.permute.xlu2 %334 }
  0xc7   :  { %v639_v39 = vsel %vm85_vm10, %v595_v31, 0  ;;  %vm507_vm9 = vcmp.eq.f32.partialorder %v4524_v35, %v335_v50  ;;  %v692_v31 = vand.u32 65535, %v4453_v46 }
  0xc8   :  { %v310_v4 = vpop.permute.xlu0 %309  ;;  %v641_v43 = vshrl.u32 %v639_v39, 16 }
  0xc9   :  { %vm503_vm13 = vcmp.eq.f32.partialorder %v4491_v5, %v310_v4  ;;  %vm471_vm0 = vcmp.gt.f32.partialorder %v4491_v5, %v310_v4  ;;  %v428_v4 = vrot.slane %v4325_v3, 5  ;;  %v694_v46 = vcvt.s32.f32 %v692_v31 }
  0xca   :  { %722 = vadd.xlane.f32.xlu0 %v720_v58  ;;  %vm543_vm2 = vmand %vm503_vm13, %vm4423_vm15  ;;  %v643_v48 = vcvt.s32.f32 %v641_v43  ;;  %v640_v58 = vand.u32 65535, %v639_v39  ;;  %v680_v39 = vshrl.u32 %v4433_v37, 16 }
  0xcb   :  { %vm575_vm7 = vmor %vm471_vm0, %vm543_vm2 }
  0xcc   :  { %v607_v23 = vsel %vm575_vm7, 1, %v7329_v24  ;;  %vm461_vm7 = vcmp.gt.f32.partialorder %v4332_v6, %v4419_v33  ;;  %v642_v62 = vcvt.s32.f32 %v640_v58  ;;  %v682_v43 = vcvt.s32.f32 %v680_v39 }
  0xcd   :  { %v4521_v30 = vsel %vm85_vm10, %v607_v23, 0 }
  0xce   :  { %421 = vperm.xlu1 %4198, %v4354_v11   ;;  %v605_v11 = vsel %vm573_vm12, 1, %v7329_v24  ;;  %v796_v38 = vand.u32 65535, %v4521_v30 }
  0xcf   :  { %v4505_v15 = vsel %vm85_vm10, %v605_v11, 0 }
  0xd0   :  { %v316_v12 = vpop.permute.xlu1 %315  ;;  %v771_v20 = vshrl.u32 %v4505_v15, 16  ;;  %v798_v44 = vcvt.s32.f32 %v796_v38 }
  0xd1   :  { %vm504_vm8 = vcmp.eq.f32.partialorder %v4491_v5, %v316_v12  ;;  %vm472_vm11 = vcmp.gt.f32.partialorder %v4491_v5, %v316_v12 }
  0xd2   :  { %737 = vadd.xlane.f32.xlu0 %v734_v0  ;;  %v773_v26 = vcvt.s32.f32 %v771_v20  ;;  %vm544_vm12 = vmand %vm504_vm8, %vm4384_vm1  ;;  %v4568_v20 = vperm.slane %v428_v4, 0 }
  0xd3   :  { %vm576_vm13 = vmor %vm472_vm11, %vm544_vm12  ;;  %vm475_vm12 = vcmp.gt.f32.partialorder %v4524_v35, %v335_v50 }
  0xd4   :  { %v608_v27 = vsel %vm576_vm13, 1, %v7329_v24  ;;  %vm533_vm8 = vmand %vm493_vm3, %vm4441_vm6 }
  0xd5   :  { %v4536_v45 = vsel %vm85_vm10, %v608_v27, 0  ;;  %vm565_vm11 = vmor %vm461_vm7, %vm533_vm8  ;;  %vm464_vm8 = vcmp.gt.f32.partialorder %v4397_v22, %v4437_v41 }
  0xd6   :  { %4200 = vset.pattern.permute.xlu1 %v4320_v2  ;;  %v810_v52 = vshrl.u32 %v4536_v45, 16  ;;  %vm547_vm13 = vmand %vm507_vm9, %vm4423_vm15  ;;  %v597_v33 = vsel %vm565_vm11, 1, %v7329_v24  ;;  %v354_v12 = vpop.permute.xlu2 %353 }
  0xd7   :  { %v665_v29 = vsel %vm85_vm10, %v597_v33, 0  ;;  %vm510_vm11 = vcmp.eq.f32.partialorder %v4568_v20, %v354_v12 }
  0xd8   :  { %v812_v55 = vcvt.s32.f32 %v810_v52  ;;  %v667_v10 = vshrl.u32 %v665_v29, 16 }
  0xda   :  { %761 = vadd.xlane.f32.xlu0 %v759_v16  ;;  %v666_v16 = vand.u32 65535, %v665_v29  ;;  %v669_v23 = vcvt.s32.f32 %v667_v10 }
  0xdc   :  { %v668_v28 = vcvt.s32.f32 %v666_v16 }
  0xe0   :  { %v329_v32 = vpop.permute.xlu1 %328 }
  0xe1   :  { %vm506_vm14 = vcmp.eq.f32.partialorder %v4524_v35, %v329_v32  ;;  %vm474_vm0 = vcmp.gt.f32.partialorder %v4524_v35, %v329_v32 }
  0xe2   :  { %776 = vadd.xlane.f32.xlu0 %v773_v26  ;;  %vm546_vm2 = vmand %vm506_vm14, %vm4393_vm4 }
  0xe3   :  { %vm578_vm5 = vmor %vm474_vm0, %vm546_vm2 }
  0xe4   :  { %v610_v54 = vsel %vm578_vm5, 1, %v7329_v24  ;;  %vm579_vm14 = vmor %vm475_vm12, %vm547_vm13  ;;  %vm496_vm5 = vcmp.eq.f32.partialorder %v4397_v22, %v4437_v41  ;;  %vm478_vm13 = vcmp.gt.f32.partialorder %v4568_v20, %v354_v12 }
  0xe5   :  { %631 = vadd.xlane.f32.xlu2 %v629_v40  ;;  %v4549_v57 = vsel %vm85_vm10, %v610_v54, 0  ;;  %v611_v0 = vsel %vm579_vm14, 1, %v7329_v24  ;;  %vm536_vm9 = vmand %vm496_vm5, %vm4384_vm1 }
  0xe6   :  { %v835_v59 = vand.u32 65535, %v4549_v57  ;;  %v4566_v11 = vsel %vm85_vm10, %v611_v0, 0  ;;  %vm568_vm12 = vmor %vm464_vm8, %vm536_vm9  ;;  %v366_v38 = vpop.permute.xlu2 %365  ;;  %vm467_vm9 = vcmp.gt.f32.partialorder %v4455_v47, %v4464_v51 }
  0xe7   :  { %v849_v25 = vshrl.u32 %v4566_v11, 16  ;;  %vm550_vm14 = vmand %vm510_vm11, %vm4393_vm4  ;;  %v600_v41 = vsel %vm568_vm12, 1, %v7329_v24  ;;  %vm480_vm5 = vcmp.gt.f32.partialorder %v4568_v20, %v366_v38  ;;  %vm513_vm12 = vcmp.eq.f32.partialorder %v4568_v20, %v4374_v14 }
  0xe8   :  { %v837_v63 = vcvt.s32.f32 %v835_v59  ;;  %v704_v27 = vsel %vm85_vm10, %v600_v41, 0  ;;  %v731_v59 = vand.u32 65535, %v4481_v60 }
  0xe9   :  { %v851_v22 = vcvt.s32.f32 %v849_v25  ;;  %v706_v50 = vshrl.u32 %v704_v27, 16  ;;  %v705_v52 = vand.u32 65535, %v704_v27 }
  0xea   :  { %800 = vadd.xlane.f32.xlu0 %v798_v44  ;;  %v733_v60 = vcvt.s32.f32 %v731_v59 }
  0xeb   :  { %v708_v54 = vcvt.s32.f32 %v706_v50  ;;  %v707_v33 = vcvt.s32.f32 %v705_v52 }
  0xed   :  { %646 = vadd.xlane.f32.xlu2 %v643_v48 }
  0xf0   :  { %v347_v6 = vpop.permute.xlu1 %346 }
  0xf1   :  { %vm509_vm0 = vcmp.eq.f32.partialorder %v4524_v35, %v347_v6  ;;  %vm477_vm2 = vcmp.gt.f32.partialorder %v4524_v35, %v347_v6  ;;  %v429_v6 = vrot.slane %v4325_v3, 6 }
  0xf2   :  { %815 = vadd.xlane.f32.xlu0 %v812_v55  ;;  %vm549_vm3 = vmand %vm509_vm0, %vm4441_vm6 }
  0xf3   :  { %vm581_vm7 = vmor %vm477_vm2, %vm549_vm3  ;;  %vm512_vm2 = vcmp.eq.f32.partialorder %v4568_v20, %v366_v38  ;;  %vm499_vm3 = vcmp.eq.f32.partialorder %v4455_v47, %v4464_v51  ;;  %v4614_v51 = vperm.slane %v429_v6, 0  ;;  %v770_v38 = vand.u32 65535, %v4505_v15 }
  0xf4   :  { %v613_v26 = vsel %vm581_vm7, 1, %v7329_v24  ;;  %vm582_vm0 = vmor %vm478_vm13, %vm550_vm14  ;;  %vm481_vm14 = vcmp.gt.f32.partialorder %v4568_v20, %v4374_v14 }
  0xf5   :  { %657 = vadd.xlane.f32.xlu2 %v655_v61  ;;  %v4579_v32 = vsel %vm85_vm10, %v613_v26, 0  ;;  %v614_v48 = vsel %vm582_vm0, 1, %v7329_v24  ;;  %vm552_vm7 = vmand %vm512_vm2, %vm4384_vm1  ;;  %v772_v15 = vcvt.s32.f32 %v770_v38 }
  0xf6   :  { %v874_v40 = vand.u32 65535, %v4579_v32  ;;  %v4596_v37 = vsel %vm85_vm10, %v614_v48, 0  ;;  %vm539_vm8 = vmand %vm499_vm3, %vm4423_vm15 }
  0xf7   :  { %vm584_vm11 = vmor %vm480_vm5, %vm552_vm7  ;;  %v888_v55 = vshrl.u32 %v4596_v37, 16  ;;  %vm502_vm5 = vcmp.eq.f32.partialorder %v4491_v5, %v4510_v18  ;;  %v887_v38 = vand.u32 65535, %v4596_v37 }
  0xf8   :  { %644 = vadd.xlane.f32.xlu1 %v642_v62  ;;  %v876_v44 = vcvt.s32.f32 %v874_v40  ;;  %vm571_vm13 = vmor %vm467_vm9, %vm539_vm8  ;;  %v616_v58 = vsel %vm584_vm11, 1, %v7329_v24  ;;  %v385_v62 = vpop.permute.xlu2 %384  ;;  %vm470_vm11 = vcmp.gt.f32.partialorder %v4491_v5, %v4510_v18 }
  0xf9   :  { %vm553_vm0 = vmand %vm513_vm12, %vm4441_vm6  ;;  %v890_v47 = vcvt.s32.f32 %v888_v55  ;;  %v4617_v61 = vsel %vm85_vm10, %v616_v58, 0  ;;  %v603_v29 = vsel %vm571_vm13, 1, %v7329_v24  ;;  %vm515_vm3 = vcmp.eq.f32.partialorder %v4614_v51, %v385_v62 }
  0xfa   :  { %839 = vadd.xlane.f32.xlu0 %v837_v63  ;;  %v719_v63 = vshrl.u32 %v4470_v53, 16  ;;  %vm585_vm2 = vmor %vm481_vm14, %vm553_vm0  ;;  %v913_v14 = vand.u32 65535, %v4617_v61  ;;  %v743_v0 = vsel %vm85_vm10, %v603_v29, 0  ;;  %vm483_vm7 = vcmp.gt.f32.partialorder %v4614_v51, %v385_v62 }
  0xfb   :  { %v617_v12 = vsel %vm585_vm2, 1, %v7329_v24  ;;  %v745_v16 = vshrl.u32 %v743_v0, 16  ;;  %vm555_vm8 = vmand %vm515_vm3, %vm4423_vm15  ;;  %v744_v25 = vand.u32 65535, %v743_v0  ;;  %v809_v29 = vand.u32 65535, %v4536_v45 }
  0xfc   :  { %v721_v4 = vcvt.s32.f32 %v719_v63  ;;  %v915_v53 = vcvt.s32.f32 %v913_v14  ;;  %vm542_vm9 = vmand %vm502_vm5, %vm4393_vm4 }
  0xfd   :  { %672 = vadd.xlane.f32.xlu2 %v669_v23  ;;  %v4633_v23 = vsel %vm85_vm10, %v617_v12, 0  ;;  %vm587_vm12 = vmor %vm483_vm7, %vm555_vm8  ;;  %v747_v26 = vcvt.s32.f32 %v745_v16 }
  0xfe   :  { %v927_v31 = vshrl.u32 %v4633_v23, 16  ;;  %vm574_vm13 = vmor %vm470_vm11, %vm542_vm9  ;;  %v619_v41 = vsel %vm587_vm12, 1, %v7329_v24  ;;  %vm505_vm9 = vcmp.eq.f32.partialorder %v4491_v5, %v4526_v36  ;;  %vm473_vm12 = vcmp.gt.f32.partialorder %v4491_v5, %v4526_v36 }
  0xff   :  { %v4648_v18 = vsel %vm85_vm10, %v619_v41, 0  ;;  %v606_v27 = vsel %vm574_vm13, 1, %v7329_v24  ;;  %vm545_vm13 = vmand %vm505_vm9, %vm4441_vm6  ;;  %v797_v5 = vshrl.u32 %v4521_v30, 16  ;;  %v811_v36 = vcvt.s32.f32 %v809_v29 }
 0x100   :  { %670 = vadd.xlane.f32.xlu1 %v668_v28  ;;  %v4603_v56 = vpop.permute.xlu1 %359  ;;  %v430_v28 = vrot.slane %v4325_v3, 7  ;;  %v929_v40 = vcvt.s32.f32 %v927_v31  ;;  %v782_v48 = vsel %vm85_vm10, %v606_v27, 0  ;;  %v875_v27 = vshrl.u32 %v4579_v32, 16 }
 0x101   :  { %v783_v6 = vand.u32 65535, %v782_v48  ;;  %v799_v0 = vcvt.s32.f32 %v797_v5 }
 0x102   :  { %854 = vadd.xlane.f32.xlu0 %v851_v22  ;;  %v746_v22 = vcvt.s32.f32 %v744_v25  ;;  %v4643_v39 = vperm.slane %v430_v28, 0 }
 0x103   :  { %v785_v58 = vcvt.s32.f32 %v783_v6 }
 0x104   :  { %vm518_vm5 = vcmp.eq.f32.partialorder %v4643_v39, %v4461_v49  ;;  %vm486_vm7 = vcmp.gt.f32.partialorder %v4643_v39, %v4461_v49 }
 0x105   :  { %696 = vadd.xlane.f32.xlu2 %v694_v46  ;;  %vm558_vm8 = vmand %vm518_vm5, %vm4393_vm4 }
 0x106   :  { %vm590_vm11 = vmor %vm486_vm7, %vm558_vm8  ;;  %vm511_vm7 = vcmp.eq.f32.partialorder %v4568_v20, %v4603_v56  ;;  %vm479_vm8 = vcmp.gt.f32.partialorder %v4568_v20, %v4603_v56  ;;  %v877_v56 = vcvt.s32.f32 %v875_v27 }
 0x107   :  { %vm551_vm9 = vmand %vm511_vm7, %vm4423_vm15 }
 0x108   :  { %685 = vadd.xlane.f32.xlu1 %v682_v43  ;;  %v758_v43 = vshrl.u32 %v4494_v9, 16  ;;  %v784_v9 = vshrl.u32 %v782_v48, 16 }
 0x10a   :  { %878 = vadd.xlane.f32.xlu0 %v876_v44  ;;  %v952_v44 = vand.u32 65535, %v4648_v18  ;;  %v760_v52 = vcvt.s32.f32 %v758_v43  ;;  %v786_v49 = vcvt.s32.f32 %v784_v9  ;;  %v889_v43 = vcvt.s32.f32 %v887_v38 }
 0x10b   :  { %v926_v9 = vand.u32 65535, %v4633_v23  ;;  %v1042_v38 = vsel %vm85_vm10, %v4325_v3, -inf }
 0x10c   :  { %v954_v55 = vcvt.s32.f32 %v952_v44 }
 0x10d   :  { %711 = vadd.xlane.f32.xlu2 %v708_v54 }
 0x110   :  { %709 = vadd.xlane.f32.xlu1 %v707_v33  ;;  %v4624_v10 = vpop.permute.xlu1 %378 }
 0x112   :  { %893 = vadd.xlane.f32.xlu0 %v890_v47  ;;  %v622_v47 = vsel %vm590_vm11, 1, %v7329_v24  ;;  %vm583_vm11 = vmor %vm479_vm8, %vm551_vm9 }
 0x113   :  { %v4676_v62 = vsel %vm85_vm10, %v622_v47, 0 }
 0x115   :  { %735 = vadd.xlane.f32.xlu2 %v733_v60  ;;  %v991_v60 = vand.u32 65535, %v4676_v62 }
 0x117   :  { %v993_v45 = vcvt.s32.f32 %v991_v60 }
 0x118   :  { %724 = vadd.xlane.f32.xlu1 %v721_v4 }
 0x11a   :  { %917 = vadd.xlane.f32.xlu0 %v915_v53  ;;  %v848_v53 = vand.u32 65535, %v4566_v11 }
 0x11c   :  { %v850_v28 = vcvt.s32.f32 %v848_v53 }
 0x11d   :  { %750 = vadd.xlane.f32.xlu2 %v747_v26  ;;  %v836_v26 = vshrl.u32 %v4549_v57, 16 }
 0x120   :  { %748 = vadd.xlane.f32.xlu1 %v746_v22  ;;  %v391_v46 = vpop.permute.xlu1 %390  ;;  %v838_v22 = vcvt.s32.f32 %v836_v26 }
 0x121   :  { %vm484_vm14 = vcmp.gt.f32.partialorder %v4614_v51, %v391_v46  ;;  %vm516_vm0 = vcmp.eq.f32.partialorder %v4614_v51, %v391_v46  ;;  %v615_v46 = vsel %vm583_vm11, 1, %v7329_v24 }
 0x122   :  { %932 = vadd.xlane.f32.xlu0 %v929_v40  ;;  %vm556_vm2 = vmand %vm516_vm0, %vm4384_vm1  ;;  %vm508_vm0 = vcmp.eq.f32.partialorder %v4524_v35, %v4370_v13  ;;  %v899_v20 = vsel %vm85_vm10, %v615_v46, 0 }
 0x123   :  { %vm588_vm3 = vmor %vm484_vm14, %vm556_vm2  ;;  %vm476_vm2 = vcmp.gt.f32.partialorder %v4524_v35, %v4370_v13  ;;  %v397_v35 = vpop.permute.xlu2 %396  ;;  %v901_v44 = vshrl.u32 %v899_v20, 16  ;;  %v900_v32 = vand.u32 65535, %v899_v20 }
 0x124   :  { %v620_v50 = vsel %vm588_vm3, 1, %v7329_v24  ;;  %vm577_vm14 = vmor %vm473_vm12, %vm545_vm13  ;;  %vm514_vm13 = vcmp.eq.f32.partialorder %v4614_v51, %v4624_v10 }
 0x125   :  { %774 = vadd.xlane.f32.xlu2 %v772_v15  ;;  %v4664_v54 = vsel %vm85_vm10, %v620_v50, 0  ;;  %v609_v63 = vsel %vm577_vm14, 1, %v7329_v24  ;;  %vm548_vm3 = vmand %vm508_vm0, %vm4384_vm1  ;;  %v903_v48 = vcvt.s32.f32 %v901_v44  ;;  %v902_v50 = vcvt.s32.f32 %v900_v32 }
 0x126   :  { %v966_v33 = vshrl.u32 %v4664_v54, 16  ;;  %v821_v14 = vsel %vm85_vm10, %v609_v63, 0  ;;  %vm580_vm5 = vmor %vm476_vm2, %vm548_vm3  ;;  %vm482_vm3 = vcmp.gt.f32.partialorder %v4614_v51, %v4624_v10  ;;  %v965_v63 = vand.u32 65535, %v4664_v54 }
 0x127   :  { %v823_v4 = vshrl.u32 %v821_v14, 16  ;;  %v822_v12 = vand.u32 65535, %v821_v14  ;;  %v612_v25 = vsel %vm580_vm5, 1, %v7329_v24  ;;  %vm554_vm2 = vmand %vm514_vm13, %vm4393_vm4  ;;  %vm517_vm4 = vcmp.eq.f32.partialorder %v4614_v51, %v397_v35 }
 0x128   :  { %763 = vadd.xlane.f32.xlu1 %v760_v52  ;;  %v968_v59 = vcvt.s32.f32 %v966_v33  ;;  %v860_v31 = vsel %vm85_vm10, %v612_v25, 0  ;;  %vm586_vm7 = vmor %vm482_vm3, %vm554_vm2  ;;  %v914_v33 = vshrl.u32 %v4617_v61, 16  ;;  %v967_v60 = vcvt.s32.f32 %v965_v63 }
 0x129   :  { %v825_v30 = vcvt.s32.f32 %v823_v4  ;;  %v824_v16 = vcvt.s32.f32 %v822_v12  ;;  %v862_v13 = vshrl.u32 %v860_v31, 16  ;;  %v861_v41 = vand.u32 65535, %v860_v31  ;;  %vm557_vm8 = vmand %vm517_vm4, %vm4441_vm6 }
 0x12a   :  { %956 = vadd.xlane.f32.xlu0 %v954_v55  ;;  %v618_v6 = vsel %vm586_vm7, 1, %v7329_v24 }
 0x12b   :  { %v864_v11 = vcvt.s32.f32 %v862_v13  ;;  %v863_v57 = vcvt.s32.f32 %v861_v41  ;;  %v4699_v40 = vpop.permute.xlu2 %415 }
 0x12c   :  { %vm520_vm11 = vcmp.eq.f32.partialorder %v4643_v39, %v4699_v40 }
 0x12d   :  { %789 = vadd.xlane.f32.xlu2 %v786_v49  ;;  %v928_v49 = vcvt.s32.f32 %v926_v9  ;;  %vm560_vm13 = vmand %vm520_vm11, %vm4384_vm1 }
 0x130   :  { %787 = vadd.xlane.f32.xlu1 %v785_v58  ;;  %v410_v15 = vpop.permute.xlu1 %409  ;;  %v938_v58 = vsel %vm85_vm10, %v618_v6, 0 }
 0x131   :  { %vm519_vm12 = vcmp.eq.f32.partialorder %v4643_v39, %v410_v15  ;;  %vm487_vm14 = vcmp.gt.f32.partialorder %v4643_v39, %v410_v15  ;;  %v940_v47 = vshrl.u32 %v938_v58, 16  ;;  %v939_v29 = vand.u32 65535, %v938_v58  ;;  %v4765_v15 = vpop.xlane.xlu0 %633 }
 0x132   :  { %971 = vadd.xlane.f32.xlu0 %v968_v59  ;;  %vm559_vm0 = vmand %vm519_vm12, %vm4423_vm15  ;;  %v916_v59 = vcvt.s32.f32 %v914_v33  ;;  %vm485_vm15 = vcmp.gt.f32.partialorder %v4614_v51, %v397_v35  ;;  %vm488_vm12 = vcmp.gt.f32.partialorder %v4643_v39, %v4699_v40 }
 0x133   :  { %vm591_vm5 = vmor %vm487_vm14, %vm559_vm0  ;;  %v942_v61 = vcvt.s32.f32 %v940_v47  ;;  %v941_v5 = vcvt.s32.f32 %v939_v29 }
 0x134   :  { %v623_v52 = vsel %vm591_vm5, 1, %v7329_v24  ;;  %vm589_vm9 = vmor %vm485_vm15, %vm557_vm8 }
 0x135   :  { %813 = vadd.xlane.f32.xlu2 %v811_v36  ;;  %v1003_v55 = vsel %vm85_vm10, %v623_v52, 0  ;;  %v621_v14 = vsel %vm589_vm9, 1, %v7329_v24  ;;  %vm592_vm14 = vmor %vm488_vm12, %vm560_vm13 }
 0x136   :  { %v1005_v21 = vshrl.u32 %v1003_v55, 16  ;;  %v977_v4 = vsel %vm85_vm10, %v621_v14, 0  ;;  %v624_v26 = vsel %vm592_vm14, 1, %v7329_v24 }
 0x137   :  { %v978_v54 = vand.u32 65535, %v977_v4  ;;  %v1016_v31 = vsel %vm85_vm10, %v624_v26, 0 }
 0x138   :  { %802 = vadd.xlane.f32.xlu1 %v799_v0  ;;  %v1007_v10 = vcvt.s32.f32 %v1005_v21  ;;  %v953_v0 = vshrl.u32 %v4648_v18, 16  ;;  %v1004_v18 = vand.u32 65535, %v1003_v55  ;;  %v1018_v13 = vshrl.u32 %v1016_v31, 16 }
 0x139   :  { %v1017_v35 = vand.u32 65535, %v1016_v31 }
 0x13a   :  { %995 = vadd.xlane.f32.xlu0 %v993_v45  ;;  %v955_v51 = vcvt.s32.f32 %v953_v0  ;;  %v979_v45 = vshrl.u32 %v977_v4, 16  ;;  %v1006_v25 = vcvt.s32.f32 %v1004_v18  ;;  %v1020_v41 = vcvt.s32.f32 %v1018_v13 }
 0x13d   :  { %828 = vadd.xlane.f32.xlu2 %v825_v30  ;;  %v981_v30 = vcvt.s32.f32 %v979_v45 }
 0x140   :  { %826 = vadd.xlane.f32.xlu1 %v824_v16  ;;  %v980_v16 = vcvt.s32.f32 %v978_v54  ;;  %v422_v52 = vpop.permute.xlu1 %421 }
 0x141   :  { %vm521_vm1 = vcmp.eq.f32.partialorder %v4643_v39, %v422_v52  ;;  %vm489_vm0 = vcmp.gt.f32.partialorder %v4643_v39, %v422_v52 }
 0x142   :  { %1010 = vadd.xlane.f32.xlu0 %v1007_v10  ;;  %vm561_vm2 = vmand %vm521_vm1, %vm4441_vm6 }
 0x143   :  { %vm593_vm3 = vmor %vm489_vm0, %vm561_vm2 }
 0x144   :  { %v625_v21 = vsel %vm593_vm3, 1, %v7329_v24 }
 0x145   :  { %852 = vadd.xlane.f32.xlu2 %v850_v28  ;;  %v992_v28 = vshrl.u32 %v4676_v62, 16  ;;  %v1029_v6 = vsel %vm85_vm10, %v625_v21, 0 }
 0x146   :  { %v1031_v33 = vshrl.u32 %v1029_v6, 16  ;;  %v1030_v58 = vand.u32 65535, %v1029_v6 }
 0x148   :  { %841 = vadd.xlane.f32.xlu1 %v838_v22  ;;  %v994_v22 = vcvt.s32.f32 %v992_v28 }
 0x14d   :  { %867 = vadd.xlane.f32.xlu2 %v864_v11  ;;  %v1019_v11 = vcvt.s32.f32 %v1017_v35 }
 0x150   :  { %865 = vadd.xlane.f32.xlu1 %v863_v57 }
 0x155   :  { %891 = vadd.xlane.f32.xlu2 %v889_v43 }
 0x158   :  { %v4707_v37 = vpop.xlane.xlu2 %631  ;;  %880 = vadd.xlane.f32.xlu1 %v877_v56  ;;  %v4769_v56 = vpop.xlane.xlu0 %659 }
 0x15d   :  { %906 = vadd.xlane.f32.xlu2 %v903_v48 }
 0x160   :  { %v4719_v34 = vpop.xlane.xlu2 %646  ;;  %904 = vadd.xlane.f32.xlu1 %v902_v50  ;;  %v4773_v3 = vpop.xlane.xlu0 %683 }
 0x165   :  { %930 = vadd.xlane.f32.xlu2 %v928_v49  ;;  %v1033_v49 = vcvt.s32.f32 %v1031_v33 }
 0x168   :  { %v4725_v23 = vpop.xlane.xlu2 %657  ;;  %919 = vadd.xlane.f32.xlu1 %v916_v59  ;;  %v4777_v48 = vpop.xlane.xlu0 %698  ;;  %v1032_v59 = vcvt.s32.f32 %v1030_v58 }
 0x16a   :  { %1034 = vadd.xlane.f32.xlu0 %v1032_v59 }
 0x16b   :  { %v4825_v31 = vpop.xlane.xlu1 %644 }
 0x16d   :  { %945 = vadd.xlane.f32.xlu2 %v942_v61 }
 0x170   :  { %v4731_v36 = vpop.xlane.xlu2 %672  ;;  %943 = vadd.xlane.f32.xlu1 %v941_v5  ;;  %v4787_v55 = vpop.xlane.xlu0 %722 }
 0x173   :  { %v4829_v13 = vpop.xlane.xlu1 %670 }
 0x175   :  { %969 = vadd.xlane.f32.xlu2 %v967_v60  ;;  %v4277_v60 = vld [vmem:[%s7322_s0] sm:$0xff] }
 0x178   :  { %v4738_v12 = vpop.xlane.xlu2 %696  ;;  %958 = vadd.xlane.f32.xlu1 %v955_v51  ;;  %v4793_v39 = vpop.xlane.xlu0 %737 }
 0x17d   :  { %984 = vadd.xlane.f32.xlu2 %v981_v30 }
 0x180   :  { %v4744_v53 = vpop.xlane.xlu2 %711  ;;  %982 = vadd.xlane.f32.xlu1 %v980_v16  ;;  %v4797_v47 = vpop.xlane.xlu0 %761 }
 0x185   :  { %1008 = vadd.xlane.f32.xlu2 %v1006_v25 }
 0x188   :  { %v4749_v19 = vpop.xlane.xlu2 %735  ;;  %997 = vadd.xlane.f32.xlu1 %v994_v22  ;;  %v4801_v61 = vpop.xlane.xlu0 %776 }
 0x18d   :  { %1023 = vadd.xlane.f32.xlu2 %v1020_v41  ;;  %v4833_v41 = vpop.xlane.xlu1 %685 }
 0x190   :  { %v4751_v57 = vpop.xlane.xlu2 %750  ;;  %1021 = vadd.xlane.f32.xlu1 %v1019_v11  ;;  %v4808_v0 = vpop.xlane.xlu0 %800 }
 0x195   :  { %1043 = vmax.xlane.f32.xlu2 %v1042_v38  ;;  %v4839_v52 = vpop.xlane.xlu1 %709 }
 0x198   :  { %v4755_v62 = vpop.xlane.xlu2 %774  ;;  %1036 = vadd.xlane.f32.xlu1 %v1033_v49  ;;  %v4810_v45 = vpop.xlane.xlu0 %815 }
 0x19d   :  { %v4843_v6 = vpop.xlane.xlu1 %724 }
 0x1a0   :  { %v4757_v40 = vpop.xlane.xlu2 %789  ;;  %v4813_v30 = vpop.xlane.xlu0 %839 }
 0x1a5   :  { %v4848_v49 = vpop.xlane.xlu1 %748 }
 0x1a8   :  { %v4759_v46 = vpop.xlane.xlu2 %813  ;;  %v4815_v18 = vpop.xlane.xlu0 %854 }
 0x1b0   :  { %v4761_v27 = vpop.xlane.xlu2 %828  ;;  %v4817_v16 = vpop.xlane.xlu0 %878 }
 0x1b8   :  { %v4763_v43 = vpop.xlane.xlu2 %852  ;;  %v4819_v25 = vpop.xlane.xlu0 %893 }
 0x1c0   :  { %v4767_v20 = vpop.xlane.xlu2 %867  ;;  %v4821_v26 = vpop.xlane.xlu0 %917 }
 0x1c1   :  { %7553 = vst [vmem:[#allocation8_spill] sm:$0xff] %v4821_v26 }
 0x1c8   :  { %v4771_v44 = vpop.xlane.xlu2 %891  ;;  %v4823_v28 = vpop.xlane.xlu0 %932 }
 0x1d0   :  { %v4775_v32 = vpop.xlane.xlu2 %906  ;;  %v4827_v22 = vpop.xlane.xlu0 %956 }
 0x1d1   :  { %7554 = vst [vmem:[#allocation9_spill] sm:$0xff] %v4827_v22  ;;  %v649_v22 = vcvt.f32.s32 %v4719_v34 }
 0x1d3   :  { %v650_v26 = vshll.u32 %v649_v22, 16 }
 0x1d8   :  { %v4779_v50 = vpop.xlane.xlu2 %930  ;;  %v4831_v35 = vpop.xlane.xlu0 %971 }
 0x1d9   :  { %7555 = vst [vmem:[#allocation10_spill] sm:$0xff] %v4831_v35 }
 0x1e0   :  { %v4785_v9 = vpop.xlane.xlu2 %945  ;;  %v4835_v11 = vpop.xlane.xlu0 %995 }
 0x1e1   :  { %7548 = vst [vmem:[#allocation3_spill] sm:$0xff] %v4785_v9 }
 0x1e2   :  { %7556 = vst [vmem:[#allocation11_spill] sm:$0xff] %v4835_v11  ;;  %v7560_v11 = vmov 0  }
 0x1e8   :  { %v4791_v10 = vpop.xlane.xlu2 %969  ;;  %v4837_v38 = vpop.xlane.xlu0 %1010 }
 0x1e9   :  { %7549 = vst [vmem:[#allocation4_spill] sm:$0xff] %v4791_v10 }
 0x1ea   :  { %7557 = vst [vmem:[#allocation12_spill] sm:$0xff] %v4837_v38 }
 0x1f0   :  { %v4795_v42 = vpop.xlane.xlu2 %984  ;;  %v4841_v21 = vpop.xlane.xlu0 %1034 }
 0x1f1   :  { %7550 = vst [vmem:[#allocation5_spill] sm:$0xff] %v4795_v42  ;;  %v648_v42 = vcvt.f32.s32 %v4825_v31 }
 0x1f2   :  { %7558 = vst [vmem:[#allocation13_spill] sm:$0xff] %v4841_v21 }
 0x1f3   :  { %v4904_v9 = vadd.s32 %v650_v26, %v648_v42 }
 0x1f5   :  { %7563 = vst [vmem:[#allocation17_spill] sm:$0xff] %v4904_v9  ;;  %vm1061_vm6 = vcmp.eq.s32.totalorder %v4904_v9, 0 }
 0x1f8   :  { %v4799_v29 = vpop.xlane.xlu2 %1008 }
 0x1f9   :  { %7551 = vst [vmem:[#allocation6_spill] sm:$0xff] %v4799_v29 }
 0x200   :  { %v4803_v63 = vpop.xlane.xlu2 %1023 }
 0x201   :  { %7552 = vst [vmem:[#allocation7_spill] sm:$0xff] %v4803_v63 }
 0x208   :  { %v1044_v5 = vpop.xlane.xlu2 %1043 }
 0x209   :  { %v1045_v14 = vsub.f32 %v4277_v60, %v1044_v5 }
 0x20b   :  { %v1046_v4 = vmul.f32 1.442695, %v1045_v14 }
 0x20d   :  { %4259 = vpow2.f32 %v1046_v4 }
 0x213   :  { %v4260_v51 = vpop.eup %4259 }
 0x214   :  { %v1048_v54 = vsel %vm85_vm10, %v4260_v51, 0.0 }
 0x215   :  { %1049 = vadd.xlane.f32.xlu0 %v1048_v54  ;;  %v4855_v54 = vpop.xlane.xlu1 %763 }
 0x288   :  { %v4845_v33 = vpop.xlane.xlu0 %1049 }
 0x289   :  { %7559 = vst [vmem:[#allocation14_spill] sm:$0xff] %v4845_v33  ;;  %4261 = vrcp.f32 %v4845_v33  ;;  %v4859_v33 = vpop.xlane.xlu1 %787 }
 0x28f   :  { %v4262_v58 = vpop.eup %4261 }
 0x290   :  { %v4850_v59 = vmul.f32 %v4262_v58, %v4260_v51 }
 0x291   :  { %v4862_v51 = vpop.xlane.xlu1 %802 }
 0x292   :  { %v1093_v5 = vperm.slane %v4850_v59, 0  ;;  %v1055_v60 = vmul.f32 %v4850_v59, %v1045_v14  ;;  %v1168_v24 = vperm.slane %v4850_v59, 3  ;;  %v1193_v14 = vperm.slane %v4850_v59, 4 }
 0x293   :  { %v1118_v58 = vperm.slane %v4850_v59, 1  ;;  %v1143_v21 = vperm.slane %v4850_v59, 2  ;;  %v4884_v38 = vperm.slane %v4850_v59, 7 }
 0x294   :  { %1104 = vperm.xlu0 %4195, %v1093_v5   ;;  %1098 = vperm.xlu2 %4199, %v1093_v5   ;;  %v1056_v4 = vsel %vm85_vm10, %v1055_v60, 0.0 }
 0x295   :  { %1057 = vadd.xlane.f32.xlu1 %v1056_v4  ;;  %v1218_v4 = vperm.slane %v4850_v59, 5 }
 0x299   :  { %v4867_v60 = vpop.xlane.xlu1 %826 }
 0x29c   :  { %1179 = vperm.xlu0 %4195, %v1168_v24   ;;  %4201 = vset.pattern.permute.xlu2 %v4339_v8 }
 0x2a1   :  { %v4873_v17 = vpop.xlane.xlu1 %841 }
 0x2a4   :  { %4214 = vset.pattern.permute.xlu0 %v4320_v2  ;;  %1116 = vperm.xlu2 %4201, %v1093_v5  }
 0x2ac   :  { %1210 = vperm.xlu0 %4214, %v1193_v14   ;;  %4203 = vset.pattern.permute.xlu2 %v4336_v7 }
 0x2ae   :  { %1110 = vperm.xlu1 %4200, %v1093_v5   ;;  %v4877_v5 = vpop.xlane.xlu1 %865 }
 0x2b4   :  { %4219 = vset.pattern.permute.xlu0 %v4339_v8  ;;  %1129 = vperm.xlu2 %4203, %v1118_v58  }
 0x2b6   :  { %4202 = vset.pattern.permute.xlu1 %v4316_v1  ;;  %v4881_v29 = vpop.xlane.xlu1 %880 }
 0x2bc   :  { %1241 = vperm.xlu0 %4219, %v1218_v4   ;;  %4205 = vset.pattern.permute.xlu2 %v4339_v8 }
 0x2be   :  { %1123 = vperm.xlu1 %4202, %v1118_v58   ;;  %v4888_v10 = vpop.xlane.xlu1 %904 }
 0x2c4   :  { %4220 = vset.pattern.permute.xlu0 %v4316_v1  ;;  %1141 = vperm.xlu2 %4205, %v1118_v58  }
 0x2c6   :  { %4204 = vset.pattern.permute.xlu1 %v4320_v2  ;;  %v4892_v63 = vpop.xlane.xlu1 %919 }
 0x2c7   :  { %7561 = vst [vmem:[#allocation15_spill] sm:$0xff] %v4892_v63 }
 0x2cc   :  { %1148 = vperm.xlu0 %4220, %v1143_v21   ;;  %4207 = vset.pattern.permute.xlu2 %v4320_v2 }
 0x2ce   :  { %1135 = vperm.xlu1 %4204, %v1118_v58   ;;  %v4896_v58 = vpop.xlane.xlu1 %943 }
 0x2d4   :  { %1273 = vperm.xlu0 %4220, %v4884_v38   ;;  %1160 = vperm.xlu2 %4207, %v1143_v21  }
 0x2d6   :  { %4206 = vset.pattern.permute.xlu1 %v4336_v7  ;;  %v4899_v35 = vpop.xlane.xlu1 %958 }
 0x2d7   :  { %7562 = vst [vmem:[#allocation16_spill] sm:$0xff] %v4899_v35 }
 0x2dc   :  { %4209 = vset.pattern.permute.xlu2 %v4316_v1  ;;  %4229 = vset.pattern.permute.xlu0 %v7560_v11 }
 0x2de   :  { %1154 = vperm.xlu1 %4206, %v1143_v21   ;;  %v4906_v63 = vpop.xlane.xlu1 %982 }
 0x2e4   :  { %1173 = vperm.xlu2 %4209, %v1168_v24  }
 0x2e6   :  { %4208 = vset.pattern.permute.xlu1 %v4339_v8  ;;  %v4914_v34 = vpop.xlane.xlu1 %997 }
 0x2e7   :  { %7565 = vst [vmem:[#allocation19_spill] sm:$0xff] %v4914_v34  ;;  %v792_v34 = vcvt.f32.s32 %v4757_v40 }
 0x2ec   :  { %4211 = vset.pattern.permute.xlu2 %v4339_v8 }
 0x2ee   :  { %1166 = vperm.xlu1 %4208, %v1143_v21   ;;  %v4926_v31 = vpop.permute.xlu2 %1098 }
 0x2ef   :  { %7569 = vst [vmem:[#allocation23_spill] sm:$0xff] %v4926_v31 }
 0x2f4   :  { %1191 = vperm.xlu2 %4211, %v1168_v24  }
 0x2f6   :  { %4210 = vset.pattern.permute.xlu1 %v4320_v2 }
 0x2fc   :  { %4213 = vset.pattern.permute.xlu2 %v4336_v7 }
 0x2fe   :  { %1185 = vperm.xlu1 %4210, %v1168_v24   ;;  %v4917_v24 = vpop.xlane.xlu1 %1021 }
 0x2ff   :  { %7566 = vst [vmem:[#allocation20_spill] sm:$0xff] %v4917_v24 }
 0x304   :  { %1204 = vperm.xlu2 %4213, %v1193_v14  }
 0x306   :  { %v4908_v21 = vpop.permute.xlu0 %1104  ;;  %4212 = vset.pattern.permute.xlu1 %v4316_v1  ;;  %v4920_v42 = vpop.xlane.xlu1 %1036 }
 0x307   :  { %7564 = vst [vmem:[#allocation18_spill] sm:$0xff] %v4908_v21  ;;  %v1326_v35 = vsel %vm1061_vm6, %v4908_v21, 0.0  ;;  %v714_v21 = vcvt.f32.s32 %v4744_v53 }
 0x308   :  { %1393 = vperm.xlu0 %4229, %v1326_v35   ;;  %7567 = vst [vmem:[#allocation21_spill] sm:$0xff] %v4920_v42  ;;  %v1243_v35 = vperm.slane %v4850_v59, 6  ;;  %v713_v42 = vcvt.f32.s32 %v4839_v52 }
 0x309   :  { %v715_v9 = vshll.u32 %v714_v21, 16  ;;  %v752_v21 = vcvt.f32.s32 %v4848_v49 }
 0x30b   :  { %v4938_v24 = vadd.s32 %v715_v9, %v713_v42 }
 0x30c   :  { %4216 = vset.pattern.permute.xlu2 %v4316_v1 }
 0x30d   :  { %7573 = vst [vmem:[#allocation27_spill] sm:$0xff] %v4938_v24  ;;  %vm1066_vm5 = vcmp.eq.s32.totalorder %v4938_v24, 0 }
 0x30e   :  { %1198 = vperm.xlu1 %4212, %v1193_v14   ;;  %v4923_v26 = vpop.xlane.xlu1 %1057 }
 0x30f   :  { %7568 = vst [vmem:[#allocation22_spill] sm:$0xff] %v4923_v26 }
 0x314   :  { %1223 = vperm.xlu2 %4216, %v1218_v4  }
 0x316   :  { %4215 = vset.pattern.permute.xlu1 %v4339_v8 }
 0x31c   :  { %4218 = vset.pattern.permute.xlu2 %v4320_v2 }
 0x31e   :  { %1216 = vperm.xlu1 %4215, %v1193_v14   ;;  %v4932_v14 = vpop.permute.xlu2 %1116 }
 0x31f   :  { %7571 = vst [vmem:[#allocation25_spill] sm:$0xff] %v4932_v14 }
 0x320   :  { %v4928_v22 = vpop.permute.xlu1 %1110 }
 0x321   :  { %7570 = vst [vmem:[#allocation24_spill] sm:$0xff] %v4928_v22 }
 0x324   :  { %1235 = vperm.xlu2 %4218, %v1218_v4  }
 0x326   :  { %4217 = vset.pattern.permute.xlu1 %v4336_v7 }
 0x32c   :  { %4222 = vset.pattern.permute.xlu2 %v4336_v7 }
 0x32e   :  { %1229 = vperm.xlu1 %4217, %v1218_v4   ;;  %v4941_v4 = vpop.permute.xlu2 %1129 }
 0x32f   :  { %7574 = vst [vmem:[#allocation28_spill] sm:$0xff] %v4941_v4 }
 0x330   :  { %v4936_v26 = vpop.permute.xlu1 %1123 }
 0x331   :  { %7572 = vst [vmem:[#allocation26_spill] sm:$0xff] %v4936_v26 }
 0x334   :  { %1254 = vperm.xlu2 %4222, %v1243_v35  }
 0x336   :  { %4221 = vset.pattern.permute.xlu1 %v4316_v1  ;;  %v753_v1 = vcvt.f32.s32 %v4751_v57  ;;  %v4948_v52 = vpop.permute.xlu2 %1141  ;;  %v791_v57 = vcvt.f32.s32 %v4859_v33 }
 0x337   :  { %7576 = vst [vmem:[#allocation30_spill] sm:$0xff] %v4948_v52 }
 0x338   :  { %v754_v9 = vshll.u32 %v753_v1, 16  ;;  %v636_v1 = vcvt.f32.s32 %v4765_v15  ;;  %v675_v15 = vcvt.f32.s32 %v4731_v36 }
 0x33a   :  { %v4952_v42 = vadd.s32 %v754_v9, %v752_v21  ;;  %v635_v9 = vcvt.f32.s32 %v4707_v37  ;;  %v4977_v37 = vpop.permute.xlu0 %1179 }
 0x33b   :  { %7583 = vst [vmem:[#allocation37_spill] sm:$0xff] %v4977_v37 }
 0x33c   :  { %4224 = vset.pattern.permute.xlu2 %v4339_v8  ;;  %7577 = vst [vmem:[#allocation31_spill] sm:$0xff] %v4952_v42  ;;  %vm1069_vm7 = vcmp.eq.s32.totalorder %v4952_v42, 0 }
 0x33e   :  { %1248 = vperm.xlu1 %4221, %v1243_v35   ;;  %v4956_v24 = vpop.permute.xlu2 %1160 }
 0x33f   :  { %7578 = vst [vmem:[#allocation32_spill] sm:$0xff] %v4956_v24 }
 0x340   :  { %v4943_v59 = vpop.permute.xlu1 %1135 }
 0x341   :  { %7575 = vst [vmem:[#allocation29_spill] sm:$0xff] %v4943_v59  ;;  %v1331_v53 = vsel %vm1066_vm5, %v4943_v59, 0.0 }
 0x342   :  { %1408 = vperm.xlu0 %4229, %v1331_v53   ;;  %v793_v53 = vshll.u32 %v792_v34, 16  ;;  %v637_v34 = vshll.u32 %v636_v1, 16  ;;  %v870_v1 = vcvt.f32.s32 %v4767_v20 }
 0x344   :  { %1266 = vperm.xlu2 %4224, %v1243_v35   ;;  %v4965_v40 = vadd.s32 %v793_v53, %v791_v57  ;;  %v4972_v33 = vadd.s32 %v637_v34, %v635_v9  ;;  %v676_v53 = vshll.u32 %v675_v15, 16  ;;  %v674_v57 = vcvt.f32.s32 %v4829_v13  ;;  %v4995_v15 = vpop.permute.xlu0 %1210 }
 0x345   :  { %v869_v13 = vcvt.f32.s32 %v4877_v5  ;;  %v701_v34 = vcvt.f32.s32 %v4777_v48  ;;  %7587 = vst [vmem:[#allocation41_spill] sm:$0xff] %v4995_v15  ;;  %v740_v48 = vcvt.f32.s32 %v4793_v39 }
 0x346   :  { %4223 = vset.pattern.permute.xlu1 %v4320_v2  ;;  %7580 = vst [vmem:[#allocation34_spill] sm:$0xff] %v4965_v40  ;;  %vm1072_vm4 = vcmp.eq.s32.totalorder %v4965_v40, 0  ;;  %vm1060_vm15 = vcmp.eq.s32.totalorder %v4972_v33, 0  ;;  %v4990_v9 = vadd.s32 %v676_v53, %v674_v57 }
 0x347   :  { %7582 = vst [vmem:[#allocation36_spill] sm:$0xff] %v4972_v33  ;;  %v1325_v36 = vsel %vm1060_vm15, %v4926_v31, 0.0  ;;  %v702_v53 = vshll.u32 %v701_v34, 16 }
 0x348   :  { %7586 = vst [vmem:[#allocation40_spill] sm:$0xff] %v4990_v9  ;;  %vm1063_vm9 = vcmp.eq.s32.totalorder %v4990_v9, 0 }
 0x34c   :  { %4226 = vset.pattern.permute.xlu2 %v4320_v2  ;;  %v831_v2 = vcvt.f32.s32 %v4761_v27  ;;  %v5008_v57 = vpop.permute.xlu0 %1241 }
 0x34d   :  { %7590 = vst [vmem:[#allocation44_spill] sm:$0xff] %v5008_v57 }
 0x34e   :  { %1260 = vperm.xlu1 %4223, %v1243_v35   ;;  %v4969_v35 = vpop.permute.xlu2 %1173  ;;  %v832_v21 = vshll.u32 %v831_v2, 16  ;;  %v871_v2 = vshll.u32 %v870_v1, 16  ;;  %v662_v1 = vcvt.f32.s32 %v4769_v56  ;;  %v688_v56 = vcvt.f32.s32 %v4833_v41 }
 0x34f   :  { %7581 = vst [vmem:[#allocation35_spill] sm:$0xff] %v4969_v35  ;;  %v1337_v27 = vsel %vm1072_vm4, %v4969_v35, 0.0 }
 0x350   :  { %v4959_v59 = vpop.permute.xlu1 %1154  ;;  %v663_v39 = vshll.u32 %v662_v1, 16  ;;  %v727_v1 = vcvt.f32.s32 %v4843_v6  ;;  %v857_v6 = vcvt.f32.s32 %v4815_v18  ;;  %v765_v18 = vcvt.f32.s32 %v4797_v47 }
 0x351   :  { %7579 = vst [vmem:[#allocation33_spill] sm:$0xff] %v4959_v59  ;;  %v1334_v49 = vsel %vm1069_vm7, %v4959_v59, 0.0 }
 0x352   :  { %1417 = vperm.xlu0 %4229, %v1334_v49   ;;  %v830_v49 = vcvt.f32.s32 %v4867_v60 }
 0x354   :  { %1285 = vperm.xlu2 %4226, %v4884_v38  }
 0x356   :  { %4225 = vset.pattern.permute.xlu1 %v4336_v7  ;;  %v4982_v7 = vadd.s32 %v832_v21, %v830_v49  ;;  %v4987_v60 = vpop.permute.xlu2 %1191  ;;  %v700_v21 = vcvt.f32.s32 %v4738_v12  ;;  %v5000_v49 = vadd.s32 %v871_v2, %v869_v13  ;;  %v661_v13 = vcvt.f32.s32 %v4725_v23 }
 0x357   :  { %7585 = vst [vmem:[#allocation39_spill] sm:$0xff] %v4987_v60 }
 0x358   :  { %7584 = vst [vmem:[#allocation38_spill] sm:$0xff] %v4982_v7  ;;  %vm1075_vm8 = vcmp.eq.s32.totalorder %v4982_v7, 0  ;;  %v5004_v5 = vadd.s32 %v702_v53, %v700_v21  ;;  %vm1078_vm11 = vcmp.eq.s32.totalorder %v5000_v49, 0  ;;  %v5020_v21 = vadd.s32 %v663_v39, %v661_v13 }
 0x359   :  { %v1340_v20 = vsel %vm1075_vm8, %v4987_v60, 0.0  ;;  %7588 = vst [vmem:[#allocation42_spill] sm:$0xff] %v5000_v49  ;;  %v1343_v12 = vsel %vm1078_vm11, %v4995_v15, 0.0  ;;  %v728_v13 = vshll.u32 %v727_v1, 16  ;;  %v895_v1 = vcvt.f32.s32 %v4771_v44 }
 0x35a   :  { %1426 = vperm.xlu0 %4229, %v1337_v27   ;;  %v1328_v27 = vsel %vm1063_vm9, %v4932_v14, 0.0  ;;  %7589 = vst [vmem:[#allocation43_spill] sm:$0xff] %v5004_v5  ;;  %vm1065_vm12 = vcmp.eq.s32.totalorder %v5004_v5, 0  ;;  %vm1062_vm14 = vcmp.eq.s32.totalorder %v5020_v21, 0  ;;  %v935_v44 = vcvt.f32.s32 %v4823_v28 }
 0x35b   :  { %v1330_v2 = vsel %vm1065_vm12, %v4941_v4, 0.0  ;;  %7592 = vst [vmem:[#allocation46_spill] sm:$0xff] %v5020_v21 }
 0x35c   :  { %4228 = vset.pattern.permute.xlu2 %v7560_v11 }
 0x35d   :  { %1390 = vperm.xlu2 %4228, %v1325_v36   ;;  %v739_v36 = vcvt.f32.s32 %v4749_v19  ;;  %v5023_v19 = vpop.permute.xlu0 %1148 }
 0x35e   :  { %1279 = vperm.xlu1 %4225, %v4884_v38   ;;  %7593 = vst [vmem:[#allocation47_spill] sm:$0xff] %v5023_v19 }
 0x362   :  { %1435 = vperm.xlu0 %4229, %v1340_v20   ;;  %v779_v20 = vcvt.f32.s32 %v4801_v61  ;;  %v1327_v61 = vsel %vm1062_vm14, %v4928_v22, 0.0 }
 0x364   :  { %v780_v53 = vshll.u32 %v779_v20, 16 }
 0x365   :  { %1399 = vperm.xlu2 %4228, %v1328_v27   ;;  %v778_v27 = vcvt.f32.s32 %v4755_v62  ;;  %v818_v62 = vcvt.f32.s32 %v4810_v45  ;;  %v726_v45 = vcvt.f32.s32 %v4787_v55 }
 0x366   :  { %4227 = vset.pattern.permute.xlu1 %v4339_v8  ;;  %v741_v8 = vshll.u32 %v740_v48, 16  ;;  %v689_v48 = vshll.u32 %v688_v56, 16 }
 0x367   :  { %v5032_v41 = vadd.s32 %v780_v53, %v778_v27  ;;  %v5049_v20 = vadd.s32 %v728_v13, %v726_v45  ;;  %v856_v27 = vcvt.f32.s32 %v4763_v43  ;;  %v858_v53 = vshll.u32 %v857_v6, 16 }
 0x368   :  { %v5017_v34 = vadd.s32 %v741_v8, %v739_v36  ;;  %v5038_v36 = vpop.permute.xlu1 %1166  ;;  %v819_v8 = vshll.u32 %v818_v62, 16  ;;  %v805_v43 = vcvt.f32.s32 %v4862_v51  ;;  %v5066_v62 = vpop.permute.xlu2 %1204  ;;  %v844_v45 = vcvt.f32.s32 %v4873_v17 }
 0x369   :  { %7594 = vst [vmem:[#allocation48_spill] sm:$0xff] %v5032_v41  ;;  %vm1071_vm1 = vcmp.eq.s32.totalorder %v5032_v41, 0  ;;  %vm1067_vm3 = vcmp.eq.s32.totalorder %v5049_v20, 0 }
 0x36a   :  { %1444 = vperm.xlu0 %4229, %v1343_v12   ;;  %7591 = vst [vmem:[#allocation45_spill] sm:$0xff] %v5017_v34  ;;  %vm1068_vm13 = vcmp.eq.s32.totalorder %v5017_v34, 0  ;;  %v1332_v55 = vsel %vm1067_vm3, %v4948_v52, 0.0 }
 0x36b   :  { %v1333_v23 = vsel %vm1068_vm13, %v5023_v19, 0.0  ;;  %7596 = vst [vmem:[#allocation50_spill] sm:$0xff] %v5038_v36 }
 0x36c   :  { %7598 = vst [vmem:[#allocation52_spill] sm:$0xff] %v5049_v20 }
 0x36d   :  { %1405 = vperm.xlu2 %4228, %v1330_v2   ;;  %v817_v2 = vcvt.f32.s32 %v4759_v46  ;;  %v766_v46 = vcvt.f32.s32 %v4855_v54  ;;  %v896_v54 = vcvt.f32.s32 %v4819_v25  ;;  %7602 = vst [vmem:[#allocation56_spill] sm:$0xff] %v5066_v62  ;;  %v804_v25 = vcvt.f32.s32 %v4808_v0 }
 0x36e   :  { %1291 = vperm.xlu1 %4227, %v4884_v38   ;;  %v687_v38 = vcvt.f32.s32 %v4773_v3 }
 0x36f   :  { %v5046_v39 = vadd.s32 %v819_v8, %v817_v2  ;;  %v806_v8 = vshll.u32 %v805_v43, 16 }
 0x370   :  { %v5035_v12 = vadd.s32 %v689_v48, %v687_v38  ;;  %v5052_v56 = vpop.permute.xlu1 %1185  ;;  %v767_v48 = vshll.u32 %v766_v46, 16  ;;  %v5082_v6 = vpop.permute.xlu2 %1223  ;;  %v934_v46 = vcvt.f32.s32 %v4779_v50  ;;  %v908_v50 = vcvt.f32.s32 %v4888_v10 }
 0x371   :  { %7597 = vst [vmem:[#allocation51_spill] sm:$0xff] %v5046_v39  ;;  %vm1074_vm2 = vcmp.eq.s32.totalorder %v5046_v39, 0  ;;  %v882_v10 = vcvt.f32.s32 %v4817_v16 }
 0x372   :  { %7595 = vst [vmem:[#allocation49_spill] sm:$0xff] %v5035_v12  ;;  %vm1064_vm0 = vcmp.eq.s32.totalorder %v5035_v12, 0  ;;  %v5063_v38 = vadd.s32 %v767_v48, %v765_v18  ;;  %v843_v48 = vcvt.f32.s32 %v4813_v30 }
 0x373   :  { %v1329_v3 = vsel %vm1064_vm0, %v4936_v26, 0.0  ;;  %7599 = vst [vmem:[#allocation53_spill] sm:$0xff] %v5052_v56 }
 0x374   :  { %7601 = vst [vmem:[#allocation55_spill] sm:$0xff] %v5063_v38  ;;  %vm1070_vm5 = vcmp.eq.s32.totalorder %v5063_v38, 0 }
 0x375   :  { %1414 = vperm.xlu2 %4228, %v1333_v23   ;;  %v1339_v23 = vsel %vm1074_vm2, %v5052_v56, 0.0  ;;  %v1335_v47 = vsel %vm1070_vm5, %v4956_v24, 0.0  ;;  %7606 = vst [vmem:[#allocation60_spill] sm:$0xff] %v5082_v6  ;;  %vm1571_vm5 = vcmp.eq.s32.totalorder %v5020_v21, 1  ;;  %v7647_v21 = vld [vmem:[#allocation27_spill] sm:$0xff] }
 0x376   :  { %4230 = vset.pattern.permute.xlu1 %v7560_v11  ;;  %v1336_v11 = vsel %vm1071_vm1, %v5038_v36, 0.0 }
 0x377   :  { %1396 = vperm.xlu1 %4230, %v1327_v61   ;;  %v5060_v61 = vadd.s32 %v858_v53, %v856_v27  ;;  %v909_v27 = vcvt.f32.s32 %v4775_v32  ;;  %v845_v53 = vshll.u32 %v844_v45, 16 }
 0x379   :  { %7600 = vst [vmem:[#allocation54_spill] sm:$0xff] %v5060_v61  ;;  %vm1077_vm6 = vcmp.eq.s32.totalorder %v5060_v61, 0  ;;  %v5096_v32 = vadd.s32 %v845_v53, %v843_v48 }
 0x37a   :  { %v1342_v2 = vsel %vm1077_vm6, %v5066_v62, 0.0  ;;  %vm1569_vm6 = vcmp.eq.s32.totalorder %v4972_v33, 1  ;;  %v7644_v33 = vld [vmem:[#allocation13_spill] sm:$0xff] }
 0x37b   :  { %7609 = vst [vmem:[#allocation63_spill] sm:$0xff] %v5096_v32  ;;  %vm1076_vm8 = vcmp.eq.s32.totalorder %v5096_v32, 0 }
 0x37d   :  { %1423 = vperm.xlu2 %4228, %v1336_v11   ;;  %v897_v11 = vshll.u32 %v896_v54, 16  ;;  %v883_v54 = vcvt.f32.s32 %v4881_v29 }
 0x37f   :  { %1402 = vperm.xlu1 %4230, %v1329_v3   ;;  %v5074_v13 = vadd.s32 %v897_v11, %v895_v1  ;;  %v5079_v3 = vadd.s32 %v806_v8, %v804_v25  ;;  %v7613_v8 = vld [vmem:[#allocation15_spill] sm:$0xff] }
 0x380   :  { %v5076_v51 = vpop.permute.xlu1 %1198 }
 0x381   :  { %7603 = vst [vmem:[#allocation57_spill] sm:$0xff] %v5074_v13  ;;  %vm1080_vm7 = vcmp.eq.s32.totalorder %v5074_v13, 0  ;;  %vm1073_vm4 = vcmp.eq.s32.totalorder %v5079_v3, 0  ;;  %v1341_v30 = vsel %vm1076_vm8, %v5076_v51, 0.0 }
 0x382   :  { %7604 = vst [vmem:[#allocation58_spill] sm:$0xff] %v5076_v51  ;;  %v1345_v0 = vsel %vm1080_vm7, %v5082_v6, 0.0  ;;  %v1338_v28 = vsel %vm1073_vm4, %v4977_v37, 0.0  ;;  %vm1573_vm4 = vcmp.eq.s32.totalorder %v5035_v12, 1 }
 0x383   :  { %7605 = vst [vmem:[#allocation59_spill] sm:$0xff] %v5079_v3 }
 0x385   :  { %1432 = vperm.xlu2 %4228, %v1339_v23   ;;  %v936_v23 = vshll.u32 %v935_v44, 16  ;;  %v7614_v44 = vld [vmem:[#allocation3_spill] sm:$0xff] }
 0x386   :  { %v948_v45 = vcvt.f32.s32 %v7614_v44 }
 0x387   :  { %1411 = vperm.xlu1 %4230, %v1332_v55   ;;  %v5091_v17 = vadd.s32 %v936_v23, %v934_v46  ;;  %v910_v55 = vshll.u32 %v909_v27, 16  ;;  %v5115_v27 = vpop.permute.xlu2 %1235 }
 0x388   :  { %7615 = vst [vmem:[#allocation15_spill] sm:$0xff] %v5115_v27  ;;  %v949_v53 = vshll.u32 %v948_v45, 16 }
 0x389   :  { %7607 = vst [vmem:[#allocation61_spill] sm:$0xff] %v5091_v17  ;;  %vm1083_vm15 = vcmp.eq.s32.totalorder %v5091_v17, 0  ;;  %v5100_v43 = vadd.s32 %v910_v55, %v908_v50  ;;  %v7618_v55 = vld [vmem:[#allocation16_spill] sm:$0xff] }
 0x38a   :  { %v1348_v1 = vsel %vm1083_vm15, %v5008_v57, 0.0  ;;  %v961_v50 = vcvt.f32.s32 %v7618_v55  ;;  %vm1575_vm15 = vcmp.eq.s32.totalorder %v7647_v21, 1 }
 0x38b   :  { %7610 = vst [vmem:[#allocation64_spill] sm:$0xff] %v5100_v43  ;;  %vm1081_vm9 = vcmp.eq.s32.totalorder %v5100_v43, 0 }
 0x38d   :  { %1441 = vperm.xlu2 %4228, %v1342_v2   ;;  %v884_v2 = vshll.u32 %v883_v54, 16 }
 0x38f   :  { %1420 = vperm.xlu1 %4230, %v1335_v47   ;;  %v5109_v29 = vadd.s32 %v884_v2, %v882_v10  ;;  %v922_v47 = vcvt.f32.s32 %v7613_v8  ;;  %v5127_v10 = vpop.permute.xlu2 %1254 }
 0x390   :  { %v5094_v18 = vpop.permute.xlu1 %1216  ;;  %7621 = vst [vmem:[#allocation16_spill] sm:$0xff] %v5127_v10 }
 0x391   :  { %7608 = vst [vmem:[#allocation62_spill] sm:$0xff] %v5094_v18  ;;  %v923_v46 = vshll.u32 %v922_v47, 16  ;;  %vm1079_vm11 = vcmp.eq.s32.totalorder %v5109_v29, 0  ;;  %v7622_v47 = vld [vmem:[#allocation9_spill] sm:$0xff] }
 0x392   :  { %7612 = vst [vmem:[#allocation66_spill] sm:$0xff] %v5109_v29  ;;  %v1344_v16 = vsel %vm1079_vm11, %v5094_v18, 0.0 }
 0x395   :  { %1450 = vperm.xlu2 %4228, %v1345_v0   ;;  %v7616_v0 = vld [vmem:[#allocation8_spill] sm:$0xff] }
 0x396   :  { %v921_v23 = vcvt.f32.s32 %v7616_v0 }
 0x397   :  { %1429 = vperm.xlu1 %4230, %v1338_v28   ;;  %v947_v28 = vcvt.f32.s32 %v4896_v58  ;;  %v986_v58 = vcvt.f32.s32 %v4906_v63 }
 0x398   :  { %v5120_v48 = vadd.s32 %v923_v46, %v921_v23 }
 0x399   :  { %v5123_v54 = vadd.s32 %v949_v53, %v947_v28  ;;  %v7626_v53 = vld [vmem:[#allocation10_spill] sm:$0xff] }
 0x39a   :  { %7617 = vst [vmem:[#allocation3_spill] sm:$0xff] %v5120_v48  ;;  %vm1082_vm12 = vcmp.eq.s32.totalorder %v5120_v48, 0  ;;  %v974_v28 = vcvt.f32.s32 %v7626_v53 }
 0x39b   :  { %7619 = vst [vmem:[#allocation8_spill] sm:$0xff] %v5123_v54  ;;  %v1347_v8 = vsel %vm1082_vm12, %v5115_v27, 0.0  ;;  %vm1084_vm13 = vcmp.eq.s32.totalorder %v5123_v54, 0  ;;  %v7632_v54 = vld [vmem:[#allocation20_spill] sm:$0xff]  ;;  %vm1579_vm12 = vcmp.eq.s32.totalorder %v5063_v38, 1 }
 0x39c   :  { %v1025_v53 = vcvt.f32.s32 %v7632_v54 }
 0x39d   :  { %1459 = vperm.xlu2 %4228, %v1348_v1   ;;  %v7620_v1 = vld [vmem:[#allocation5_spill] sm:$0xff] }
 0x39e   :  { %v987_v2 = vcvt.f32.s32 %v7620_v1  ;;  %v5144_v63 = vpop.permute.xlu2 %1266 }
 0x39f   :  { %1438 = vperm.xlu1 %4230, %v1341_v30   ;;  %v962_v30 = vshll.u32 %v961_v50, 16  ;;  %v7628_v50 = vld [vmem:[#allocation7_spill] sm:$0xff]  ;;  %7629 = vst [vmem:[#allocation10_spill] sm:$0xff] %v5144_v63 }
 0x3a0   :  { %v5106_v11 = vpop.permute.xlu1 %1229  ;;  %v988_v44 = vshll.u32 %v987_v2, 16  ;;  %v1026_v1 = vcvt.f32.s32 %v7628_v50 }
 0x3a1   :  { %7611 = vst [vmem:[#allocation65_spill] sm:$0xff] %v5106_v11  ;;  %v1346_v25 = vsel %vm1081_vm9, %v5106_v11, 0.0  ;;  %vm1577_vm9 = vcmp.eq.s32.totalorder %v5017_v34, 1 }
 0x3a2   :  { %1453 = vperm.xlu0 %4229, %v1346_v25   ;;  %v960_v25 = vcvt.f32.s32 %v7622_v47  ;;  %v5140_v55 = vadd.s32 %v988_v44, %v986_v58  ;;  %v7630_v47 = vld [vmem:[#allocation11_spill] sm:$0xff] }
 0x3a4   :  { %v5135_v46 = vadd.s32 %v962_v30, %v960_v25  ;;  %v975_v30 = vshll.u32 %v974_v28, 16  ;;  %v999_v25 = vcvt.f32.s32 %v7630_v47  ;;  %vm1087_vm1 = vcmp.eq.s32.totalorder %v5140_v55, 0 }
 0x3a5   :  { %v1352_v58 = vsel %vm1087_vm1, %v5144_v63, 0.0  ;;  %vm1574_vm1 = vcmp.eq.s32.totalorder %v5004_v5, 1 }
 0x3a6   :  { %7624 = vst [vmem:[#allocation9_spill] sm:$0xff] %v5135_v46  ;;  %vm1085_vm14 = vcmp.eq.s32.totalorder %v5135_v46, 0 }
 0x3a7   :  { %1447 = vperm.xlu1 %4230, %v1344_v16   ;;  %v7625_v16 = vld [vmem:[#allocation19_spill] sm:$0xff] }
 0x3a8   :  { %v1000_v0 = vcvt.f32.s32 %v7625_v16  ;;  %7627 = vst [vmem:[#allocation19_spill] sm:$0xff] %v5140_v55  ;;  %v7631_v16 = vld [vmem:[#allocation4_spill] sm:$0xff] }
 0x3aa   :  { %v1001_v2 = vshll.u32 %v1000_v0, 16  ;;  %v5154_v0 = vpop.permute.xlu0 %1273 }
 0x3ab   :  { %7634 = vst [vmem:[#allocation11_spill] sm:$0xff] %v5154_v0 }
 0x3ac   :  { %v5151_v44 = vadd.s32 %v1001_v2, %v999_v25 }
 0x3ae   :  { %7633 = vst [vmem:[#allocation7_spill] sm:$0xff] %v5151_v44  ;;  %vm1088_vm0 = vcmp.eq.s32.totalorder %v5151_v44, 0 }
 0x3af   :  { %1456 = vperm.xlu1 %4230, %v1347_v8   ;;  %v1350_v8 = vsel %vm1085_vm14, %v5127_v10, 0.0  ;;  %vm1582_vm14 = vcmp.eq.s32.totalorder %v5079_v3, 1 }
 0x3b0   :  { %v5132_v45 = vpop.permute.xlu1 %1248 }
 0x3b1   :  { %7623 = vst [vmem:[#allocation5_spill] sm:$0xff] %v5132_v45  ;;  %v1349_v23 = vsel %vm1084_vm13, %v5132_v45, 0.0  ;;  %v973_v45 = vcvt.f32.s32 %v7631_v16  ;;  %v7640_v16 = vld [vmem:[#allocation6_spill] sm:$0xff]  ;;  %vm1572_vm13 = vcmp.eq.s32.totalorder %v4990_v9, 1 }
 0x3b2   :  { %1462 = vperm.xlu0 %4229, %v1349_v23   ;;  %v1027_v23 = vshll.u32 %v1026_v1, 16  ;;  %v1353_v1 = vsel %vm1088_vm0, %v5154_v0, 0.0  ;;  %vm1584_vm0 = vcmp.eq.s32.totalorder %v4982_v7, 1 }
 0x3b3   :  { %v5156_v50 = vadd.s32 %v975_v30, %v973_v45  ;;  %v7639_v30 = vld [vmem:[#allocation12_spill] sm:$0xff] }
 0x3b4   :  { %v5158_v28 = vadd.s32 %v1027_v23, %v1025_v53  ;;  %v1013_v47 = vcvt.f32.s32 %v7639_v30  ;;  %v1012_v23 = vcvt.f32.s32 %v7640_v16  ;;  %v1601_v53 = vsel %vm1569_vm6, %v4926_v31, 0.0  ;;  %v7643_v30 = vld [vmem:[#allocation21_spill] sm:$0xff] }
 0x3b5   :  { %7635 = vst [vmem:[#allocation4_spill] sm:$0xff] %v5156_v50  ;;  %vm1086_vm3 = vcmp.eq.s32.totalorder %v5156_v50, 0  ;;  %v1038_v31 = vcvt.f32.s32 %v7644_v33  ;;  %v7649_v33 = vld [vmem:[#allocation17_spill] sm:$0xff]  ;;  %vm1578_vm6 = vcmp.eq.s32.totalorder %v4952_v42, 1 }
 0x3b6   :  { %7636 = vst [vmem:[#allocation20_spill] sm:$0xff] %v5158_v28  ;;  %vm1090_vm2 = vcmp.eq.s32.totalorder %v5158_v28, 0  ;;  %v1014_v25 = vshll.u32 %v1013_v47, 16  ;;  %v1039_v47 = vcvt.f32.s32 %v7643_v30  ;;  %vm1570_vm11 = vcmp.eq.s32.totalorder %v7649_v33, 1 }
 0x3b7   :  { %1465 = vperm.xlu1 %4230, %v1350_v8   ;;  %v5161_v8 = vpop.permute.xlu2 %1285  ;;  %v1610_v7 = vsel %vm1578_vm6, %v4959_v59, 0.0  ;;  %vm1492_vm6 = vcmask 195712  }
 0x3b8   :  { %7637 = vst [vmem:[#allocation67_spill] sm:$0xff] %v5161_v8  ;;  %v1355_v2 = vsel %vm1090_vm2, %v5161_v8, 0.0  ;;  %v1040_v16 = vshll.u32 %v1039_v47, 16  ;;  %v1609_v47 = vsel %vm1577_vm9, %v5023_v19, 0.0  ;;  %vm1576_vm2 = vcmp.eq.s32.totalorder %v5049_v20, 1 }
 0x3b9   :  { %vm1585_vm9 = vcmp.eq.s32.totalorder %v5096_v32, 1 }
 0x3ba   :  { %1471 = vperm.xlu0 %4229, %v1352_v58   ;;  %v5174_v58 = vadd.s32 %v1014_v25, %v1012_v23  ;;  %v1605_v25 = vsel %vm1573_vm4, %v4936_v26, 0.0  ;;  %v5186_v23 = vadd.s32 %v1040_v16, %v1038_v31  ;;  %v7650_v31 = vld [vmem:[#allocation18_spill] sm:$0xff]  ;;  %vm1592_vm4 = vcmp.eq.s32.totalorder %v5091_v17, 1 }
 0x3bb   :  { %v1602_v16 = vsel %vm1570_vm11, %v7650_v31, 0.0  ;;  %v1617_v17 = vsel %vm1585_vm9, %v5076_v51, 0.0  ;;  %vm1555_vm9 = vcmask 1045509  }
 0x3bc   :  { %7641 = vst [vmem:[#allocation12_spill] sm:$0xff] %v5174_v58  ;;  %vm1089_vm7 = vcmp.eq.s32.totalorder %v5174_v58, 0  ;;  %vm1091_vm8 = vcmp.eq.s32.totalorder %v5186_v23, 0  ;;  %vm1598_vm11 = vcmp.eq.s32.totalorder %v5174_v58, 1 }
 0x3bd   :  { %7645 = vst [vmem:[#allocation21_spill] sm:$0xff] %v5186_v23 }
 0x3bf   :  { %1474 = vperm.xlu1 %4230, %v1353_v1  }
 0x3c0   :  { %v5164_v54 = vpop.permute.xlu1 %1260 }
 0x3c1   :  { %7638 = vst [vmem:[#allocation68_spill] sm:$0xff] %v5164_v54  ;;  %v1351_v45 = vsel %vm1086_vm3, %v5164_v54, 0.0  ;;  %vm1586_vm3 = vcmp.eq.s32.totalorder %v5060_v61, 1 }
 0x3c2   :  { %1480 = vperm.xlu0 %4229, %v1355_v2   ;;  %1468 = vperm.xlu2 %4228, %v1351_v45   ;;  %v1603_v2 = vsel %vm1571_vm5, %v4928_v22, 0.0  ;;  %vm1589_vm5 = vcmp.eq.s32.totalorder %v5074_v13, 1 }
 0x3c3   :  { %v1621_v61 = vsel %vm1589_vm5, %v5082_v6, 0.0  ;;  %vm1496_vm5 = vcmask 261312  }
 0x3ca   :  { %1666 = vperm.xlu0 %4229, %v1601_v53  }
 0x3d0   :  { %v5176_v1 = vpop.permute.xlu1 %1279 }
 0x3d1   :  { %7642 = vst [vmem:[#allocation6_spill] sm:$0xff] %v5176_v1  ;;  %v1354_v45 = vsel %vm1089_vm7, %v5176_v1, 0.0  ;;  %vm1581_vm7 = vcmp.eq.s32.totalorder %v4965_v40, 1  ;;  %v7651_v40 = vld [vmem:[#allocation2_spill] sm:$0xff] }
 0x3d2   :  { %1672 = vperm.xlu0 %4229, %v1603_v2   ;;  %1477 = vperm.xlu2 %4228, %v1354_v45   ;;  %v7648_v2 = vld [vmem:[#allocation29_spill] sm:$0xff]  ;;  %v1613_v34 = vsel %vm1581_vm7, %v4969_v35, 0.0  ;;  %v5281_v26 = vadd.s32 4294967288, %v7651_v40  ;;  %vm1547_vm7 = vcmask 1041409  }
 0x3d3   :  { %v1607_v45 = vsel %vm1575_vm15, %v7648_v2, 0.0  ;;  %v1611_v2 = vsel %vm1579_vm12, %v4956_v24, 0.0  ;;  %v5214_v24 = vpop.permute.xlu0 %1393  ;;  %vm1583_vm15 = vcmp.eq.s32.totalorder %v5046_v39, 1  ;;  %vm1588_vm12 = vcmp.eq.s32.totalorder %v5109_v29, 1 }
 0x3d4   :  { %v1615_v13 = vsel %vm1583_vm15, %v5052_v56, 0.0  ;;  %vm1551_vm15 = vcmask 1043459  }
 0x3da   :  { %1678 = vperm.xlu0 %4229, %v1605_v25   ;;  %v5198_v25 = vpop.permute.xlu2 %1390 }
 0x3db   :  { %v5222_v3 = vpop.permute.xlu0 %1408  ;;  %v1485_v22 = vperm.slane %v5198_v25, %v7651_v40 }
 0x3e0   :  { %v5188_v53 = vpop.permute.xlu1 %1291 }
 0x3e1   :  { %7646 = vst [vmem:[#allocation13_spill] sm:$0xff] %v5188_v53  ;;  %v1356_v30 = vsel %vm1091_vm8, %v5188_v53, 0.0  ;;  %vm1595_vm8 = vcmp.eq.s32.totalorder %v5156_v50, 1 }
 0x3e2   :  { %1684 = vperm.xlu0 %4229, %v1607_v45   ;;  %1483 = vperm.xlu1 %4230, %v1356_v30   ;;  %v1604_v45 = vsel %vm1572_vm13, %v4932_v14, 0.0  ;;  %v5210_v19 = vpop.permute.xlu2 %1399  ;;  %vm1591_vm13 = vcmp.eq.s32.totalorder %v5120_v48, 1 }
 0x3e9   :  { %v5204_v30 = vpop.permute.xlu1 %1396 }
 0x3ea   :  { %1690 = vperm.xlu0 %4229, %v1609_v47   ;;  %1669 = vperm.xlu1 %4230, %v1602_v16   ;;  %v1614_v47 = vsel %vm1582_vm14, %v4977_v37, 0.0  ;;  %v1606_v16 = vsel %vm1574_vm1, %v4941_v4, 0.0  ;;  %v5220_v37 = vpop.permute.xlu2 %1405  ;;  %vm1594_vm14 = vcmp.eq.s32.totalorder %v5135_v46, 1  ;;  %vm1597_vm1 = vcmp.eq.s32.totalorder %v5151_v44, 1 }
 0x3eb   :  { %v1629_v8 = vsel %vm1597_vm1, %v5154_v0, 0.0  ;;  %v1487_v46 = vperm.slane %v5214_v24, %v5281_v26  ;;  %vm1839_vm1 = vcmp.eq.s32.totalorder %v5049_v20, 2 }
 0x3f1   :  { %v5212_v38 = vpop.permute.xlu1 %1402 }
 0x3f2   :  { %1696 = vperm.xlu0 %4229, %v1611_v2   ;;  %1675 = vperm.xlu1 %4230, %v1604_v45   ;;  %v1616_v2 = vsel %vm1584_vm0, %v4987_v60, 0.0  ;;  %v1608_v45 = vsel %vm1576_vm2, %v4948_v52, 0.0  ;;  %v5230_v60 = vpop.permute.xlu0 %1417  ;;  %vm1488_vm0 = vcmask 130112   ;;  %vm1833_vm2 = vcmp.eq.s32.totalorder %v7649_v33, 2 }
 0x3f3   :  { %v1489_v25 = vsel %vm1488_vm0, %v1487_v46, %v1485_v22  ;;  %v1865_v28 = vsel %vm1833_vm2, %v7650_v31, 0.0  ;;  %v1506_v24 = vperm.slane %v5230_v60, %v5281_v26  ;;  %vm1841_vm2 = vcmp.eq.s32.totalorder %v4952_v42, 2 }
 0x3fa   :  { %1705 = vperm.xlu0 %4229, %v1614_v47   ;;  %1681 = vperm.xlu1 %4230, %v1606_v16   ;;  %v5224_v47 = vpop.permute.xlu1 %1411  ;;  %v1618_v16 = vsel %vm1586_vm3, %v5066_v62, 0.0  ;;  %v5240_v62 = vpop.permute.xlu0 %1426  ;;  %vm1600_vm3 = vcmp.eq.s32.totalorder %v5186_v23, 1 }
 0x3fb   :  { %v1512_v22 = vperm.slane %v5240_v62, %v7651_v40 }
 0x402   :  { %1711 = vperm.xlu0 %4229, %v1616_v2   ;;  %1687 = vperm.xlu1 %4230, %v1608_v45   ;;  %v5232_v2 = vpop.permute.xlu2 %1414  ;;  %v5234_v45 = vpop.permute.xlu1 %1420 }
 0x403   :  { %v1505_v44 = vperm.slane %v5232_v2, %v7651_v40  ;;  %v1499_v2 = vperm.slane %v5220_v37, %v5281_v26 }
 0x405   :  { %v1507_v31 = vsel %vm1488_vm0, %v1506_v24, %v1505_v44 }
 0x40a   :  { %1717 = vperm.xlu0 %4229, %v1618_v16   ;;  %1693 = vperm.xlu1 %4230, %v1610_v7   ;;  %v5242_v16 = vpop.permute.xlu2 %1423  ;;  %v1624_v7 = vsel %vm1592_vm4, %v5008_v57, 0.0  ;;  %v5248_v21 = vpop.permute.xlu1 %1429  ;;  %vm1549_vm4 = vcmask 1042434  }
 0x40b   :  { %v1513_v46 = vperm.slane %v5248_v21, %v5281_v26  ;;  %v1632_v21 = vsel %vm1600_vm3, %v5188_v53, 0.0  ;;  %vm1580_vm3 = vcmp.eq.s32.totalorder %v5032_v41, 1 }
 0x412   :  { %1726 = vperm.xlu0 %4229, %v1621_v61   ;;  %1702 = vperm.xlu1 %4230, %v1613_v34   ;;  %v5252_v34 = vpop.permute.xlu0 %1435  ;;  %v1627_v61 = vsel %vm1595_vm8, %v5164_v54, 0.0  ;;  %v5256_v6 = vpop.permute.xlu2 %1432  ;;  %vm1553_vm8 = vcmask 1044484  }
 0x413   :  { %v5258_v57 = vpop.permute.xlu1 %1438 }
 0x41a   :  { %1735 = vperm.xlu0 %4229, %v1624_v7   ;;  %1708 = vperm.xlu1 %4230, %v1615_v13   ;;  %v1630_v13 = vsel %vm1598_vm11, %v5176_v1, 0.0  ;;  %v1620_v7 = vsel %vm1588_vm12, %v5094_v18, 0.0  ;;  %v5264_v50 = vpop.permute.xlu0 %1444  ;;  %v5266_v54 = vpop.permute.xlu2 %1441  ;;  %vm1557_vm11 = vcmask 1046534   ;;  %vm1559_vm12 = vcmask 1047559  }
 0x41b   :  { %v5268_v35 = vpop.permute.xlu1 %1447 }
 0x422   :  { %1744 = vperm.xlu0 %4229, %v1627_v61   ;;  %1714 = vperm.xlu1 %4230, %v1617_v17   ;;  %v1623_v17 = vsel %vm1591_vm13, %v5115_v27, 0.0  ;;  %v5272_v61 = vpop.permute.xlu0 %1453  ;;  %v5274_v58 = vpop.permute.xlu2 %1450  ;;  %vm1835_vm13 = vcmp.eq.s32.totalorder %v4990_v9, 2 }
 0x423   :  { %v5276_v1 = vpop.permute.xlu1 %1456  ;;  %v1527_v24 = vperm.slane %v5272_v61, %v5281_v26 }
 0x42a   :  { %1753 = vperm.xlu0 %4229, %v1630_v13   ;;  %1723 = vperm.xlu1 %4230, %v1620_v7   ;;  %v1626_v13 = vsel %vm1594_vm14, %v5127_v10, 0.0  ;;  %v1463_v7 = vpop.permute.xlu0 %1462  ;;  %v5283_v12 = vpop.permute.xlu2 %1459  ;;  %v5293_v10 = vadd.s32 4294967272, %v7651_v40  ;;  %vm1837_vm14 = vcmp.eq.s32.totalorder %v5004_v5, 2 }
 0x42c   :  { %v1510_v60 = vperm.slane %v5242_v16, %v5293_v10  ;;  %v1519_v16 = vperm.slane %v5258_v57, %v7651_v40 }
 0x432   :  { %1732 = vperm.xlu1 %4230, %v1623_v17   ;;  %v5287_v17 = vadd.s32 4294967280, %v7651_v40  ;;  %v5303_v0 = vpop.permute.xlu0 %1471 }
 0x434   :  { %v1501_v27 = vperm.slane %v5222_v3, %v5287_v17  ;;  %v1498_v3 = vperm.slane %v5212_v38, %v7651_v40  ;;  %v1491_v37 = vperm.slane %v5204_v30, %v5287_v17  ;;  %v1469_v38 = vpop.permute.xlu2 %1468  ;;  %v1522_v62 = vperm.slane %v5264_v50, %v5287_v17 }
 0x435   :  { %v1508_v33 = vperm.slane %v5234_v45, %v5287_v17  ;;  %v1515_v50 = vperm.slane %v5256_v6, %v5287_v17  ;;  %v1514_v45 = vsel %vm1488_vm0, %v1513_v46, %v1512_v22  ;;  %v1529_v57 = vperm.slane %v5276_v1, %v5287_v17 }
 0x436   :  { %v1500_v44 = vsel %vm1488_vm0, %v1499_v2, %v1498_v3  ;;  %v1520_v2 = vperm.slane %v5266_v54, %v5281_v26  ;;  %v1493_v3 = vsel %vm1492_vm6, %v1491_v37, %v1489_v25  ;;  %v1526_v6 = vperm.slane %v5274_v58, %v7651_v40 }
 0x437   :  { %v1509_v22 = vsel %vm1492_vm6, %v1508_v33, %v1507_v31  ;;  %v1516_v61 = vsel %vm1492_vm6, %v1515_v50, %v1514_v45  ;;  %v1524_v25 = vperm.slane %v5268_v35, %v5293_v10  ;;  %v1531_v33 = vperm.slane %v5283_v12, %v5293_v10 }
 0x438   :  { %v1521_v54 = vsel %vm1488_vm0, %v1520_v2, %v1519_v16  ;;  %v1528_v58 = vsel %vm1488_vm0, %v1527_v24, %v1526_v6  ;;  %v1511_v31 = vsel %vm1496_vm5, %v1510_v60, %v1509_v22  ;;  %v1538_v35 = vperm.slane %v5303_v0, %v5293_v10 }
 0x43a   :  { %1741 = vperm.xlu1 %4230, %v1626_v13   ;;  %v1466_v13 = vpop.permute.xlu1 %1465  ;;  %v1481_v37 = vpop.permute.xlu0 %1480 }
 0x43b   :  { %v1534_v30 = vperm.slane %v1466_v13, %v5281_v26  ;;  %v1533_v13 = vperm.slane %v1463_v7, %v7651_v40  ;;  %v1543_v60 = vperm.slane %v1481_v37, %v5287_v17  ;;  %v1612_v37 = vsel %vm1580_vm3, %v5038_v36, 0.0 }
 0x43c   :  { %v1478_v16 = vpop.permute.xlu2 %1477  ;;  %vm1848_vm3 = vcmp.eq.s32.totalorder %v5096_v32, 2 }
 0x43d   :  { %v1535_v1 = vsel %vm1488_vm0, %v1534_v30, %v1533_v13  ;;  %v1523_v30 = vsel %vm1492_vm6, %v1522_v62, %v1521_v54 }
 0x43e   :  { %v1525_v12 = vsel %vm1496_vm5, %v1524_v25, %v1523_v30 }
 0x442   :  { %1750 = vperm.xlu1 %4230, %v1629_v8   ;;  %v1495_v8 = vperm.slane %v5210_v19, %v5293_v10  ;;  %v1517_v19 = vperm.slane %v5252_v34, %v5293_v10  ;;  %v1503_v34 = vperm.slane %v5224_v47, %v5293_v10  ;;  %v1502_v47 = vsel %vm1492_vm6, %v1501_v27, %v1500_v44  ;;  %v5418_v30 = vpop.permute.xlu0 %1666 }
 0x443   :  { %v1536_v27 = vperm.slane %v1469_v38, %v5287_v17  ;;  %v1530_v44 = vsel %vm1492_vm6, %v1529_v57, %v1528_v58 }
 0x444   :  { %v1497_v7 = vsel %vm1496_vm5, %v1495_v8, %v1493_v3  ;;  %v1504_v46 = vsel %vm1496_vm5, %v1503_v34, %v1502_v47  ;;  %v1518_v8 = vsel %vm1496_vm5, %v1517_v19, %v1516_v61  ;;  %v1532_v0 = vsel %vm1496_vm5, %v1531_v33, %v1530_v44 }
 0x445   :  { %v1537_v50 = vsel %vm1492_vm6, %v1536_v27, %v1535_v1  ;;  %v1548_v34 = vsel %vm1547_vm7, %v1504_v46, %v1497_v7  ;;  %v1541_v19 = vperm.slane %v1478_v16, %v5281_v26  ;;  %v1867_v61 = vsel %vm1835_vm13, %v4932_v14, 0.0 }
 0x446   :  { %v1550_v45 = vsel %vm1549_vm4, %v1511_v31, %v1548_v34  ;;  %v1539_v24 = vsel %vm1496_vm5, %v1538_v35, %v1537_v50  ;;  %v1869_v1 = vsel %vm1837_vm14, %v4941_v4, 0.0  ;;  %v1871_v46 = vsel %vm1839_vm1, %v4948_v52, 0.0 }
 0x447   :  { %v1552_v62 = vsel %vm1551_vm15, %v1518_v8, %v1550_v45  ;;  %v1873_v27 = vsel %vm1841_vm2, %v4959_v59, 0.0  ;;  %vm1843_vm13 = vcmp.eq.s32.totalorder %v5032_v41, 2  ;;  %vm1587_vm14 = vcmp.eq.s32.totalorder %v5000_v49, 1 }
 0x448   :  { %v1554_v3 = vsel %vm1553_vm8, %v1525_v12, %v1552_v62  ;;  %v1875_v31 = vsel %vm1843_vm13, %v5038_v36, 0.0  ;;  %v1619_v44 = vsel %vm1587_vm14, %v4995_v15, 0.0  ;;  %vm1846_vm1 = vcmp.eq.s32.totalorder %v5046_v39, 2  ;;  %v7653_v12 = vld [vmem:[#allocation5_spill] sm:$0xff] }
 0x449   :  { %vm1590_vm2 = vcmp.eq.s32.totalorder %v5100_v43, 1  ;;  %v1878_v16 = vsel %vm1846_vm1, %v5052_v56, 0.0  ;;  %v1880_v34 = vsel %vm1848_vm3, %v5076_v51, 0.0  ;;  %vm1851_vm14 = vcmp.eq.s32.totalorder %v5109_v29, 2 }
 0x44a   :  { %1759 = vperm.xlu1 %4230, %v1632_v21   ;;  %v1475_v21 = vpop.permute.xlu1 %1474  ;;  %v1622_v8 = vsel %vm1590_vm2, %v5106_v11, 0.0  ;;  %v5426_v45 = vpop.permute.xlu0 %1672  ;;  %vm1596_vm1 = vcmp.eq.s32.totalorder %v5140_v55, 1  ;;  %vm1854_vm2 = vcmp.eq.s32.totalorder %v5120_v48, 2 }
 0x44b   :  { %v1540_v38 = vperm.slane %v1475_v21, %v7651_v40  ;;  %v1556_v21 = vsel %vm1555_vm9, %v1532_v0, %v1554_v3  ;;  %v1628_v62 = vsel %vm1596_vm1, %v5144_v63, 0.0  ;;  %v7654_v3 = vld [vmem:[#allocation20_spill] sm:$0xff] }
 0x44c   :  { %v1558_v47 = vsel %vm1557_vm11, %v1539_v24, %v1556_v21  ;;  %vm1599_vm3 = vcmp.eq.s32.totalorder %v7654_v3, 1 }
 0x44d   :  { %v1542_v57 = vsel %vm1488_vm0, %v1541_v19, %v1540_v38  ;;  %v7652_v38 = vld [vmem:[#allocation8_spill] sm:$0xff]  ;;  %v1883_v19 = vsel %vm1851_vm14, %v5094_v18, 0.0 }
 0x44e   :  { %vm1593_vm13 = vcmp.eq.s32.totalorder %v7652_v38, 1 }
 0x452   :  { %1932 = vperm.xlu1 %4230, %v1865_v28   ;;  %v1544_v28 = vsel %vm1492_vm6, %v1543_v60, %v1542_v57  ;;  %v1625_v60 = vsel %vm1593_vm13, %v7653_v12, 0.0  ;;  %v7655_v57 = vld [vmem:[#allocation15_spill] sm:$0xff] }
 0x454   :  { %v1484_v2 = vpop.permute.xlu1 %1483 }
 0x455   :  { %v1545_v13 = vperm.slane %v1484_v2, %v5293_v10  ;;  %v5436_v2 = vpop.permute.xlu0 %1678 }
 0x457   :  { %v1546_v6 = vsel %vm1496_vm5, %v1545_v13, %v1544_v28  ;;  %v1886_v13 = vsel %vm1854_vm2, %v7655_v57, 0.0  ;;  %v7656_v28 = vld [vmem:[#allocation67_spill] sm:$0xff] }
 0x458   :  { %v1560_v22 = vsel %vm1559_vm12, %v1546_v6, %v1558_v47  ;;  %v1631_v21 = vsel %vm1599_vm3, %v7656_v28, 0.0  ;;  %vm1863_vm3 = vcmp.eq.s32.totalorder %v5186_v23, 2 }
 0x459   :  { %v1562_v54 = vsel %vm85_vm10, %v1560_v22, 0.0  ;;  %v7657_v22 = vld [vmem:[#allocation9_spill] sm:$0xff] }
 0x45a   :  { %1938 = vperm.xlu1 %4230, %v1867_v61   ;;  %1563 = vadd.xlane.f32.xlu2 %v1562_v54  ;;  %vm1857_vm13 = vcmp.eq.s32.totalorder %v7657_v22, 2  ;;  %v7658_v61 = vld [vmem:[#allocation36_spill] sm:$0xff] }
 0x45b   :  { %vm1832_vm14 = vcmp.eq.s32.totalorder %v7658_v61, 2  ;;  %v7659_v54 = vld [vmem:[#allocation16_spill] sm:$0xff] }
 0x45c   :  { %v5392_v25 = vpop.permute.xlu1 %1669 }
 0x45d   :  { %v5444_v47 = vpop.permute.xlu0 %1684 }
 0x462   :  { %1944 = vperm.xlu1 %4230, %v1869_v1   ;;  %v1889_v1 = vsel %vm1857_vm13, %v7659_v54, 0.0 }
 0x464   :  { %v5396_v7 = vpop.permute.xlu1 %1675 }
 0x46a   :  { %1950 = vperm.xlu1 %4230, %v1871_v46   ;;  %v7660_v46 = vld [vmem:[#allocation23_spill] sm:$0xff] }
 0x46c   :  { %v5400_v58 = vpop.permute.xlu1 %1681 }
 0x472   :  { %1956 = vperm.xlu1 %4230, %v1873_v27   ;;  %1699 = vperm.xlu2 %4228, %v1612_v37   ;;  %v1864_v27 = vsel %vm1832_vm14, %v7660_v46, 0.0 }
 0x474   :  { %v5406_v33 = vpop.permute.xlu1 %1687 }
 0x47a   :  { %1962 = vperm.xlu1 %4230, %v1875_v31   ;;  %1720 = vperm.xlu2 %4228, %v1619_v44   ;;  %v7661_v31 = vld [vmem:[#allocation7_spill] sm:$0xff]  ;;  %v7662_v44 = vld [vmem:[#allocation46_spill] sm:$0xff] }
 0x47b   :  { %vm1860_vm1 = vcmp.eq.s32.totalorder %v7661_v31, 2  ;;  %vm1834_vm2 = vcmp.eq.s32.totalorder %v7662_v44, 2  ;;  %v7670_v44 = vld [vmem:[#allocation29_spill] sm:$0xff] }
 0x47c   :  { %v5412_v35 = vpop.permute.xlu1 %1693 }
 0x482   :  { %1971 = vperm.xlu1 %4230, %v1878_v16   ;;  %1729 = vperm.xlu2 %4228, %v1622_v8   ;;  %v7663_v16 = vld [vmem:[#allocation11_spill] sm:$0xff] }
 0x483   :  { %v1892_v8 = vsel %vm1860_vm1, %v7663_v16, 0.0 }
 0x484   :  { %v5420_v50 = vpop.permute.xlu1 %1702 }
 0x48a   :  { %1977 = vperm.xlu1 %4230, %v1880_v34   ;;  %1738 = vperm.xlu2 %4228, %v1625_v60   ;;  %v7664_v34 = vld [vmem:[#allocation24_spill] sm:$0xff] }
 0x48b   :  { %v1866_v60 = vsel %vm1834_vm2, %v7664_v34, 0.0  ;;  %v7667_v34 = vld [vmem:[#allocation17_spill] sm:$0xff]  ;;  %vm2098_vm2 = vcmp.eq.s32.totalorder %v4990_v9, 3 }
 0x48c   :  { %v5428_v0 = vpop.permute.xlu1 %1708  ;;  %vm2096_vm14 = vcmp.eq.s32.totalorder %v7667_v34, 3 }
 0x492   :  { %1986 = vperm.xlu1 %4230, %v1883_v19   ;;  %1747 = vperm.xlu2 %4228, %v1628_v62   ;;  %v5456_v19 = vpop.permute.xlu0 %1690 }
 0x494   :  { %v5434_v24 = vpop.permute.xlu1 %1714 }
 0x49a   :  { %1995 = vperm.xlu1 %4230, %v1886_v13   ;;  %1756 = vperm.xlu2 %4228, %v1631_v21   ;;  %v7665_v13 = vld [vmem:[#allocation49_spill] sm:$0xff]  ;;  %v1895_v21 = vsel %vm1863_vm3, %v5188_v53, 0.0  ;;  %v5464_v36 = vpop.permute.xlu0 %1696 }
 0x49b   :  { %vm1836_vm13 = vcmp.eq.s32.totalorder %v7665_v13, 2 }
 0x49c   :  { %v5442_v6 = vpop.permute.xlu1 %1723 }
 0x4a2   :  { %2004 = vperm.xlu1 %4230, %v1889_v1   ;;  %1929 = vperm.xlu2 %4228, %v1864_v27   ;;  %v7666_v1 = vld [vmem:[#allocation26_spill] sm:$0xff]  ;;  %v5474_v53 = vpop.permute.xlu0 %1705 }
 0x4a3   :  { %v1868_v27 = vsel %vm1836_vm13, %v7666_v1, 0.0  ;;  %v7672_v1 = vld [vmem:[#allocation47_spill] sm:$0xff]  ;;  %vm2100_vm13 = vcmp.eq.s32.totalorder %v5004_v5, 3 }
 0x4a4   :  { %v5450_v37 = vpop.permute.xlu1 %1732 }
 0x4aa   :  { %2013 = vperm.xlu1 %4230, %v1892_v8   ;;  %1935 = vperm.xlu2 %4228, %v1866_v60   ;;  %v7668_v8 = vld [vmem:[#allocation27_spill] sm:$0xff]  ;;  %v7669_v60 = vld [vmem:[#allocation18_spill] sm:$0xff] }
 0x4ab   :  { %vm1838_vm1 = vcmp.eq.s32.totalorder %v7668_v8, 2  ;;  %v2128_v16 = vsel %vm2096_vm14, %v7669_v60, 0.0  ;;  %v5482_v60 = vpop.permute.xlu0 %1711 }
 0x4ac   :  { %v5458_v62 = vpop.permute.xlu1 %1741  ;;  %v1870_v23 = vsel %vm1838_vm1, %v7670_v44, 0.0  ;;  %v7675_v44 = vld [vmem:[#allocation32_spill] sm:$0xff]  ;;  %vm2102_vm1 = vcmp.eq.s32.totalorder %v5049_v20, 3 }
 0x4b2   :  { %2022 = vperm.xlu1 %4230, %v1895_v21   ;;  %1941 = vperm.xlu2 %4228, %v1868_v27   ;;  %v7671_v21 = vld [vmem:[#allocation45_spill] sm:$0xff]  ;;  %v2130_v27 = vsel %vm2098_vm2, %v4932_v14, 0.0 }
 0x4b3   :  { %vm1840_vm3 = vcmp.eq.s32.totalorder %v7671_v21, 2 }
 0x4b4   :  { %v5466_v41 = vpop.permute.xlu1 %1750  ;;  %v1872_v34 = vsel %vm1840_vm3, %v7672_v1, 0.0  ;;  %v5496_v1 = vpop.permute.xlu0 %1717  ;;  %vm2104_vm3 = vcmp.eq.s32.totalorder %v4952_v42, 3 }
 0x4ba   :  { %2195 = vperm.xlu1 %4230, %v2128_v16   ;;  %1947 = vperm.xlu2 %4228, %v1870_v23   ;;  %v7674_v23 = vld [vmem:[#allocation55_spill] sm:$0xff]  ;;  %v2132_v16 = vsel %vm2100_vm13, %v4941_v4, 0.0 }
 0x4bb   :  { %vm1842_vm14 = vcmp.eq.s32.totalorder %v7674_v23, 2 }
 0x4bc   :  { %v5472_v13 = vpop.permute.xlu1 %1759  ;;  %v1874_v9 = vsel %vm1842_vm14, %v7675_v44, 0.0  ;;  %v7682_v44 = vld [vmem:[#allocation39_spill] sm:$0xff] }
 0x4c2   :  { %2201 = vperm.xlu1 %4230, %v2130_v27   ;;  %1953 = vperm.xlu2 %4228, %v1872_v34   ;;  %v7678_v34 = vld [vmem:[#allocation59_spill] sm:$0xff]  ;;  %v2134_v27 = vsel %vm2102_vm1, %v4948_v52, 0.0  ;;  %v5506_v52 = vpop.permute.xlu0 %1726  ;;  %vm1850_vm1 = vcmp.eq.s32.totalorder %v5000_v49, 2 }
 0x4c3   :  { %vm1845_vm2 = vcmp.eq.s32.totalorder %v7678_v34, 2 }
 0x4c4   :  { %v5480_v8 = vpop.permute.xlu1 %1932 }
 0x4c5   :  { %7673 = vst [vmem:[#allocation2_spill] sm:$0xff] %v5480_v8  ;;  %v7679_v8 = vld [vmem:[#allocation37_spill] sm:$0xff] }
 0x4c6   :  { %v1877_v5 = vsel %vm1845_vm2, %v7679_v8, 0.0  ;;  %vm2109_vm2 = vcmp.eq.s32.totalorder %v5046_v39, 3  ;;  %v1769_v39 = vperm.slane %v5400_v58, %v5281_v26 }
 0x4ca   :  { %2207 = vperm.xlu1 %4230, %v2132_v16   ;;  %1959 = vperm.xlu2 %4228, %v1874_v9   ;;  %v7681_v9 = vld [vmem:[#allocation38_spill] sm:$0xff] }
 0x4cb   :  { %vm1847_vm13 = vcmp.eq.s32.totalorder %v7681_v9, 2  ;;  %v1882_v9 = vsel %vm1850_vm1, %v4995_v15, 0.0  ;;  %v1762_v15 = vperm.slane %v5392_v25, %v5281_v26  ;;  %vm2114_vm1 = vcmp.eq.s32.totalorder %v5109_v29, 3 }
 0x4cc   :  { %v5488_v21 = vpop.permute.xlu1 %1938  ;;  %v1768_v25 = vperm.slane %v5436_v2, %v7651_v40  ;;  %v2146_v58 = vsel %vm2114_vm1, %v5094_v18, 0.0  ;;  %v1778_v2 = vperm.slane %v5464_v36, %v5287_v17  ;;  %vm2095_vm1 = vcmp.eq.s32.totalorder %v7658_v61, 3 }
 0x4cd   :  { %7676 = vst [vmem:[#allocation69_spill] sm:$0xff] %v5488_v21  ;;  %v5490_v14 = vpop.xlane.xlu2 %1563  ;;  %v1879_v21 = vsel %vm1847_vm13, %v7682_v44, 0.0  ;;  %vm2111_vm13 = vcmp.eq.s32.totalorder %v5096_v32, 3 }
 0x4ce   :  { %7677 = vst [vmem:[#allocation70_spill] sm:$0xff] %v5490_v14  ;;  %v2136_v14 = vsel %vm2104_vm3, %v4959_v59, 0.0  ;;  %vm1853_vm3 = vcmp.eq.s32.totalorder %v5100_v43, 2 }
 0x4cf   :  { %v1885_v44 = vsel %vm1853_vm3, %v5106_v11, 0.0  ;;  %vm2117_vm3 = vcmp.eq.s32.totalorder %v5120_v48, 3 }
 0x4d2   :  { %2213 = vperm.xlu1 %4230, %v2134_v27   ;;  %1968 = vperm.xlu2 %4228, %v1877_v5   ;;  %v7684_v5 = vld [vmem:[#allocation34_spill] sm:$0xff] }
 0x4d3   :  { %vm2107_vm14 = vcmp.eq.s32.totalorder %v7684_v5, 3 }
 0x4d4   :  { %v5498_v23 = vpop.permute.xlu1 %1944 }
 0x4d5   :  { %7680 = vst [vmem:[#allocation71_spill] sm:$0xff] %v5498_v23  ;;  %v5500_v16 = vpop.permute.xlu2 %1699  ;;  %v7685_v23 = vld [vmem:[#allocation35_spill] sm:$0xff] }
 0x4d6   :  { %v2139_v42 = vsel %vm2107_vm14, %v7685_v23, 0.0  ;;  %vm1856_vm14 = vcmp.eq.s32.totalorder %v7652_v38, 2 }
 0x4d7   :  { %v1888_v29 = vsel %vm1856_vm14, %v7653_v12, 0.0  ;;  %vm2120_vm14 = vcmp.eq.s32.totalorder %v7657_v22, 3 }
 0x4da   :  { %2219 = vperm.xlu1 %4230, %v2136_v14   ;;  %1974 = vperm.xlu2 %4228, %v1879_v21   ;;  %v5518_v21 = vpop.permute.xlu0 %1735 }
 0x4dc   :  { %v5508_v8 = vpop.permute.xlu1 %1950 }
 0x4dd   :  { %7683 = vst [vmem:[#allocation72_spill] sm:$0xff] %v5508_v8  ;;  %v5510_v27 = vpop.permute.xlu2 %1720  ;;  %v2141_v8 = vsel %vm2109_vm2, %v5052_v56, 0.0  ;;  %v2143_v56 = vsel %vm2111_vm13, %v5076_v51, 0.0  ;;  %vm1859_vm2 = vcmp.eq.s32.totalorder %v5140_v55, 2  ;;  %v1771_v51 = vperm.slane %v5444_v47, %v5287_v17 }
 0x4de   :  { %v1775_v55 = vperm.slane %v5456_v19, %v7651_v40  ;;  %v1782_v19 = vperm.slane %v5420_v50, %v7651_v40  ;;  %v1796_v50 = vperm.slane %v5506_v52, %v7651_v40  ;;  %vm1862_vm13 = vcmp.eq.s32.totalorder %v7654_v3, 2 }
 0x4e2   :  { %2228 = vperm.xlu1 %4230, %v2139_v42   ;;  %1983 = vperm.xlu2 %4228, %v1882_v9  }
 0x4e4   :  { %v5516_v59 = vpop.permute.xlu1 %1956 }
 0x4e5   :  { %7686 = vst [vmem:[#allocation73_spill] sm:$0xff] %v5516_v59  ;;  %v1730_v14 = vpop.permute.xlu2 %1729  ;;  %v1761_v59 = vperm.slane %v5418_v30, %v7651_v40  ;;  %v1776_v30 = vperm.slane %v5412_v35, %v5281_v26  ;;  %v1773_v35 = vperm.slane %v5406_v33, %v5293_v10 }
 0x4e6   :  { %v1797_v18 = vperm.slane %v1730_v14, %v5281_v26  ;;  %v1785_v14 = vperm.slane %v5428_v0, %v5287_v17 }
 0x4ea   :  { %2234 = vperm.xlu1 %4230, %v2141_v8   ;;  %1992 = vperm.xlu2 %4228, %v1885_v44   ;;  %v1763_v44 = vsel %vm1488_vm0, %v1762_v15, %v1761_v59  ;;  %v1745_v8 = vpop.permute.xlu0 %1744  ;;  %v1766_v59 = vperm.slane %v5396_v7, %v5293_v10  ;;  %v1770_v15 = vsel %vm1488_vm0, %v1769_v39, %v1768_v25 }
 0x4eb   :  { %v1783_v39 = vperm.slane %v5474_v53, %v5281_v26  ;;  %v1777_v7 = vsel %vm1488_vm0, %v1776_v30, %v1775_v55  ;;  %v1772_v36 = vsel %vm1492_vm6, %v1771_v51, %v1770_v15  ;;  %v1792_v53 = vperm.slane %v5510_v27, %v5287_v17 }
 0x4ec   :  { %v5526_v42 = vpop.permute.xlu1 %1962  ;;  %v1787_v51 = vperm.slane %v5482_v60, %v5293_v10  ;;  %v1779_v0 = vsel %vm1492_vm6, %v1778_v2, %v1777_v7  ;;  %v1799_v30 = vperm.slane %v5450_v37, %v5287_v17  ;;  %v1794_v15 = vperm.slane %v5442_v6, %v5293_v10 }
 0x4ed   :  { %7687 = vst [vmem:[#allocation74_spill] sm:$0xff] %v5526_v42  ;;  %v1739_v9 = vpop.permute.xlu2 %1738  ;;  %v1764_v42 = vperm.slane %v5426_v45, %v5287_v17  ;;  %v1891_v45 = vsel %vm1859_vm2, %v5144_v63, 0.0  ;;  %v1784_v52 = vsel %vm1488_vm0, %v1783_v39, %v1782_v19  ;;  %v1806_v19 = vperm.slane %v1745_v8, %v5287_v17 }
 0x4ee   :  { %v1803_v25 = vperm.slane %v1739_v9, %v7651_v40  ;;  %v1786_v60 = vsel %vm1492_vm6, %v1785_v14, %v1784_v52  ;;  %v1810_v39 = vperm.slane %v5466_v41, %v7651_v40  ;;  %vm2123_vm2 = vcmp.eq.s32.totalorder %v7661_v31, 3 }
 0x4ef   :  { %v1765_v47 = vsel %vm1492_vm6, %v1764_v42, %v1763_v44  ;;  %v1798_v44 = vsel %vm1488_vm0, %v1797_v18, %v1796_v50 }
 0x4f0   :  { %v1767_v42 = vsel %vm1496_vm5, %v1766_v59, %v1765_v47  ;;  %v1804_v59 = vperm.slane %v5458_v62, %v5281_v26  ;;  %v1800_v2 = vsel %vm1492_vm6, %v1799_v30, %v1798_v44  ;;  %v1801_v62 = vperm.slane %v5518_v21, %v5293_v10 }
 0x4f1   :  { %v2152_v30 = vsel %vm2120_vm14, %v7659_v54, 0.0 }
 0x4f2   :  { %2240 = vperm.xlu1 %4230, %v2143_v56   ;;  %2001 = vperm.xlu2 %4228, %v1888_v29   ;;  %v1789_v56 = vperm.slane %v5434_v24, %v7651_v40  ;;  %v1780_v29 = vperm.slane %v5500_v16, %v5293_v10  ;;  %v1774_v24 = vsel %vm1496_vm5, %v1773_v35, %v1772_v36  ;;  %v1754_v18 = vpop.permute.xlu0 %1753 }
 0x4f3   :  { %v1790_v16 = vperm.slane %v5496_v1, %v5281_v26  ;;  %v1817_v9 = vsel %vm1547_vm7, %v1774_v24, %v1767_v42  ;;  %v1805_v47 = vsel %vm1488_vm0, %v1804_v59, %v1803_v25  ;;  %v1811_v36 = vperm.slane %v1754_v18, %v5281_v26  ;;  %v7694_v18 = vld [vmem:[#allocation24_spill] sm:$0xff] }
 0x4f4   :  { %v5569_v33 = vpop.permute.xlu1 %1971  ;;  %v1781_v1 = vsel %vm1496_vm5, %v1780_v29, %v1779_v0  ;;  %v1788_v29 = vsel %vm1496_vm5, %v1787_v51, %v1786_v60  ;;  %v1802_v21 = vsel %vm1496_vm5, %v1801_v62, %v1800_v2  ;;  %v1894_v25 = vsel %vm1862_vm13, %v7656_v28, 0.0  ;;  %v7692_v60 = vld [vmem:[#allocation46_spill] sm:$0xff] }
 0x4f5   :  { %7688 = vst [vmem:[#allocation75_spill] sm:$0xff] %v5569_v33  ;;  %v1748_v55 = vpop.permute.xlu2 %1747  ;;  %v1791_v27 = vsel %vm1488_vm0, %v1790_v16, %v1789_v56  ;;  %v1818_v6 = vsel %vm1549_vm4, %v1781_v1, %v1817_v9  ;;  %v1812_v14 = vsel %vm1488_vm0, %v1811_v36, %v1810_v39  ;;  %v2149_v16 = vsel %vm2117_vm3, %v7655_v57, 0.0  ;;  %v7697_v39 = vld [vmem:[#allocation49_spill] sm:$0xff]  ;;  %v7733_v33 = vld [vmem:[#allocation39_spill] sm:$0xff] }
 0x4f6   :  { %v1793_v35 = vsel %vm1492_vm6, %v1792_v53, %v1791_v27  ;;  %v1808_v37 = vperm.slane %v1748_v55, %v5293_v10  ;;  %v1819_v8 = vsel %vm1551_vm15, %v1788_v29, %v1818_v6  ;;  %v1815_v53 = vperm.slane %v5472_v13, %v5293_v10  ;;  %v7698_v6 = vld [vmem:[#allocation13_spill] sm:$0xff]  ;;  %v7699_v29 = vld [vmem:[#allocation26_spill] sm:$0xff] }
 0x4f7   :  { %v1795_v7 = vsel %vm1496_vm5, %v1794_v15, %v1793_v35  ;;  %v2127_v59 = vsel %vm2095_vm1, %v7660_v46, 0.0  ;;  %vm2097_vm3 = vcmp.eq.s32.totalorder %v7692_v60, 3  ;;  %v7693_v15 = vld [vmem:[#allocation11_spill] sm:$0xff]  ;;  %vm1844_vm13 = vcmp.eq.s32.totalorder %v7684_v5, 2 }
 0x4f8   :  { %v1820_v55 = vsel %vm1553_vm8, %v1795_v7, %v1819_v8  ;;  %v2155_v35 = vsel %vm2123_vm2, %v7693_v15, 0.0  ;;  %v2129_v2 = vsel %vm2097_vm3, %v7694_v18, 0.0  ;;  %v1876_v62 = vsel %vm1844_vm13, %v7685_v23, 0.0  ;;  %v7702_v8 = vld [vmem:[#allocation56_spill] sm:$0xff] }
 0x4f9   :  { %v1821_v24 = vsel %vm1555_vm9, %v1802_v21, %v1820_v55  ;;  %vm2099_vm1 = vcmp.eq.s32.totalorder %v7697_v39, 3  ;;  %v7701_v21 = vld [vmem:[#allocation54_spill] sm:$0xff] }
 0x4fa   :  { %2249 = vperm.xlu1 %4230, %v2146_v58   ;;  %2010 = vperm.xlu2 %4228, %v1891_v45   ;;  %v1807_v58 = vsel %vm1492_vm6, %v1806_v19, %v1805_v47  ;;  %v7696_v19 = vld [vmem:[#allocation21_spill] sm:$0xff]  ;;  %v2131_v36 = vsel %vm2099_vm1, %v7699_v29, 0.0  ;;  %vm1849_vm2 = vcmp.eq.s32.totalorder %v7701_v21, 2 }
 0x4fb   :  { %v1809_v50 = vsel %vm1496_vm5, %v1808_v37, %v1807_v58  ;;  %vm2126_vm14 = vcmp.eq.s32.totalorder %v7696_v19, 3 }
 0x4fc   :  { %v5609_v56 = vpop.permute.xlu1 %1977  ;;  %v1822_v52 = vsel %vm1557_vm11, %v1809_v50, %v1821_v24  ;;  %v2158_v7 = vsel %vm2126_vm14, %v7698_v6, 0.0  ;;  %v1881_v50 = vsel %vm1849_vm2, %v7702_v8, 0.0 }
 0x4fd   :  { %7689 = vst [vmem:[#allocation76_spill] sm:$0xff] %v5609_v56  ;;  %v1757_v45 = vpop.permute.xlu2 %1756 }
 0x4fe   :  { %v1813_v41 = vperm.slane %v1757_v45, %v5287_v17 }
 0x500   :  { %v1814_v42 = vsel %vm1492_vm6, %v1813_v41, %v1812_v14  ;;  %v7703_v41 = vld [vmem:[#allocation17_spill] sm:$0xff]  ;;  %v7704_v14 = vld [vmem:[#allocation27_spill] sm:$0xff] }
 0x501   :  { %v1816_v51 = vsel %vm1496_vm5, %v1815_v53, %v1814_v42  ;;  %vm2359_vm3 = vcmp.eq.s32.totalorder %v7703_v41, 4  ;;  %vm2101_vm13 = vcmp.eq.s32.totalorder %v7704_v14, 3  ;;  %v7705_v53 = vld [vmem:[#allocation18_spill] sm:$0xff]  ;;  %v7706_v42 = vld [vmem:[#allocation29_spill] sm:$0xff] }
 0x502   :  { %2258 = vperm.xlu1 %4230, %v2149_v16   ;;  %2019 = vperm.xlu2 %4228, %v1894_v25   ;;  %v1823_v13 = vsel %vm1559_vm12, %v1816_v51, %v1822_v52  ;;  %v2391_v55 = vsel %vm2359_vm3, %v7705_v53, 0.0  ;;  %v2133_v24 = vsel %vm2101_vm13, %v7706_v42, 0.0  ;;  %v7707_v25 = vld [vmem:[#allocation57_spill] sm:$0xff]  ;;  %v7708_v51 = vld [vmem:[#allocation60_spill] sm:$0xff] }
 0x503   :  { %v1825_v0 = vsel %vm85_vm10, %v1823_v13, 0.0  ;;  %vm1852_vm14 = vcmp.eq.s32.totalorder %v7707_v25, 2  ;;  %v7719_v25 = vld [vmem:[#allocation50_spill] sm:$0xff] }
 0x504   :  { %1826 = vadd.xlane.f32.xlu0 %v1825_v0  ;;  %v5632_v44 = vpop.permute.xlu1 %1986  ;;  %v1884_v52 = vsel %vm1852_vm14, %v7708_v51, 0.0  ;;  %v7710_v0 = vld [vmem:[#allocation40_spill] sm:$0xff] }
 0x505   :  { %7690 = vst [vmem:[#allocation77_spill] sm:$0xff] %v5632_v44  ;;  %v5634_v27 = vpop.permute.xlu2 %1929  ;;  %vm2361_vm1 = vcmp.eq.s32.totalorder %v7710_v0, 4  ;;  %v7732_v44 = vld [vmem:[#allocation33_spill] sm:$0xff] }
 0x50a   :  { %2267 = vperm.xlu1 %4230, %v2152_v30   ;;  %2192 = vperm.xlu2 %4228, %v2127_v59   ;;  %v7711_v30 = vld [vmem:[#allocation45_spill] sm:$0xff] }
 0x50b   :  { %vm2103_vm2 = vcmp.eq.s32.totalorder %v7711_v30, 3  ;;  %v7712_v59 = vld [vmem:[#allocation25_spill] sm:$0xff] }
 0x50c   :  { %v5640_v1 = vpop.permute.xlu1 %1995 }
 0x50d   :  { %7691 = vst [vmem:[#allocation78_spill] sm:$0xff] %v5640_v1  ;;  %v5642_v9 = vpop.permute.xlu2 %1935 }
 0x512   :  { %2276 = vperm.xlu1 %4230, %v2155_v35   ;;  %2198 = vperm.xlu2 %4228, %v2129_v2   ;;  %v2393_v35 = vsel %vm2361_vm1, %v7712_v59, 0.0  ;;  %v7713_v2 = vld [vmem:[#allocation47_spill] sm:$0xff] }
 0x514   :  { %v5648_v47 = vpop.permute.xlu1 %2004 }
 0x515   :  { %7695 = vst [vmem:[#allocation79_spill] sm:$0xff] %v5648_v47  ;;  %v5650_v37 = vpop.permute.xlu2 %1941 }
 0x518   :  { %1965 = vperm.xlu0 %4229, %v1876_v62   ;;  %v2135_v62 = vsel %vm2103_vm2, %v7713_v2, 0.0  ;;  %vm2365_vm2 = vcmp.eq.s32.totalorder %v5049_v20, 4 }
 0x51a   :  { %2285 = vperm.xlu1 %4230, %v2158_v7   ;;  %2204 = vperm.xlu2 %4228, %v2131_v36   ;;  %v7715_v36 = vld [vmem:[#allocation61_spill] sm:$0xff] }
 0x51b   :  { %vm1855_vm3 = vcmp.eq.s32.totalorder %v7715_v36, 2  ;;  %v7723_v36 = vld [vmem:[#allocation68_spill] sm:$0xff] }
 0x51c   :  { %v5660_v45 = vpop.permute.xlu1 %2013 }
 0x51d   :  { %v5658_v58 = vpop.permute.xlu2 %1947  ;;  %7700 = vst [vmem:[#allocation80_spill] sm:$0xff] %v5660_v45  ;;  %v7725_v45 = vld [vmem:[#allocation37_spill] sm:$0xff] }
 0x520   :  { %1980 = vperm.xlu0 %4229, %v1881_v50   ;;  %v7716_v50 = vld [vmem:[#allocation44_spill] sm:$0xff] }
 0x522   :  { %2458 = vperm.xlu1 %4230, %v2391_v55   ;;  %2210 = vperm.xlu2 %4228, %v2133_v24   ;;  %v1887_v55 = vsel %vm1855_vm3, %v7716_v50, 0.0  ;;  %v7717_v24 = vld [vmem:[#allocation43_spill] sm:$0xff]  ;;  %vm2108_vm3 = vcmp.eq.s32.totalorder %v7678_v34, 3 }
 0x523   :  { %vm2363_vm13 = vcmp.eq.s32.totalorder %v7717_v24, 4  ;;  %v2140_v1 = vsel %vm2108_vm3, %v7725_v45, 0.0  ;;  %vm2113_vm3 = vcmp.eq.s32.totalorder %v5000_v49, 3 }
 0x524   :  { %v5672_v13 = vpop.permute.xlu1 %2022  ;;  %v2395_v51 = vsel %vm2363_vm13, %v4941_v4, 0.0 }
 0x525   :  { %v5668_v16 = vpop.permute.xlu2 %1953  ;;  %7709 = vst [vmem:[#allocation81_spill] sm:$0xff] %v5672_v13 }
 0x528   :  { %1989 = vperm.xlu0 %4229, %v1884_v52   ;;  %v7718_v52 = vld [vmem:[#allocation48_spill] sm:$0xff] }
 0x529   :  { %vm2106_vm14 = vcmp.eq.s32.totalorder %v7718_v52, 3 }
 0x52a   :  { %2464 = vperm.xlu1 %4230, %v2393_v35   ;;  %2216 = vperm.xlu2 %4228, %v2135_v62   ;;  %v2138_v8 = vsel %vm2106_vm14, %v7719_v25, 0.0  ;;  %v7722_v62 = vld [vmem:[#allocation4_spill] sm:$0xff] }
 0x52b   :  { %vm1858_vm1 = vcmp.eq.s32.totalorder %v7722_v62, 2  ;;  %v7729_v62 = vld [vmem:[#allocation6_spill] sm:$0xff] }
 0x52c   :  { %v5686_v21 = vpop.permute.xlu1 %2195  ;;  %v1890_v13 = vsel %vm1858_vm1, %v7723_v36, 0.0  ;;  %v7731_v36 = vld [vmem:[#allocation38_spill] sm:$0xff] }
 0x52d   :  { %v5678_v7 = vpop.permute.xlu2 %1959  ;;  %7720 = vst [vmem:[#allocation83_spill] sm:$0xff] %v5686_v21  ;;  %vm2110_vm1 = vcmp.eq.s32.totalorder %v7731_v36, 3 }
 0x52e   :  { %7714 = vst [vmem:[#allocation82_spill] sm:$0xff] %v5678_v7 }
 0x530   :  { %1998 = vperm.xlu0 %4229, %v1887_v55   ;;  %v7724_v55 = vld [vmem:[#allocation30_spill] sm:$0xff] }
 0x531   :  { %v2397_v50 = vsel %vm2365_vm2, %v7724_v55, 0.0  ;;  %vm2370_vm2 = vcmp.eq.s32.totalorder %v7684_v5, 4 }
 0x532   :  { %2470 = vperm.xlu1 %4230, %v2395_v51   ;;  %2225 = vperm.xlu2 %4228, %v2138_v8   ;;  %v7728_v51 = vld [vmem:[#allocation12_spill] sm:$0xff] }
 0x533   :  { %vm1861_vm13 = vcmp.eq.s32.totalorder %v7728_v51, 2 }
 0x534   :  { %v5696_v21 = vpop.permute.xlu1 %2201  ;;  %v1893_v47 = vsel %vm1861_vm13, %v7729_v62, 0.0 }
 0x535   :  { %v5688_v35 = vpop.permute.xlu2 %1968  ;;  %7726 = vst [vmem:[#allocation85_spill] sm:$0xff] %v5696_v21  ;;  %v7736_v21 = vld [vmem:[#allocation41_spill] sm:$0xff] }
 0x536   :  { %7721 = vst [vmem:[#allocation84_spill] sm:$0xff] %v5688_v35  ;;  %v2142_v35 = vsel %vm2110_vm1, %v7733_v33, 0.0  ;;  %v2145_v62 = vsel %vm2113_vm3, %v7736_v21, 0.0  ;;  %vm2374_vm1 = vcmp.eq.s32.totalorder %v5096_v32, 4 }
 0x538   :  { %2007 = vperm.xlu0 %4229, %v1890_v13   ;;  %v7730_v13 = vld [vmem:[#allocation31_spill] sm:$0xff] }
 0x539   :  { %vm2367_vm14 = vcmp.eq.s32.totalorder %v7730_v13, 4 }
 0x53a   :  { %2476 = vperm.xlu1 %4230, %v2397_v50   ;;  %2231 = vperm.xlu2 %4228, %v2140_v1   ;;  %v2399_v56 = vsel %vm2367_vm14, %v7732_v44, 0.0  ;;  %vm2116_vm14 = vcmp.eq.s32.totalorder %v5100_v43, 3 }
 0x53c   :  { %v5708_v50 = vpop.permute.xlu1 %2207 }
 0x53d   :  { %v5698_v8 = vpop.permute.xlu2 %1974  ;;  %7735 = vst [vmem:[#allocation88_spill] sm:$0xff] %v5708_v50 }
 0x53e   :  { %7727 = vst [vmem:[#allocation86_spill] sm:$0xff] %v5698_v8 }
 0x540   :  { %2016 = vperm.xlu0 %4229, %v1893_v47   ;;  %v2402_v47 = vsel %vm2370_vm2, %v7685_v23, 0.0  ;;  %vm2119_vm2 = vcmp.eq.s32.totalorder %v7652_v38, 3 }
 0x542   :  { %2482 = vperm.xlu1 %4230, %v2399_v56   ;;  %2237 = vperm.xlu2 %4228, %v2142_v35   ;;  %v7738_v56 = vld [vmem:[#allocation51_spill] sm:$0xff]  ;;  %v7739_v35 = vld [vmem:[#allocation53_spill] sm:$0xff] }
 0x543   :  { %vm2372_vm13 = vcmp.eq.s32.totalorder %v7738_v56, 4 }
 0x544   :  { %v5716_v8 = vpop.permute.xlu1 %2213  ;;  %v2404_v50 = vsel %vm2372_vm13, %v7739_v35, 0.0  ;;  %v7742_v35 = vld [vmem:[#allocation66_spill] sm:$0xff] }
 0x545   :  { %v5706_v1 = vpop.permute.xlu2 %1983  ;;  %7737 = vst [vmem:[#allocation89_spill] sm:$0xff] %v5716_v8  ;;  %v2151_v8 = vsel %vm2119_vm2, %v7653_v12, 0.0  ;;  %vm2377_vm3 = vcmp.eq.s32.totalorder %v7742_v35, 4  ;;  %vm2358_vm2 = vcmp.eq.s32.totalorder %v7658_v61, 4 }
 0x546   :  { %7734 = vst [vmem:[#allocation87_spill] sm:$0xff] %v5706_v1  ;;  %v2148_v1 = vsel %vm2116_vm14, %v5106_v11, 0.0  ;;  %vm2125_vm14 = vcmp.eq.s32.totalorder %v7654_v3, 3 }
 0x54a   :  { %2491 = vperm.xlu1 %4230, %v2402_v47   ;;  %2246 = vperm.xlu2 %4228, %v2145_v62   ;;  %v7740_v62 = vld [vmem:[#allocation58_spill] sm:$0xff] }
 0x54b   :  { %v2406_v47 = vsel %vm2374_vm1, %v7740_v62, 0.0  ;;  %vm2380_vm1 = vcmp.eq.s32.totalorder %v5120_v48, 4 }
 0x54c   :  { %v5728_v23 = vpop.permute.xlu1 %2219 }
 0x54d   :  { %v5714_v51 = vpop.permute.xlu2 %1992  ;;  %7741 = vst [vmem:[#allocation90_spill] sm:$0xff] %v5728_v23 }
 0x552   :  { %2497 = vperm.xlu1 %4230, %v2404_v50   ;;  %2255 = vperm.xlu2 %4228, %v2148_v1   ;;  %v7743_v50 = vld [vmem:[#allocation19_spill] sm:$0xff]  ;;  %v7744_v1 = vld [vmem:[#allocation62_spill] sm:$0xff] }
 0x553   :  { %vm2122_vm13 = vcmp.eq.s32.totalorder %v7743_v50, 3  ;;  %v2409_v11 = vsel %vm2377_vm3, %v7744_v1, 0.0  ;;  %vm2383_vm3 = vcmp.eq.s32.totalorder %v7657_v22, 4 }
 0x554   :  { %v2154_v32 = vsel %vm2122_vm13, %v5144_v63, 0.0  ;;  %v5736_v38 = vpop.permute.xlu1 %2228  ;;  %vm2360_vm13 = vcmp.eq.s32.totalorder %v7692_v60, 4 }
 0x555   :  { %v5722_v7 = vpop.permute.xlu2 %2001  ;;  %7745 = vst [vmem:[#allocation91_spill] sm:$0xff] %v5736_v38 }
 0x55a   :  { %2503 = vperm.xlu1 %4230, %v2406_v47   ;;  %2264 = vperm.xlu2 %4228, %v2151_v8   ;;  %v2157_v8 = vsel %vm2125_vm14, %v7656_v28, 0.0  ;;  %v2412_v47 = vsel %vm2380_vm1, %v7655_v57, 0.0  ;;  %vm2386_vm14 = vcmp.eq.s32.totalorder %v7661_v31, 4  ;;  %vm2362_vm1 = vcmp.eq.s32.totalorder %v7697_v39, 4 }
 0x55c   :  { %v5746_v1 = vpop.permute.xlu1 %2234 }
 0x55d   :  { %v5730_v56 = vpop.permute.xlu2 %2010  ;;  %7747 = vst [vmem:[#allocation93_spill] sm:$0xff] %v5746_v1 }
 0x562   :  { %2512 = vperm.xlu1 %4230, %v2409_v11   ;;  %2273 = vperm.xlu2 %4228, %v2154_v32   ;;  %v2390_v32 = vsel %vm2358_vm2, %v7660_v46, 0.0  ;;  %v2415_v11 = vsel %vm2383_vm3, %v7659_v54, 0.0  ;;  %vm2389_vm2 = vcmp.eq.s32.totalorder %v7696_v19, 4  ;;  %vm2364_vm3 = vcmp.eq.s32.totalorder %v7704_v14, 4 }
 0x564   :  { %v5754_v48 = vpop.permute.xlu1 %2240 }
 0x565   :  { %v5738_v62 = vpop.permute.xlu2 %2019  ;;  %7749 = vst [vmem:[#allocation95_spill] sm:$0xff] %v5754_v48 }
 0x56a   :  { %2282 = vperm.xlu2 %4228, %v2157_v8   ;;  %2521 = vperm.xlu1 %4230, %v2412_v47   ;;  %v2392_v8 = vsel %vm2360_vm13, %v7694_v18, 0.0  ;;  %v2418_v47 = vsel %vm2386_vm14, %v7693_v15, 0.0  ;;  %vm2622_vm13 = vcmp.eq.s32.totalorder %v7703_v41, 5  ;;  %vm2366_vm14 = vcmp.eq.s32.totalorder %v7711_v30, 4 }
 0x56c   :  { %v5766_v48 = vpop.permute.xlu1 %2249 }
 0x56d   :  { %v5744_v23 = vpop.permute.xlu2 %2192  ;;  %7751 = vst [vmem:[#allocation97_spill] sm:$0xff] %v5766_v48 }
 0x56e   :  { %7746 = vst [vmem:[#allocation92_spill] sm:$0xff] %v5744_v23 }
 0x572   :  { %2455 = vperm.xlu2 %4228, %v2390_v32   ;;  %2530 = vperm.xlu1 %4230, %v2415_v11   ;;  %v2394_v32 = vsel %vm2362_vm1, %v7699_v29, 0.0  ;;  %v2421_v11 = vsel %vm2389_vm2, %v7698_v6, 0.0  ;;  %vm2624_vm1 = vcmp.eq.s32.totalorder %v7710_v0, 5  ;;  %vm2369_vm2 = vcmp.eq.s32.totalorder %v7718_v52, 4 }
 0x574   :  { %v5776_v6 = vpop.permute.xlu1 %2258 }
 0x575   :  { %v5752_v38 = vpop.permute.xlu2 %2198  ;;  %7754 = vst [vmem:[#allocation100_spill] sm:$0xff] %v5776_v6 }
 0x576   :  { %7748 = vst [vmem:[#allocation94_spill] sm:$0xff] %v5752_v38 }
 0x577   :  { %v5768_v38 = vpop.xlane.xlu0 %1826 }
 0x578   :  { %7752 = vst [vmem:[#allocation98_spill] sm:$0xff] %v5768_v38 }
 0x57a   :  { %2461 = vperm.xlu2 %4228, %v2392_v8   ;;  %2539 = vperm.xlu1 %4230, %v2418_v47   ;;  %v2396_v8 = vsel %vm2364_vm3, %v7706_v42, 0.0  ;;  %v2654_v47 = vsel %vm2622_vm13, %v7705_v53, 0.0  ;;  %vm2626_vm3 = vcmp.eq.s32.totalorder %v7717_v24, 5  ;;  %vm2371_vm13 = vcmp.eq.s32.totalorder %v7678_v34, 4 }
 0x57b   :  { %v2658_v6 = vsel %vm2626_vm3, %v4941_v4, 0.0  ;;  %vm2376_vm3 = vcmp.eq.s32.totalorder %v5000_v49, 4 }
 0x57d   :  { %v5760_v1 = vpop.permute.xlu2 %2204 }
 0x57e   :  { %7750 = vst [vmem:[#allocation96_spill] sm:$0xff] %v5760_v1 }
 0x582   :  { %2467 = vperm.xlu2 %4228, %v2394_v32   ;;  %2548 = vperm.xlu1 %4230, %v2421_v11   ;;  %v2398_v32 = vsel %vm2366_vm14, %v7713_v2, 0.0  ;;  %v2656_v11 = vsel %vm2624_vm1, %v7712_v59, 0.0  ;;  %vm2628_vm14 = vcmp.eq.s32.totalorder %v5049_v20, 5  ;;  %vm2373_vm1 = vcmp.eq.s32.totalorder %v7731_v36, 4  ;;  %v7762_v20 = vld [vmem:[#allocation69_spill] sm:$0xff]  ;;  %v7763_v36 = vld [vmem:[#allocation71_spill] sm:$0xff] }
 0x585   :  { %v5770_v23 = vpop.permute.xlu2 %2210 }
 0x586   :  { %7753 = vst [vmem:[#allocation99_spill] sm:$0xff] %v5770_v23 }
 0x58a   :  { %2473 = vperm.xlu2 %4228, %v2396_v8   ;;  %2721 = vperm.xlu1 %4230, %v2654_v47   ;;  %v1966_v1 = vpop.permute.xlu0 %1965  ;;  %v5786_v8 = vpop.permute.xlu1 %2267  ;;  %v2401_v47 = vsel %vm2369_vm2, %v7719_v25, 0.0  ;;  %vm2630_vm2 = vcmp.eq.s32.totalorder %v7730_v13, 5  ;;  %v2034_v13 = vperm.slane %v5658_v58, %v5287_v17  ;;  %v7766_v58 = vld [vmem:[#allocation74_spill] sm:$0xff] }
 0x58b   :  { %7757 = vst [vmem:[#allocation103_spill] sm:$0xff] %v5786_v8  ;;  %v2660_v8 = vsel %vm2628_vm14, %v7724_v55, 0.0  ;;  %v2029_v55 = vperm.slane %v7762_v20, %v5293_v10  ;;  %v2045_v4 = vperm.slane %v1966_v1, %v7651_v40  ;;  %v2027_v20 = vperm.slane %v5642_v9, %v5287_v17  ;;  %v7767_v1 = vld [vmem:[#allocation82_spill] sm:$0xff]  ;;  %v7769_v9 = vld [vmem:[#allocation75_spill] sm:$0xff] }
 0x58c   :  { %v2043_v59 = vperm.slane %v7766_v58, %v5293_v10  ;;  %v2041_v53 = vperm.slane %v7767_v1, %v5287_v17  ;;  %v2048_v19 = vperm.slane %v7769_v9, %v5287_v17  ;;  %v2408_v58 = vsel %vm2376_vm3, %v7736_v21, 0.0  ;;  %v7771_v21 = vld [vmem:[#allocation87_spill] sm:$0xff] }
 0x58d   :  { %v5778_v48 = vpop.permute.xlu2 %2216  ;;  %vm2379_vm14 = vcmp.eq.s32.totalorder %v5100_v43, 4 }
 0x58e   :  { %7755 = vst [vmem:[#allocation101_spill] sm:$0xff] %v5778_v48 }
 0x592   :  { %2479 = vperm.xlu2 %4228, %v2398_v32   ;;  %2727 = vperm.xlu1 %4230, %v2656_v11   ;;  %v1981_v38 = vpop.permute.xlu0 %1980  ;;  %v5794_v32 = vpop.permute.xlu1 %2276  ;;  %v2403_v11 = vsel %vm2371_vm13, %v7725_v45, 0.0  ;;  %vm2633_vm13 = vcmp.eq.s32.totalorder %v7684_v5, 5 }
 0x593   :  { %7759 = vst [vmem:[#allocation105_spill] sm:$0xff] %v5794_v32  ;;  %v7761_v32 = vld [vmem:[#allocation2_spill] sm:$0xff] }
 0x595   :  { %v5784_v23 = vpop.permute.xlu2 %2225 }
 0x596   :  { %7756 = vst [vmem:[#allocation102_spill] sm:$0xff] %v5784_v23 }
 0x59a   :  { %2488 = vperm.xlu2 %4228, %v2401_v47   ;;  %2733 = vperm.xlu1 %4230, %v2658_v6   ;;  %v1990_v48 = vpop.permute.xlu0 %1989  ;;  %v2405_v47 = vsel %vm2373_vm1, %v7733_v33, 0.0  ;;  %v2024_v33 = vperm.slane %v5634_v27, %v7651_v40  ;;  %v7765_v27 = vld [vmem:[#allocation73_spill] sm:$0xff]  ;;  %v5843_v31 = vpop.permute.xlu1 %2285 }
 0x59b   :  { %v2059_v54 = vperm.slane %v1990_v48, %v7651_v40 }
 0x59d   :  { %v5792_v0 = vpop.permute.xlu2 %2231 }
 0x59e   :  { %7758 = vst [vmem:[#allocation104_spill] sm:$0xff] %v5792_v0  ;;  %v2025_v0 = vperm.slane %v7761_v32, %v5281_v26  ;;  %v7764_v32 = vld [vmem:[#allocation72_spill] sm:$0xff] }
 0x59f   :  { %v2036_v24 = vperm.slane %v7764_v32, %v5293_v10  ;;  %v7768_v32 = vld [vmem:[#allocation84_spill] sm:$0xff] }
 0x5a0   :  { %v2046_v41 = vperm.slane %v7768_v32, %v5281_v26  ;;  %v2026_v1 = vsel %vm1488_vm0, %v2025_v0, %v2024_v33  ;;  %v2055_v33 = vperm.slane %v7771_v21, %v5287_v17 }
 0x5a2   :  { %2494 = vperm.xlu2 %4228, %v2403_v11   ;;  %2739 = vperm.xlu1 %4230, %v2660_v8   ;;  %v5800_v23 = vpop.permute.xlu0 %1998  ;;  %v2031_v8 = vperm.slane %v5650_v37, %v7651_v40  ;;  %v2662_v11 = vsel %vm2630_vm2, %v7732_v44, 0.0  ;;  %v2038_v37 = vperm.slane %v5668_v16, %v7651_v40  ;;  %v2053_v44 = vperm.slane %v1981_v38, %v5281_v26  ;;  %v7770_v16 = vld [vmem:[#allocation76_spill] sm:$0xff] }
 0x5a3   :  { %v2052_v38 = vperm.slane %v7770_v16, %v7651_v40  ;;  %v2047_v9 = vsel %vm1488_vm0, %v2046_v41, %v2045_v4  ;;  %v2028_v16 = vsel %vm1492_vm6, %v2027_v20, %v2026_v1  ;;  %v7772_v41 = vld [vmem:[#allocation77_spill] sm:$0xff]  ;;  %v7774_v20 = vld [vmem:[#allocation86_spill] sm:$0xff] }
 0x5a4   :  { %v2057_v0 = vperm.slane %v7772_v41, %v5293_v10  ;;  %v2050_v21 = vperm.slane %v7774_v20, %v5293_v10  ;;  %v2030_v1 = vsel %vm1496_vm5, %v2029_v55, %v2028_v16  ;;  %v7777_v16 = vld [vmem:[#allocation80_spill] sm:$0xff]  ;;  %v2076_v41 = vperm.slane %v5738_v62, %v5287_v17 }
 0x5a5   :  { %v5803_v6 = vpop.permute.xlu2 %2237 }
 0x5a6   :  { %7760 = vst [vmem:[#allocation106_spill] sm:$0xff] %v5803_v6  ;;  %v2032_v6 = vperm.slane %v7763_v36, %v5281_v26  ;;  %v2039_v36 = vperm.slane %v7765_v27, %v5281_v26 }
 0x5a8   :  { %v2033_v15 = vsel %vm1488_vm0, %v2032_v6, %v2031_v8  ;;  %v2040_v6 = vsel %vm1488_vm0, %v2039_v36, %v2038_v37  ;;  %v2054_v8 = vsel %vm1488_vm0, %v2053_v44, %v2052_v38  ;;  %v2064_v36 = vperm.slane %v5800_v23, %v5293_v10  ;;  %v7775_v38 = vld [vmem:[#allocation78_spill] sm:$0xff] }
 0x5a9   :  { %v2035_v32 = vsel %vm1492_vm6, %v2034_v13, %v2033_v15  ;;  %v2060_v15 = vperm.slane %v5714_v51, %v5281_v26  ;;  %v7773_v13 = vld [vmem:[#allocation79_spill] sm:$0xff]  ;;  %v2056_v37 = vsel %vm1492_vm6, %v2055_v33, %v2054_v8  ;;  %v2071_v23 = vperm.slane %v5730_v56, %v5293_v10  ;;  %v5899_v56 = vpop.permute.xlu1 %2458 }
 0x5aa   :  { %2500 = vperm.xlu2 %4228, %v2405_v47   ;;  %2745 = vperm.xlu1 %4230, %v2662_v11   ;;  %v2008_v27 = vpop.permute.xlu0 %2007  ;;  %v2066_v47 = vperm.slane %v5722_v7, %v7651_v40  ;;  %v2042_v11 = vsel %vm1492_vm6, %v2041_v53, %v2040_v6  ;;  %v2067_v7 = vperm.slane %v7773_v13, %v5281_v26  ;;  %v7776_v8 = vld [vmem:[#allocation35_spill] sm:$0xff]  ;;  %v7779_v13 = vld [vmem:[#allocation81_spill] sm:$0xff] }
 0x5ab   :  { %v2069_v4 = vperm.slane %v2008_v27, %v5287_v17  ;;  %v2037_v44 = vsel %vm1496_vm5, %v2036_v24, %v2035_v32  ;;  %v2049_v53 = vsel %vm1492_vm6, %v2048_v19, %v2047_v9  ;;  %v2061_v51 = vsel %vm1488_vm0, %v2060_v15, %v2059_v54  ;;  %7778 = vst [vmem:[#allocation2_spill] sm:$0xff] %v5899_v56 }
 0x5ac   :  { %v2062_v27 = vperm.slane %v7775_v38, %v5287_v17  ;;  %v2044_v6 = vsel %vm1496_vm5, %v2043_v59, %v2042_v11  ;;  %v2068_v24 = vsel %vm1488_vm0, %v2067_v7, %v2066_v47  ;;  %v2080_v19 = vsel %vm1547_vm7, %v2037_v44, %v2030_v1 }
 0x5ad   :  { %v5863_v48 = vpop.permute.xlu2 %2246  ;;  %v2051_v32 = vsel %vm1496_vm5, %v2050_v21, %v2049_v53  ;;  %v2070_v9 = vsel %vm1492_vm6, %v2069_v4, %v2068_v24  ;;  %v2665_v54 = vsel %vm2633_vm13, %v7776_v8, 0.0  ;;  %v2058_v33 = vsel %vm1496_vm5, %v2057_v0, %v2056_v37 }
 0x5ae   :  { %v2063_v55 = vsel %vm1492_vm6, %v2062_v27, %v2061_v51  ;;  %v2073_v47 = vperm.slane %v7777_v16, %v7651_v40  ;;  %v2081_v11 = vsel %vm1549_vm4, %v2044_v6, %v2080_v19  ;;  %v2072_v0 = vsel %vm1496_vm5, %v2071_v23, %v2070_v9  ;;  %v7781_v27 = vld [vmem:[#allocation65_spill] sm:$0xff]  ;;  %v7785_v23 = vld [vmem:[#allocation54_spill] sm:$0xff] }
 0x5af   :  { %v2065_v15 = vsel %vm1496_vm5, %v2064_v36, %v2063_v55  ;;  %v2078_v7 = vperm.slane %v7779_v13, %v5293_v10  ;;  %v7780_v36 = vld [vmem:[#allocation51_spill] sm:$0xff]  ;;  %v2411_v1 = vsel %vm2379_vm14, %v7781_v27, 0.0  ;;  %v7782_v6 = vld [vmem:[#allocation53_spill] sm:$0xff]  ;;  %vm2638_vm3 = vcmp.eq.s32.totalorder %v7785_v23, 5  ;;  %v7786_v55 = vld [vmem:[#allocation56_spill] sm:$0xff] }
 0x5b0   :  { %vm2635_vm1 = vcmp.eq.s32.totalorder %v7780_v36, 5  ;;  %vm2385_vm13 = vcmp.eq.s32.totalorder %v7743_v50, 4  ;;  %v7791_v13 = vld [vmem:[#allocation32_spill] sm:$0xff] }
 0x5b1   :  { %v2667_v24 = vsel %vm2635_vm1, %v7782_v6, 0.0  ;;  %v5921_v9 = vpop.permute.xlu1 %2464 }
 0x5b2   :  { %2509 = vperm.xlu2 %4228, %v2408_v58   ;;  %2754 = vperm.xlu1 %4230, %v2665_v54   ;;  %v2017_v59 = vpop.permute.xlu0 %2016  ;;  %v2082_v58 = vsel %vm1551_vm15, %v2051_v32, %v2081_v11  ;;  %7783 = vst [vmem:[#allocation69_spill] sm:$0xff] %v5921_v9  ;;  %v7784_v54 = vld [vmem:[#allocation8_spill] sm:$0xff]  ;;  %v7788_v11 = vld [vmem:[#allocation57_spill] sm:$0xff]  ;;  %v7832_v9 = vld [vmem:[#allocation18_spill] sm:$0xff] }
 0x5b3   :  { %v2074_v4 = vperm.slane %v2017_v59, %v5281_v26  ;;  %v2083_v20 = vsel %vm1553_vm8, %v2058_v33, %v2082_v58  ;;  %vm2382_vm2 = vcmp.eq.s32.totalorder %v7784_v54, 4  ;;  %v2670_v59 = vsel %vm2638_vm3, %v7786_v55, 0.0  ;;  %v7790_v58 = vld [vmem:[#allocation55_spill] sm:$0xff]  ;;  %v7817_v54 = vld [vmem:[#allocation62_spill] sm:$0xff] }
 0x5b4   :  { %v2084_v37 = vsel %vm1555_vm9, %v2065_v15, %v2083_v20  ;;  %v2414_v33 = vsel %vm2382_vm2, %v7653_v12, 0.0  ;;  %vm2641_vm14 = vcmp.eq.s32.totalorder %v7788_v11, 5  ;;  %v2417_v15 = vsel %vm2385_vm13, %v5144_v63, 0.0  ;;  %v7814_v12 = vld [vmem:[#allocation58_spill] sm:$0xff] }
 0x5b5   :  { %v2075_v44 = vsel %vm1488_vm0, %v2074_v4, %v2073_v47  ;;  %v5906_v53 = vpop.permute.xlu2 %2255  ;;  %v2085_v51 = vsel %vm1557_vm11, %v2072_v0, %v2084_v37  ;;  %v7789_v4 = vld [vmem:[#allocation60_spill] sm:$0xff]  ;;  %vm2105_vm1 = vcmp.eq.s32.totalorder %v7790_v58, 3  ;;  %vm2388_vm2 = vcmp.eq.s32.totalorder %v7654_v3, 4 }
 0x5b6   :  { %v2077_v21 = vsel %vm1492_vm6, %v2076_v41, %v2075_v44  ;;  %v2673_v41 = vsel %vm2641_vm14, %v7789_v4, 0.0  ;;  %v7792_v44 = vld [vmem:[#allocation61_spill] sm:$0xff]  ;;  %v2420_v20 = vsel %vm2388_vm2, %v7656_v28, 0.0  ;;  %vm2112_vm13 = vcmp.eq.s32.totalorder %v7785_v23, 3 }
 0x5b7   :  { %v2079_v62 = vsel %vm1496_vm5, %v2078_v7, %v2077_v21  ;;  %v2137_v7 = vsel %vm2105_vm1, %v7791_v13, 0.0  ;;  %vm2644_vm3 = vcmp.eq.s32.totalorder %v7792_v44, 5  ;;  %v7793_v21 = vld [vmem:[#allocation44_spill] sm:$0xff]  ;;  %vm2621_vm14 = vcmp.eq.s32.totalorder %v7658_v61, 5 }
 0x5b8   :  { %v2086_v38 = vsel %vm1559_vm12, %v2079_v62, %v2085_v51  ;;  %v2676_v37 = vsel %vm2644_vm3, %v7793_v21, 0.0  ;;  %vm2115_vm2 = vcmp.eq.s32.totalorder %v7788_v11, 3  ;;  %vm2623_vm3 = vcmp.eq.s32.totalorder %v7692_v60, 5 }
 0x5b9   :  { %v2088_v19 = vsel %vm85_vm10, %v2086_v38, 0.0  ;;  %v5929_v47 = vpop.permute.xlu1 %2470  ;;  %v2144_v38 = vsel %vm2112_vm13, %v7786_v55, 0.0 }
 0x5ba   :  { %2518 = vperm.xlu2 %4228, %v2411_v1   ;;  %2760 = vperm.xlu1 %4230, %v2667_v24   ;;  %7787 = vst [vmem:[#allocation71_spill] sm:$0xff] %v5929_v47  ;;  %v7796_v1 = vld [vmem:[#allocation4_spill] sm:$0xff]  ;;  %v2653_v24 = vsel %vm2621_vm14, %v7660_v46, 0.0  ;;  %vm2118_vm14 = vcmp.eq.s32.totalorder %v7792_v44, 3 }
 0x5bb   :  { %2089 = vadd.xlane.f32.xlu0 %v2088_v19  ;;  %vm2647_vm1 = vcmp.eq.s32.totalorder %v7796_v1, 5  ;;  %v7797_v19 = vld [vmem:[#allocation68_spill] sm:$0xff]  ;;  %v2150_v63 = vsel %vm2118_vm14, %v7793_v21, 0.0  ;;  %vm2629_vm14 = vcmp.eq.s32.totalorder %v7711_v30, 5 }
 0x5bc   :  { %v2661_v3 = vsel %vm2629_vm14, %v7713_v2, 0.0 }
 0x5bd   :  { %v5919_v32 = vpop.permute.xlu2 %2264 }
 0x5c1   :  { %v5943_v62 = vpop.permute.xlu1 %2476 }
 0x5c2   :  { %2527 = vperm.xlu2 %4228, %v2414_v33   ;;  %2769 = vperm.xlu1 %4230, %v2670_v59   ;;  %7794 = vst [vmem:[#allocation72_spill] sm:$0xff] %v5943_v62  ;;  %v2679_v33 = vsel %vm2647_vm1, %v7797_v19, 0.0  ;;  %vm2625_vm1 = vcmp.eq.s32.totalorder %v7697_v39, 5 }
 0x5c5   :  { %v5927_v16 = vpop.permute.xlu2 %2273 }
 0x5c9   :  { %v5953_v59 = vpop.permute.xlu1 %2482 }
 0x5ca   :  { %2536 = vperm.xlu2 %4228, %v2417_v15   ;;  %2778 = vperm.xlu1 %4230, %v2673_v41   ;;  %7798 = vst [vmem:[#allocation74_spill] sm:$0xff] %v5953_v59  ;;  %v2147_v41 = vsel %vm2115_vm2, %v7789_v4, 0.0  ;;  %vm2121_vm2 = vcmp.eq.s32.totalorder %v7796_v1, 3 }
 0x5cd   :  { %v5935_v0 = vpop.permute.xlu2 %2282 }
 0x5cf   :  { %2222 = vperm.xlu0 %4229, %v2137_v7   ;;  %v7800_v7 = vld [vmem:[#allocation12_spill] sm:$0xff] }
 0x5d0   :  { %vm2650_vm13 = vcmp.eq.s32.totalorder %v7800_v7, 5 }
 0x5d2   :  { %2545 = vperm.xlu2 %4228, %v2420_v20   ;;  %2787 = vperm.xlu1 %4230, %v2676_v37   ;;  %v2655_v20 = vsel %vm2623_vm3, %v7694_v18, 0.0  ;;  %v7801_v37 = vld [vmem:[#allocation6_spill] sm:$0xff]  ;;  %vm2627_vm3 = vcmp.eq.s32.totalorder %v7704_v14, 5  ;;  %v7837_v14 = vld [vmem:[#allocation52_spill] sm:$0xff] }
 0x5d3   :  { %v2659_v28 = vsel %vm2627_vm3, %v7706_v42, 0.0 }
 0x5d5   :  { %v5945_v51 = vpop.permute.xlu2 %2455 }
 0x5d6   :  { %7795 = vst [vmem:[#allocation73_spill] sm:$0xff] %v5945_v51 }
 0x5d7   :  { %2243 = vperm.xlu0 %4229, %v2144_v38   ;;  %v2682_v38 = vsel %vm2650_vm13, %v7801_v37, 0.0  ;;  %vm2124_vm13 = vcmp.eq.s32.totalorder %v7800_v7, 3 }
 0x5da   :  { %2718 = vperm.xlu2 %4228, %v2653_v24   ;;  %2796 = vperm.xlu1 %4230, %v2679_v33   ;;  %v5966_v33 = vpop.permute.xlu1 %2491 }
 0x5db   :  { %7803 = vst [vmem:[#allocation75_spill] sm:$0xff] %v5966_v33 }
 0x5dd   :  { %v5955_v15 = vpop.permute.xlu2 %2461 }
 0x5de   :  { %7799 = vst [vmem:[#allocation82_spill] sm:$0xff] %v5955_v15 }
 0x5df   :  { %2252 = vperm.xlu0 %4229, %v2147_v41   ;;  %v2657_v41 = vsel %vm2625_vm1, %v7699_v29, 0.0  ;;  %vm2632_vm1 = vcmp.eq.s32.totalorder %v7718_v52, 5 }
 0x5e2   :  { %2724 = vperm.xlu2 %4228, %v2655_v20   ;;  %2805 = vperm.xlu1 %4230, %v2682_v38   ;;  %v2153_v20 = vsel %vm2121_vm2, %v7797_v19, 0.0  ;;  %v5975_v38 = vpop.permute.xlu1 %2497  ;;  %vm2634_vm2 = vcmp.eq.s32.totalorder %v7678_v34, 5 }
 0x5e3   :  { %7805 = vst [vmem:[#allocation87_spill] sm:$0xff] %v5975_v38 }
 0x5e5   :  { %v5963_v24 = vpop.permute.xlu2 %2467 }
 0x5e6   :  { %7802 = vst [vmem:[#allocation84_spill] sm:$0xff] %v5963_v24  ;;  %v7834_v24 = vld [vmem:[#allocation25_spill] sm:$0xff] }
 0x5e7   :  { %2261 = vperm.xlu0 %4229, %v2150_v63  }
 0x5ea   :  { %2730 = vperm.xlu2 %4228, %v2657_v41   ;;  %v2156_v41 = vsel %vm2124_vm13, %v7801_v37, 0.0  ;;  %v5985_v49 = vpop.permute.xlu1 %2503  ;;  %vm2640_vm13 = vcmp.eq.s32.totalorder %v7742_v35, 5 }
 0x5eb   :  { %7807 = vst [vmem:[#allocation79_spill] sm:$0xff] %v5985_v49  ;;  %v2672_v34 = vsel %vm2640_vm13, %v7817_v54, 0.0 }
 0x5ed   :  { %v5971_v50 = vpop.permute.xlu2 %2473 }
 0x5ee   :  { %7804 = vst [vmem:[#allocation76_spill] sm:$0xff] %v5971_v50 }
 0x5ef   :  { %2270 = vperm.xlu0 %4229, %v2153_v20  }
 0x5f2   :  { %2736 = vperm.xlu2 %4228, %v2659_v28   ;;  %v2664_v28 = vsel %vm2632_vm1, %v7719_v25, 0.0  ;;  %v5991_v18 = vpop.permute.xlu1 %2512  ;;  %vm2646_vm1 = vcmp.eq.s32.totalorder %v7657_v22, 5 }
 0x5f3   :  { %7809 = vst [vmem:[#allocation78_spill] sm:$0xff] %v5991_v18 }
 0x5f5   :  { %v5979_v63 = vpop.permute.xlu2 %2479 }
 0x5f6   :  { %7806 = vst [vmem:[#allocation77_spill] sm:$0xff] %v5979_v63  ;;  %v7833_v63 = vld [vmem:[#allocation40_spill] sm:$0xff] }
 0x5f7   :  { %2279 = vperm.xlu0 %4229, %v2156_v41   ;;  %v2666_v41 = vsel %vm2634_vm2, %v7725_v45, 0.0 }
 0x5fa   :  { %2742 = vperm.xlu2 %4228, %v2661_v3   ;;  %v5999_v30 = vpop.permute.xlu1 %2521  ;;  %v7813_v3 = vld [vmem:[#allocation63_spill] sm:$0xff] }
 0x5fb   :  { %7812 = vst [vmem:[#allocation51_spill] sm:$0xff] %v5999_v30  ;;  %vm2637_vm3 = vcmp.eq.s32.totalorder %v7813_v3, 5 }
 0x5fc   :  { %v2669_v52 = vsel %vm2637_vm3, %v7814_v12, 0.0 }
 0x5fd   :  { %v5987_v20 = vpop.permute.xlu2 %2488 }
 0x5fe   :  { %7808 = vst [vmem:[#allocation86_spill] sm:$0xff] %v5987_v20 }
 0x602   :  { %2751 = vperm.xlu2 %4228, %v2664_v28   ;;  %v6005_v28 = vpop.permute.xlu1 %2530 }
 0x603   :  { %7816 = vst [vmem:[#allocation54_spill] sm:$0xff] %v6005_v28 }
 0x605   :  { %v5993_v60 = vpop.permute.xlu2 %2494 }
 0x606   :  { %7810 = vst [vmem:[#allocation80_spill] sm:$0xff] %v5993_v60  ;;  %v7830_v60 = vld [vmem:[#allocation13_spill] sm:$0xff] }
 0x60a   :  { %2757 = vperm.xlu2 %4228, %v2666_v41   ;;  %v7819_v41 = vld [vmem:[#allocation3_spill] sm:$0xff]  ;;  %v6013_v18 = vpop.permute.xlu1 %2539 }
 0x60b   :  { %vm2643_vm14 = vcmp.eq.s32.totalorder %v7819_v41, 5  ;;  %7820 = vst [vmem:[#allocation55_spill] sm:$0xff] %v6013_v18 }
 0x60c   :  { %v2675_v30 = vsel %vm2643_vm14, %v7655_v57, 0.0  ;;  %vm2887_vm14 = vcmp.eq.s32.totalorder %v7833_v63, 6 }
 0x60d   :  { %v5997_v2 = vpop.permute.xlu2 %2500 }
 0x60e   :  { %7811 = vst [vmem:[#allocation81_spill] sm:$0xff] %v5997_v2 }
 0x612   :  { %2766 = vperm.xlu2 %4228, %v2669_v52   ;;  %v7822_v52 = vld [vmem:[#allocation16_spill] sm:$0xff] }
 0x613   :  { %v2678_v28 = vsel %vm2646_vm1, %v7822_v52, 0.0 }
 0x615   :  { %v6003_v25 = vpop.permute.xlu2 %2509 }
 0x616   :  { %7815 = vst [vmem:[#allocation53_spill] sm:$0xff] %v6003_v25  ;;  %v6019_v25 = vpop.permute.xlu1 %2548 }
 0x617   :  { %7823 = vst [vmem:[#allocation107_spill] sm:$0xff] %v6019_v25  ;;  %v7831_v25 = vld [vmem:[#allocation17_spill] sm:$0xff] }
 0x618   :  { %vm2885_vm13 = vcmp.eq.s32.totalorder %v7831_v25, 6 }
 0x619   :  { %v2917_v59 = vsel %vm2885_vm13, %v7832_v9, 0.0  ;;  %vm2896_vm13 = vcmp.eq.s32.totalorder %v7684_v5, 6 }
 0x61a   :  { %2775 = vperm.xlu2 %4228, %v2672_v34   ;;  %v7825_v34 = vld [vmem:[#allocation7_spill] sm:$0xff] }
 0x61b   :  { %vm2649_vm2 = vcmp.eq.s32.totalorder %v7825_v34, 5 }
 0x61d   :  { %v6009_v45 = vpop.permute.xlu2 %2518 }
 0x61e   :  { %7818 = vst [vmem:[#allocation56_spill] sm:$0xff] %v6009_v45  ;;  %v7826_v45 = vld [vmem:[#allocation11_spill] sm:$0xff]  ;;  %v2722_v18 = vpop.permute.xlu1 %2721 }
 0x61f   :  { %v2681_v38 = vsel %vm2649_vm2, %v7826_v45, 0.0  ;;  %vm2891_vm2 = vcmp.eq.s32.totalorder %v7837_v14, 6 }
 0x622   :  { %2784 = vperm.xlu2 %4228, %v2675_v30   ;;  %v7828_v30 = vld [vmem:[#allocation21_spill] sm:$0xff] }
 0x623   :  { %vm2652_vm3 = vcmp.eq.s32.totalorder %v7828_v30, 5 }
 0x624   :  { %v2684_v49 = vsel %vm2652_vm3, %v7830_v60, 0.0 }
 0x625   :  { %v6015_v2 = vpop.permute.xlu2 %2527 }
 0x626   :  { %7821 = vst [vmem:[#allocation32_spill] sm:$0xff] %v6015_v2  ;;  %v2728_v62 = vpop.permute.xlu1 %2727 }
 0x62a   :  { %2793 = vperm.xlu2 %4228, %v2678_v28  }
 0x62d   :  { %v6021_v20 = vpop.permute.xlu2 %2536 }
 0x62e   :  { %7824 = vst [vmem:[#allocation108_spill] sm:$0xff] %v6021_v20  ;;  %v6028_v2 = vpop.xlane.xlu0 %2089  ;;  %v2734_v27 = vpop.permute.xlu1 %2733 }
 0x62f   :  { %7829 = vst [vmem:[#allocation11_spill] sm:$0xff] %v6028_v2  ;;  %v2818_v2 = vperm.slane %v2728_v62, %v5293_v10 }
 0x632   :  { %2802 = vperm.xlu2 %4228, %v2681_v38  }
 0x635   :  { %v6025_v33 = vpop.permute.xlu2 %2545 }
 0x636   :  { %7827 = vst [vmem:[#allocation7_spill] sm:$0xff] %v6025_v33  ;;  %v2814_v33 = vperm.slane %v2722_v18, %v5281_v26  ;;  %v7835_v18 = vld [vmem:[#allocation43_spill] sm:$0xff] }
 0x637   :  { %vm2889_vm1 = vcmp.eq.s32.totalorder %v7835_v18, 6 }
 0x63a   :  { %2811 = vperm.xlu2 %4228, %v2684_v49  }
 0x63d   :  { %v2719_v28 = vpop.permute.xlu2 %2718 }
 0x63e   :  { %v2813_v38 = vperm.slane %v2719_v28, %v7651_v40 }
 0x640   :  { %v2815_v47 = vsel %vm1488_vm0, %v2814_v33, %v2813_v38  ;;  %v2740_v33 = vpop.permute.xlu1 %2739 }
 0x641   :  { %v2223_v20 = vpop.permute.xlu0 %2222  ;;  %v2825_v38 = vperm.slane %v2740_v33, %v5293_v10  ;;  %v7841_v33 = vld [vmem:[#allocation92_spill] sm:$0xff] }
 0x642   :  { %2984 = vperm.xlu2 %4228, %v2917_v59   ;;  %v2919_v59 = vsel %vm2887_vm14, %v7834_v24, 0.0  ;;  %vm2898_vm14 = vcmp.eq.s32.totalorder %v7780_v36, 6 }
 0x645   :  { %v2725_v56 = vpop.permute.xlu2 %2724 }
 0x646   :  { %v2816_v15 = vperm.slane %v2725_v56, %v5287_v17  ;;  %v7836_v56 = vld [vmem:[#allocation28_spill] sm:$0xff] }
 0x647   :  { %v2921_v42 = vsel %vm2889_vm1, %v7836_v56, 0.0  ;;  %v7849_v56 = vld [vmem:[#allocation33_spill] sm:$0xff]  ;;  %vm2900_vm1 = vcmp.eq.s32.totalorder %v7813_v3, 6 }
 0x648   :  { %v2817_v49 = vsel %vm1492_vm6, %v2816_v15, %v2815_v47  ;;  %v2821_v47 = vperm.slane %v2734_v27, %v5281_v26  ;;  %v7840_v27 = vld [vmem:[#allocation96_spill] sm:$0xff] }
 0x649   :  { %v2819_v50 = vsel %vm1496_vm5, %v2818_v2, %v2817_v49  ;;  %v2244_v51 = vpop.permute.xlu0 %2243 }
 0x64a   :  { %2990 = vperm.xlu2 %4228, %v2919_v59  }
 0x64d   :  { %v2731_v28 = vpop.permute.xlu2 %2730 }
 0x64e   :  { %v2820_v62 = vperm.slane %v2731_v28, %v7651_v40 }
 0x650   :  { %v2822_v49 = vsel %vm1488_vm0, %v2821_v47, %v2820_v62  ;;  %v2287_v62 = vperm.slane %v7841_v33, %v7651_v40  ;;  %v7842_v47 = vld [vmem:[#allocation99_spill] sm:$0xff]  ;;  %v7848_v33 = vld [vmem:[#allocation90_spill] sm:$0xff] }
 0x651   :  { %v2253_v43 = vpop.permute.xlu0 %2252  ;;  %v2302_v14 = vperm.slane %v7848_v33, %v5281_v26 }
 0x652   :  { %2996 = vperm.xlu2 %4228, %v2921_v42   ;;  %v7838_v42 = vld [vmem:[#allocation30_spill] sm:$0xff] }
 0x653   :  { %v2923_v28 = vsel %vm2891_vm2, %v7838_v42, 0.0  ;;  %v7845_v42 = vld [vmem:[#allocation94_spill] sm:$0xff]  ;;  %vm2903_vm2 = vcmp.eq.s32.totalorder %v7742_v35, 6 }
 0x655   :  { %v2737_v15 = vpop.permute.xlu2 %2736 }
 0x656   :  { %v2823_v2 = vperm.slane %v2737_v15, %v5287_v17  ;;  %v2294_v15 = vperm.slane %v7840_v27, %v7651_v40  ;;  %v7847_v27 = vld [vmem:[#allocation83_spill] sm:$0xff] }
 0x658   :  { %v2824_v59 = vsel %vm1492_vm6, %v2823_v2, %v2822_v49  ;;  %v2297_v2 = vperm.slane %v7842_v47, %v5287_v17  ;;  %v7843_v49 = vld [vmem:[#allocation101_spill] sm:$0xff]  ;;  %v2316_v47 = vperm.slane %v2244_v51, %v5281_v26 }
 0x659   :  { %v2826_v29 = vsel %vm1496_vm5, %v2825_v38, %v2824_v59  ;;  %v6052_v39 = vpop.permute.xlu0 %2261  ;;  %v2301_v38 = vperm.slane %v7843_v49, %v7651_v40  ;;  %v7844_v59 = vld [vmem:[#allocation88_spill] sm:$0xff] }
 0x65a   :  { %v6056_v46 = vsel %vm1547_vm7, %v2826_v29, %v2819_v50  ;;  %3002 = vperm.xlu2 %4228, %v2923_v28   ;;  %v2295_v61 = vperm.slane %v7844_v59, %v5281_v26  ;;  %v2290_v29 = vperm.slane %v7845_v42, %v5287_v17  ;;  %v2304_v50 = vperm.slane %v2223_v20, %v5287_v17  ;;  %v7846_v28 = vld [vmem:[#allocation31_spill] sm:$0xff]  ;;  %v7850_v59 = vld [vmem:[#allocation85_spill] sm:$0xff] }
 0x65b   :  { %7839 = vst [vmem:[#allocation109_spill] sm:$0xff] %v6056_v46  ;;  %vm2893_vm3 = vcmp.eq.s32.totalorder %v7846_v28, 6  ;;  %v2288_v46 = vperm.slane %v7847_v27, %v5281_v26  ;;  %v2292_v18 = vperm.slane %v7850_v59, %v5293_v10  ;;  %v7851_v42 = vld [vmem:[#allocation89_spill] sm:$0xff]  ;;  %v7852_v28 = vld [vmem:[#allocation95_spill] sm:$0xff]  ;;  %v2303_v51 = vsel %vm1488_vm0, %v2302_v14, %v2301_v38 }
 0x65c   :  { %v2925_v49 = vsel %vm2893_vm3, %v7849_v56, 0.0  ;;  %v2299_v20 = vperm.slane %v7851_v42, %v5293_v10  ;;  %v2315_v24 = vperm.slane %v7852_v28, %v7651_v40  ;;  %v2296_v27 = vsel %vm1488_vm0, %v2295_v61, %v2294_v15  ;;  %v7853_v56 = vld [vmem:[#allocation104_spill] sm:$0xff]  ;;  %v7854_v59 = vld [vmem:[#allocation91_spill] sm:$0xff]  ;;  %v7855_v61 = vld [vmem:[#allocation93_spill] sm:$0xff] }
 0x65d   :  { %v2289_v63 = vsel %vm1488_vm0, %v2288_v46, %v2287_v62  ;;  %v2298_v33 = vsel %vm1492_vm6, %v2297_v2, %v2296_v27  ;;  %v2309_v37 = vperm.slane %v7853_v56, %v5281_v26  ;;  %v2308_v9 = vperm.slane %v7854_v59, %v7651_v40  ;;  %v7856_v15 = vld [vmem:[#allocation102_spill] sm:$0xff] }
 0x65e   :  { %v2291_v42 = vsel %vm1492_vm6, %v2290_v29, %v2289_v63  ;;  %v2305_v25 = vsel %vm1492_vm6, %v2304_v50, %v2303_v51  ;;  %v2322_v28 = vperm.slane %v2253_v43, %v7651_v40  ;;  %v2311_v46 = vperm.slane %v7855_v61, %v5287_v17  ;;  %v7857_v50 = vld [vmem:[#allocation103_spill] sm:$0xff] }
 0x65f   :  { %v2306_v14 = vperm.slane %v7856_v15, %v5293_v10  ;;  %v2329_v56 = vperm.slane %v5919_v32, %v7651_v40  ;;  %v2317_v62 = vsel %vm1488_vm0, %v2316_v47, %v2315_v24  ;;  %v2300_v2 = vsel %vm1496_vm5, %v2299_v20, %v2298_v33  ;;  %v7858_v24 = vld [vmem:[#allocation106_spill] sm:$0xff]  ;;  %v7860_v33 = vld [vmem:[#allocation100_spill] sm:$0xff] }
 0x660   :  { %v2318_v63 = vperm.slane %v5863_v48, %v5287_v17  ;;  %v2323_v43 = vperm.slane %v5906_v53, %v5281_v26  ;;  %v2293_v29 = vsel %vm1496_vm5, %v2292_v18, %v2291_v42  ;;  %v2310_v27 = vsel %vm1488_vm0, %v2309_v37, %v2308_v9 }
 0x661   :  { %v2271_v7 = vpop.permute.xlu0 %2270  ;;  %v2307_v32 = vsel %vm1496_vm5, %v2306_v14, %v2305_v25  ;;  %v2313_v47 = vperm.slane %v7858_v24, %v5293_v10  ;;  %v2327_v53 = vperm.slane %v6052_v39, %v5293_v10  ;;  %v2325_v51 = vperm.slane %v7860_v33, %v5287_v17 }
 0x662   :  { %3008 = vperm.xlu2 %4228, %v2925_v49   ;;  %v2332_v38 = vperm.slane %v2271_v7, %v5287_v17  ;;  %v2330_v49 = vperm.slane %v7857_v50, %v5281_v26  ;;  %v2319_v20 = vsel %vm1492_vm6, %v2318_v63, %v2317_v62  ;;  %v2324_v48 = vsel %vm1488_vm0, %v2323_v43, %v2322_v28  ;;  %v7859_v7 = vld [vmem:[#allocation97_spill] sm:$0xff] }
 0x663   :  { %v2320_v18 = vperm.slane %v7859_v7, %v5293_v10  ;;  %v2343_v9 = vsel %vm1547_vm7, %v2300_v2, %v2293_v29  ;;  %v2928_v42 = vsel %vm2896_vm13, %v7776_v8, 0.0  ;;  %v2312_v39 = vsel %vm1492_vm6, %v2311_v46, %v2310_v27 }
 0x664   :  { %v2331_v25 = vsel %vm1488_vm0, %v2330_v49, %v2329_v56  ;;  %v2344_v37 = vsel %vm1549_vm4, %v2307_v32, %v2343_v9  ;;  %v2334_v28 = vperm.slane %v5927_v16, %v5293_v10  ;;  %v2326_v15 = vsel %vm1492_vm6, %v2325_v51, %v2324_v48  ;;  %v7861_v56 = vld [vmem:[#allocation105_spill] sm:$0xff] }
 0x665   :  { %v2333_v59 = vsel %vm1492_vm6, %v2332_v38, %v2331_v25  ;;  %v2321_v61 = vsel %vm1496_vm5, %v2320_v18, %v2319_v20  ;;  %v2336_v62 = vperm.slane %v7861_v56, %v7651_v40  ;;  %v2314_v2 = vsel %vm1496_vm5, %v2313_v47, %v2312_v39  ;;  %v7862_v39 = vld [vmem:[#allocation17_spill] sm:$0xff] }
 0x666   :  { %v2328_v63 = vsel %vm1496_vm5, %v2327_v53, %v2326_v15  ;;  %v2339_v46 = vperm.slane %v5935_v0, %v5287_v17  ;;  %v2335_v16 = vsel %vm1496_vm5, %v2334_v28, %v2333_v59  ;;  %v2345_v38 = vsel %vm1551_vm15, %v2314_v2, %v2344_v37  ;;  %v7863_v28 = vld [vmem:[#allocation18_spill] sm:$0xff]  ;;  %v7864_v15 = vld [vmem:[#allocation12_spill] sm:$0xff]  ;;  %v7867_v2 = vld [vmem:[#allocation25_spill] sm:$0xff] }
 0x667   :  { %v2341_v29 = vperm.slane %v5843_v31, %v5293_v10  ;;  %v2346_v49 = vsel %vm1553_vm8, %v2321_v61, %v2345_v38  ;;  %v2930_v31 = vsel %vm2898_vm14, %v7782_v6, 0.0  ;;  %v2932_v48 = vsel %vm2900_vm1, %v7814_v12, 0.0  ;;  %v7870_v38 = vld [vmem:[#allocation52_spill] sm:$0xff] }
 0x668   :  { %v2347_v32 = vsel %vm1555_vm9, %v2328_v63, %v2346_v49  ;;  %v2935_v53 = vsel %vm2903_vm2, %v7817_v54, 0.0  ;;  %vm2368_vm3 = vcmp.eq.s32.totalorder %v7790_v58, 4  ;;  %vm2906_vm13 = vcmp.eq.s32.totalorder %v7819_v41, 6  ;;  %v7872_v49 = vld [vmem:[#allocation31_spill] sm:$0xff] }
 0x669   :  { %v2280_v14 = vpop.permute.xlu0 %2279  ;;  %v2348_v47 = vsel %vm1557_vm11, %v2335_v16, %v2347_v32  ;;  %v2400_v7 = vsel %vm2368_vm3, %v7791_v13, 0.0  ;;  %v2938_v18 = vsel %vm2906_vm13, %v7655_v57, 0.0  ;;  %vm2375_vm14 = vcmp.eq.s32.totalorder %v7785_v23, 4 }
 0x66a   :  { %v2337_v43 = vperm.slane %v2280_v14, %v5281_v26  ;;  %3017 = vperm.xlu2 %4228, %v2928_v42   ;;  %v2407_v33 = vsel %vm2375_vm14, %v7786_v55, 0.0  ;;  %vm2909_vm1 = vcmp.eq.s32.totalorder %v7657_v22, 6  ;;  %vm2378_vm2 = vcmp.eq.s32.totalorder %v7788_v11, 4  ;;  %v7865_v14 = vld [vmem:[#allocation6_spill] sm:$0xff] }
 0x66b   :  { %v2941_v51 = vsel %vm2909_vm1, %v7822_v52, 0.0  ;;  %v2410_v9 = vsel %vm2378_vm2, %v7789_v4, 0.0  ;;  %vm2912_vm3 = vcmp.eq.s32.totalorder %v7825_v34, 6  ;;  %vm2381_vm13 = vcmp.eq.s32.totalorder %v7792_v44, 4  ;;  %v7890_v22 = vld [vmem:[#allocation82_spill] sm:$0xff] }
 0x66c   :  { %v2338_v50 = vsel %vm1488_vm0, %v2337_v43, %v2336_v62  ;;  %v2944_v25 = vsel %vm2912_vm3, %v7826_v45, 0.0  ;;  %v2413_v37 = vsel %vm2381_vm13, %v7793_v21, 0.0  ;;  %vm2915_vm14 = vcmp.eq.s32.totalorder %v7828_v30, 6  ;;  %v7866_v62 = vld [vmem:[#allocation40_spill] sm:$0xff]  ;;  %v7868_v43 = vld [vmem:[#allocation43_spill] sm:$0xff] }
 0x66d   :  { %v2340_v27 = vsel %vm1492_vm6, %v2339_v46, %v2338_v50  ;;  %v2947_v59 = vsel %vm2915_vm14, %v7830_v60, 0.0  ;;  %vm2384_vm1 = vcmp.eq.s32.totalorder %v7796_v1, 4  ;;  %vm3148_vm2 = vcmp.eq.s32.totalorder %v7862_v39, 7  ;;  %v7869_v46 = vld [vmem:[#allocation28_spill] sm:$0xff] }
 0x66e   :  { %v2342_v24 = vsel %vm1496_vm5, %v2341_v29, %v2340_v27  ;;  %v2416_v42 = vsel %vm2384_vm1, %v7797_v19, 0.0  ;;  %v3180_v61 = vsel %vm3148_vm2, %v7863_v28, 0.0  ;;  %vm2387_vm3 = vcmp.eq.s32.totalorder %v7864_v15, 4  ;;  %v7871_v29 = vld [vmem:[#allocation30_spill] sm:$0xff]  ;;  %v7873_v27 = vld [vmem:[#allocation33_spill] sm:$0xff] }
 0x66f   :  { %v2349_v0 = vsel %vm1559_vm12, %v2342_v24, %v2348_v47  ;;  %v2419_v56 = vsel %vm2387_vm3, %v7865_v14, 0.0  ;;  %vm3150_vm13 = vcmp.eq.s32.totalorder %v7866_v62, 7  ;;  %vm3152_vm14 = vcmp.eq.s32.totalorder %v7868_v43, 7  ;;  %v7874_v47 = vld [vmem:[#allocation36_spill] sm:$0xff] }
 0x670   :  { %v2351_v20 = vsel %vm85_vm10, %v2349_v0, 0.0  ;;  %v3182_v63 = vsel %vm3150_vm13, %v7867_v2, 0.0  ;;  %v3184_v16 = vsel %vm3152_vm14, %v7869_v46, 0.0  ;;  %vm3154_vm1 = vcmp.eq.s32.totalorder %v7870_v38, 7  ;;  %v7875_v0 = vld [vmem:[#allocation23_spill] sm:$0xff]  ;;  %v7893_v38 = vld [vmem:[#allocation69_spill] sm:$0xff] }
 0x671   :  { %2352 = vadd.xlane.f32.xlu0 %v2351_v20  ;;  %v3186_v50 = vsel %vm3154_vm1, %v7871_v29, 0.0  ;;  %vm3156_vm2 = vcmp.eq.s32.totalorder %v7872_v49, 7  ;;  %vm3159_vm3 = vcmp.eq.s32.totalorder %v7684_v5, 7  ;;  %vm3410_vm13 = vcmp.eq.s32.totalorder %v7874_v47, 8  ;;  %v7894_v14 = vld [vmem:[#allocation72_spill] sm:$0xff] }
 0x672   :  { %3023 = vperm.xlu2 %4228, %v2930_v31   ;;  %v3188_v32 = vsel %vm3156_vm2, %v7873_v27, 0.0  ;;  %v3191_v24 = vsel %vm3159_vm3, %v7776_v8, 0.0  ;;  %v3442_v20 = vsel %vm3410_vm13, %v7875_v0, 0.0  ;;  %v7876_v31 = vld [vmem:[#allocation49_spill] sm:$0xff]  ;;  %vm3163_vm1 = vcmp.eq.s32.totalorder %v7813_v3, 7 }
 0x673   :  { %vm3414_vm14 = vcmp.eq.s32.totalorder %v7876_v31, 8  ;;  %v2553_v54 = vperm.slane %v7890_v22, %v5287_v17  ;;  %v2562_v22 = vperm.slane %v7894_v14, %v5293_v10 }
 0x67a   :  { %3029 = vperm.xlu2 %4228, %v2932_v48   ;;  %v7877_v48 = vld [vmem:[#allocation26_spill] sm:$0xff] }
 0x682   :  { %3038 = vperm.xlu2 %4228, %v2935_v53   ;;  %v3446_v53 = vsel %vm3414_vm14, %v7877_v48, 0.0  ;;  %vm3420_vm14 = vcmp.eq.s32.totalorder %v7790_v58, 8 }
 0x685   :  { %2485 = vperm.xlu0 %4229, %v2400_v7   ;;  %v3195_v7 = vsel %vm3163_vm1, %v7814_v12, 0.0  ;;  %vm3673_vm1 = vcmp.eq.s32.totalorder %v7874_v47, 9  ;;  %v7888_v12 = vld [vmem:[#allocation77_spill] sm:$0xff] }
 0x686   :  { %v2564_v3 = vperm.slane %v7888_v12, %v7651_v40 }
 0x68a   :  { %3047 = vperm.xlu2 %4228, %v2938_v18  }
 0x68d   :  { %2506 = vperm.xlu0 %4229, %v2407_v33   ;;  %v7879_v33 = vld [vmem:[#allocation27_spill] sm:$0xff] }
 0x68e   :  { %vm3416_vm2 = vcmp.eq.s32.totalorder %v7879_v33, 8 }
 0x692   :  { %3056 = vperm.xlu2 %4228, %v2941_v51   ;;  %v7880_v51 = vld [vmem:[#allocation29_spill] sm:$0xff] }
 0x695   :  { %2515 = vperm.xlu0 %4229, %v2410_v9   ;;  %v3448_v9 = vsel %vm3416_vm2, %v7880_v51, 0.0  ;;  %vm3678_vm2 = vcmp.eq.s32.totalorder %v7868_v43, 9 }
 0x696   :  { %v3710_v12 = vsel %vm3678_vm2, %v7869_v46, 0.0  ;;  %vm2631_vm2 = vcmp.eq.s32.totalorder %v7790_v58, 5 }
 0x69a   :  { %3065 = vperm.xlu2 %4228, %v2944_v25  }
 0x69d   :  { %2524 = vperm.xlu0 %4229, %v2413_v37   ;;  %v7881_v37 = vld [vmem:[#allocation38_spill] sm:$0xff] }
 0x69e   :  { %vm3162_vm3 = vcmp.eq.s32.totalorder %v7881_v37, 7 }
 0x6a2   :  { %3074 = vperm.xlu2 %4228, %v2947_v59   ;;  %v7882_v59 = vld [vmem:[#allocation39_spill] sm:$0xff] }
 0x6a5   :  { %2533 = vperm.xlu0 %4229, %v2416_v42   ;;  %v3194_v42 = vsel %vm3162_vm3, %v7882_v59, 0.0 }
 0x6aa   :  { %3247 = vperm.xlu2 %4228, %v3180_v61  }
 0x6ad   :  { %2542 = vperm.xlu0 %4229, %v2419_v56   ;;  %v7883_v56 = vld [vmem:[#allocation64_spill] sm:$0xff] }
 0x6ae   :  { %vm3168_vm13 = vcmp.eq.s32.totalorder %v7883_v56, 7 }
 0x6b2   :  { %3253 = vperm.xlu2 %4228, %v3182_v63   ;;  %v7884_v63 = vld [vmem:[#allocation65_spill] sm:$0xff] }
 0x6ba   :  { %3259 = vperm.xlu2 %4228, %v3184_v16   ;;  %v3200_v16 = vsel %vm3168_vm13, %v7884_v63, 0.0  ;;  %vm3424_vm13 = vcmp.eq.s32.totalorder %v7780_v36, 8 }
 0x6c2   :  { %3265 = vperm.xlu2 %4228, %v3186_v50  }
 0x6ca   :  { %3271 = vperm.xlu2 %4228, %v3188_v32   ;;  %v3452_v32 = vsel %vm3420_vm14, %v7791_v13, 0.0 }
 0x6d2   :  { %3280 = vperm.xlu2 %4228, %v3191_v24  }
 0x6da   :  { %3507 = vperm.xlu2 %4228, %v3442_v20   ;;  %v3705_v20 = vsel %vm3673_vm1, %v7875_v0, 0.0  ;;  %vm3682_vm1 = vcmp.eq.s32.totalorder %v7872_v49, 9 }
 0x6e2   :  { %3519 = vperm.xlu2 %4228, %v3446_v53   ;;  %v7885_v53 = vld [vmem:[#allocation84_spill] sm:$0xff] }
 0x6e4   :  { %v6199_v18 = vpop.xlane.xlu0 %2352 }
 0x6e5   :  { %7878 = vst [vmem:[#allocation96_spill] sm:$0xff] %v6199_v18 }
 0x6ea   :  { %3292 = vperm.xlu2 %4228, %v3195_v7   ;;  %v2557_v7 = vperm.slane %v7885_v53, %v7651_v40 }
 0x6f2   :  { %3525 = vperm.xlu2 %4228, %v3448_v9   ;;  %v7886_v9 = vld [vmem:[#allocation73_spill] sm:$0xff] }
 0x6f7   :  { %v2486_v25 = vpop.permute.xlu0 %2485 }
 0x6f8   :  { %v2567_v35 = vperm.slane %v2486_v25, %v5287_v17  ;;  %v7895_v25 = vld [vmem:[#allocation79_spill] sm:$0xff] }
 0x6f9   :  { %v2578_v15 = vperm.slane %v7895_v25, %v7651_v40 }
 0x6fa   :  { %3289 = vperm.xlu2 %4228, %v3194_v42   ;;  %v2550_v42 = vperm.slane %v7886_v9, %v7651_v40  ;;  %v7892_v9 = vld [vmem:[#allocation74_spill] sm:$0xff] }
 0x6fb   :  { %v2565_v29 = vperm.slane %v7892_v9, %v5281_v26 }
 0x6fd   :  { %v2566_v9 = vsel %vm1488_vm0, %v2565_v29, %v2564_v3  ;;  %v7900_v3 = vld [vmem:[#allocation32_spill] sm:$0xff] }
 0x6fe   :  { %v2568_v44 = vsel %vm1492_vm6, %v2567_v35, %v2566_v9  ;;  %v2592_v29 = vperm.slane %v7900_v3, %v7651_v40  ;;  %v7902_v35 = vld [vmem:[#allocation56_spill] sm:$0xff] }
 0x6ff   :  { %v2507_v61 = vpop.permute.xlu0 %2506 }
 0x702   :  { %3307 = vperm.xlu2 %4228, %v3200_v16   ;;  %v7887_v16 = vld [vmem:[#allocation76_spill] sm:$0xff] }
 0x703   :  { %v2560_v18 = vperm.slane %v7887_v16, %v5287_v17  ;;  %v2579_v16 = vperm.slane %v2507_v61, %v5281_v26  ;;  %v7896_v61 = vld [vmem:[#allocation80_spill] sm:$0xff] }
 0x704   :  { %v2572_v46 = vperm.slane %v7896_v61, %v5281_v26  ;;  %v7901_v61 = vld [vmem:[#allocation53_spill] sm:$0xff] }
 0x707   :  { %v2516_v50 = vpop.permute.xlu0 %2515 }
 0x708   :  { %v2585_v25 = vperm.slane %v2516_v50, %v7651_v40 }
 0x70a   :  { %3537 = vperm.xlu2 %4228, %v3452_v32   ;;  %v7889_v32 = vld [vmem:[#allocation71_spill] sm:$0xff] }
 0x70b   :  { %v2558_v52 = vperm.slane %v7889_v32, %v5281_v26  ;;  %v2555_v32 = vperm.slane %v7893_v38, %v5293_v10  ;;  %v7897_v38 = vld [vmem:[#allocation75_spill] sm:$0xff] }
 0x70c   :  { %v2571_v21 = vperm.slane %v7897_v38, %v7651_v40  ;;  %v7903_v38 = vld [vmem:[#allocation54_spill] sm:$0xff] }
 0x70d   :  { %v2559_v43 = vsel %vm1488_vm0, %v2558_v52, %v2557_v7  ;;  %v7898_v52 = vld [vmem:[#allocation87_spill] sm:$0xff] }
 0x70e   :  { %v2561_v19 = vsel %vm1492_vm6, %v2560_v18, %v2559_v43  ;;  %v2574_v7 = vperm.slane %v7898_v52, %v5287_v17  ;;  %v7899_v43 = vld [vmem:[#allocation86_spill] sm:$0xff]  ;;  %v2593_v52 = vperm.slane %v7903_v38, %v5281_v26 }
 0x70f   :  { %v2525_v24 = vpop.permute.xlu0 %2524  ;;  %v2569_v18 = vperm.slane %v7899_v43, %v5293_v10  ;;  %v2573_v43 = vsel %vm1488_vm0, %v2572_v46, %v2571_v21 }
 0x710   :  { %v2594_v21 = vsel %vm1488_vm0, %v2593_v52, %v2592_v29 }
 0x712   :  { %3770 = vperm.xlu2 %4228, %v3705_v20   ;;  %v7891_v20 = vld [vmem:[#allocation2_spill] sm:$0xff] }
 0x713   :  { %v2551_v53 = vperm.slane %v7891_v20, %v5281_v26 }
 0x715   :  { %v2552_v20 = vsel %vm1488_vm0, %v2551_v53, %v2550_v42  ;;  %v2580_v42 = vsel %vm1488_vm0, %v2579_v16, %v2578_v15  ;;  %v2563_v53 = vsel %vm1496_vm5, %v2562_v22, %v2561_v19  ;;  %v2570_v15 = vsel %vm1496_vm5, %v2569_v18, %v2568_v44  ;;  %v7904_v19 = vld [vmem:[#allocation81_spill] sm:$0xff]  ;;  %v7907_v18 = vld [vmem:[#allocation8_spill] sm:$0xff] }
 0x716   :  { %v2554_v14 = vsel %vm1492_vm6, %v2553_v54, %v2552_v20  ;;  %v2581_v54 = vperm.slane %v7901_v61, %v5287_v17  ;;  %v2586_v20 = vperm.slane %v7902_v35, %v5281_v26  ;;  %v2576_v16 = vperm.slane %v7904_v19, %v5293_v10 }
 0x717   :  { %v2534_v1 = vpop.permute.xlu0 %2533  ;;  %v2556_v9 = vsel %vm1496_vm5, %v2555_v32, %v2554_v14  ;;  %v2590_v61 = vperm.slane %v2525_v24, %v5293_v10  ;;  %v7906_v32 = vld [vmem:[#allocation51_spill] sm:$0xff]  ;;  %vm3171_vm3 = vcmp.eq.s32.totalorder %v7907_v18, 7  ;;  %v7908_v24 = vld [vmem:[#allocation108_spill] sm:$0xff] }
 0x718   :  { %v2595_v50 = vperm.slane %v2534_v1, %v5287_v17  ;;  %v2582_v22 = vsel %vm1492_vm6, %v2581_v54, %v2580_v42  ;;  %v2587_v3 = vsel %vm1488_vm0, %v2586_v20, %v2585_v25  ;;  %v7905_v1 = vld [vmem:[#allocation78_spill] sm:$0xff]  ;;  %v2588_v14 = vperm.slane %v7906_v32, %v5287_v17 }
 0x719   :  { %v2606_v35 = vsel %vm1547_vm7, %v2563_v53, %v2556_v9  ;;  %v2575_v25 = vsel %vm1492_vm6, %v2574_v7, %v2573_v43  ;;  %v2597_v42 = vperm.slane %v7908_v24, %v5293_v10  ;;  %v7909_v53 = vld [vmem:[#allocation55_spill] sm:$0xff]  ;;  %v7911_v43 = vld [vmem:[#allocation5_spill] sm:$0xff]  ;;  %v7913_v24 = vld [vmem:[#allocation46_spill] sm:$0xff] }
 0x71a   :  { %3785 = vperm.xlu2 %4228, %v3710_v12   ;;  %v2583_v12 = vperm.slane %v7905_v1, %v5293_v10  ;;  %v2607_v44 = vsel %vm1549_vm4, %v2570_v15, %v2606_v35  ;;  %v2596_v46 = vsel %vm1492_vm6, %v2595_v50, %v2594_v21  ;;  %v2589_v20 = vsel %vm1492_vm6, %v2588_v14, %v2587_v3  ;;  %v7910_v15 = vld [vmem:[#allocation7_spill] sm:$0xff] }
 0x71b   :  { %v2599_v9 = vperm.slane %v7909_v53, %v7651_v40  ;;  %v2577_v29 = vsel %vm1496_vm5, %v2576_v16, %v2575_v25  ;;  %v2591_v52 = vsel %vm1496_vm5, %v2590_v61, %v2589_v20  ;;  %v2602_v7 = vperm.slane %v7910_v15, %v5287_v17  ;;  %v7912_v3 = vld [vmem:[#allocation107_spill] sm:$0xff] }
 0x71c   :  { %v2584_v54 = vsel %vm1496_vm5, %v2583_v12, %v2582_v22  ;;  %v3203_v19 = vsel %vm3171_vm3, %v7911_v43, 0.0  ;;  %v2598_v1 = vsel %vm1496_vm5, %v2597_v42, %v2596_v46  ;;  %v2608_v22 = vsel %vm1551_vm15, %v2577_v29, %v2607_v44  ;;  %v7914_v42 = vld [vmem:[#allocation24_spill] sm:$0xff]  ;;  %v7915_v29 = vld [vmem:[#allocation42_spill] sm:$0xff] }
 0x71d   :  { %v2604_v12 = vperm.slane %v7912_v3, %v5293_v10  ;;  %v2609_v16 = vsel %vm1553_vm8, %v2584_v54, %v2608_v22  ;;  %v3456_v25 = vsel %vm3424_vm13, %v7782_v6, 0.0  ;;  %vm3675_vm14 = vcmp.eq.s32.totalorder %v7913_v24, 9 }
 0x71e   :  { %v2610_v14 = vsel %vm1555_vm9, %v2591_v52, %v2609_v16  ;;  %v3707_v54 = vsel %vm3675_vm14, %v7914_v42, 0.0  ;;  %v3714_v20 = vsel %vm3682_vm1, %v7873_v27, 0.0  ;;  %vm3175_vm3 = vcmp.eq.s32.totalorder %v7825_v34, 7  ;;  %v7916_v52 = vld [vmem:[#allocation41_spill] sm:$0xff]  ;;  %v7917_v16 = vld [vmem:[#allocation20_spill] sm:$0xff] }
 0x71f   :  { %v2543_v38 = vpop.permute.xlu0 %2542  ;;  %v2611_v21 = vsel %vm1557_vm11, %v2598_v1, %v2610_v14  ;;  %v3207_v53 = vsel %vm3175_vm3, %v7826_v45, 0.0  ;;  %vm2636_vm13 = vcmp.eq.s32.totalorder %v7881_v37, 5  ;;  %vm3428_vm14 = vcmp.eq.s32.totalorder %v7915_v29, 8 }
 0x720   :  { %v2600_v50 = vperm.slane %v2543_v38, %v5281_v26  ;;  %v2663_v38 = vsel %vm2631_vm2, %v7791_v13, 0.0  ;;  %vm2639_vm1 = vcmp.eq.s32.totalorder %v7915_v29, 5  ;;  %vm3676_vm2 = vcmp.eq.s32.totalorder %v7866_v62, 9 }
 0x721   :  { %v2671_v15 = vsel %vm2639_vm1, %v7916_v52, 0.0  ;;  %vm2642_vm3 = vcmp.eq.s32.totalorder %v7883_v56, 5  ;;  %vm3177_vm1 = vcmp.eq.s32.totalorder %v7917_v16, 7 }
 0x722   :  { %v2601_v32 = vsel %vm1488_vm0, %v2600_v50, %v2599_v9  ;;  %3316 = vperm.xlu2 %4228, %v3203_v19   ;;  %v2668_v9 = vsel %vm2636_vm13, %v7882_v59, 0.0  ;;  %v3460_v50 = vsel %vm3428_vm14, %v7916_v52, 0.0  ;;  %v3708_v19 = vsel %vm3676_vm2, %v7867_v2, 0.0 }
 0x723   :  { %v2603_v61 = vsel %vm1492_vm6, %v2602_v7, %v2601_v32  ;;  %v6321_v7 = vpop.permute.xlu2 %2742  ;;  %v2674_v1 = vsel %vm2642_vm3, %v7884_v63, 0.0  ;;  %vm3685_vm13 = vcmp.eq.s32.totalorder %v7684_v5, 9  ;;  %vm2645_vm14 = vcmp.eq.s32.totalorder %v7907_v18, 5  ;;  %v7926_v5 = vld [vmem:[#allocation37_spill] sm:$0xff] }
 0x724   :  { %v2605_v35 = vsel %vm1496_vm5, %v2604_v12, %v2603_v61  ;;  %v3717_v3 = vsel %vm3685_vm13, %v7776_v8, 0.0  ;;  %v2677_v12 = vsel %vm2645_vm14, %v7911_v43, 0.0  ;;  %v7918_v61 = vld [vmem:[#allocation67_spill] sm:$0xff]  ;;  %vm3434_vm3 = vcmp.eq.s32.totalorder %v7907_v18, 8 }
 0x725   :  { %v2612_v46 = vsel %vm1559_vm12, %v2605_v35, %v2611_v21  ;;  %v3209_v14 = vsel %vm3177_vm1, %v7918_v61, 0.0  ;;  %v7919_v35 = vld [vmem:[#allocation19_spill] sm:$0xff]  ;;  %v7920_v21 = vld [vmem:[#allocation10_spill] sm:$0xff]  ;;  %vm2651_vm13 = vcmp.eq.s32.totalorder %v7917_v16, 5  ;;  %vm3687_vm14 = vcmp.eq.s32.totalorder %v7780_v36, 9 }
 0x726   :  { %v2614_v44 = vsel %vm85_vm10, %v2612_v46, 0.0  ;;  %vm2648_vm2 = vcmp.eq.s32.totalorder %v7919_v35, 5  ;;  %vm2884_vm1 = vcmp.eq.s32.totalorder %v7874_v47, 6 }
 0x727   :  { %2615 = vadd.xlane.f32.xlu0 %v2614_v44  ;;  %v2680_v46 = vsel %vm2648_vm2, %v7920_v21, 0.0  ;;  %vm3178_vm2 = vcmp.eq.s32.totalorder %v7828_v30, 7 }
 0x72a   :  { %3549 = vperm.xlu2 %4228, %v3456_v25   ;;  %v3466_v25 = vsel %vm3434_vm3, %v7911_v43, 0.0  ;;  %vm2886_vm3 = vcmp.eq.s32.totalorder %v7913_v24, 6 }
 0x72b   :  { %v6327_v22 = vpop.permute.xlu2 %2751 }
 0x732   :  { %3776 = vperm.xlu2 %4228, %v3707_v54   ;;  %v2683_v54 = vsel %vm2651_vm13, %v7918_v61, 0.0  ;;  %vm3438_vm13 = vcmp.eq.s32.totalorder %v7825_v34, 8 }
 0x733   :  { %v6333_v32 = vpop.permute.xlu2 %2757 }
 0x73a   :  { %3797 = vperm.xlu2 %4228, %v3714_v20   ;;  %v3719_v20 = vsel %vm3687_vm14, %v7782_v6, 0.0  ;;  %vm2888_vm14 = vcmp.eq.s32.totalorder %v7876_v31, 6 }
 0x73b   :  { %2748 = vperm.xlu0 %4229, %v2663_v38   ;;  %v6340_v44 = vpop.permute.xlu2 %2766  ;;  %v2916_v38 = vsel %vm2884_vm1, %v7875_v0, 0.0  ;;  %vm3691_vm1 = vcmp.eq.s32.totalorder %v7915_v29, 9 }
 0x742   :  { %3328 = vperm.xlu2 %4228, %v3207_v53  }
 0x743   :  { %2763 = vperm.xlu0 %4229, %v2668_v9   ;;  %v6349_v53 = vpop.permute.xlu2 %2775  ;;  %v3210_v9 = vsel %vm3178_vm2, %v7830_v60, 0.0  ;;  %vm2890_vm2 = vcmp.eq.s32.totalorder %v7879_v33, 6 }
 0x74a   :  { %3561 = vperm.xlu2 %4228, %v3460_v50   ;;  %v2918_v50 = vsel %vm2886_vm3, %v7914_v42, 0.0  ;;  %vm3437_vm3 = vcmp.eq.s32.totalorder %v7919_v35, 8 }
 0x74b   :  { %2772 = vperm.xlu0 %4229, %v2671_v15   ;;  %v6355_v15 = vpop.permute.xlu2 %2784 }
 0x752   :  { %3779 = vperm.xlu2 %4228, %v3708_v19   ;;  %v3470_v19 = vsel %vm3438_vm13, %v7826_v45, 0.0 }
 0x753   :  { %2781 = vperm.xlu0 %4229, %v2674_v1   ;;  %v2920_v1 = vsel %vm2888_vm14, %v7877_v48, 0.0  ;;  %vm3695_vm14 = vcmp.eq.s32.totalorder %v7819_v41, 9 }
 0x75a   :  { %3806 = vperm.xlu2 %4228, %v3717_v3   ;;  %v6361_v3 = vpop.permute.xlu2 %2793 }
 0x75b   :  { %2790 = vperm.xlu0 %4229, %v2677_v12   ;;  %v3723_v12 = vsel %vm3691_vm1, %v7916_v52, 0.0 }
 0x762   :  { %3334 = vperm.xlu2 %4228, %v3209_v14   ;;  %v2922_v14 = vsel %vm2890_vm2, %v7880_v51, 0.0  ;;  %vm3441_vm2 = vcmp.eq.s32.totalorder %v7828_v30, 8 }
 0x763   :  { %2799 = vperm.xlu0 %4229, %v2680_v46   ;;  %v6368_v46 = vpop.permute.xlu2 %2802 }
 0x76a   :  { %3579 = vperm.xlu2 %4228, %v3466_v25   ;;  %v3469_v25 = vsel %vm3437_vm3, %v7920_v21, 0.0 }
 0x76b   :  { %2808 = vperm.xlu0 %4229, %v2683_v54   ;;  %v7921_v54 = vld [vmem:[#allocation45_spill] sm:$0xff] }
 0x76c   :  { %vm2892_vm13 = vcmp.eq.s32.totalorder %v7921_v54, 6 }
 0x772   :  { %3812 = vperm.xlu2 %4228, %v3719_v20   ;;  %v7922_v20 = vld [vmem:[#allocation47_spill] sm:$0xff] }
 0x773   :  { %2981 = vperm.xlu0 %4229, %v2916_v38   ;;  %v2924_v38 = vsel %vm2892_vm13, %v7922_v20, 0.0  ;;  %vm3701_vm13 = vcmp.eq.s32.totalorder %v7825_v34, 9 }
 0x77a   :  { %3337 = vperm.xlu2 %4228, %v3210_v9   ;;  %v6373_v9 = vpop.permute.xlu1 %2745 }
 0x77b   :  { %2987 = vperm.xlu0 %4229, %v2918_v50   ;;  %v3727_v50 = vsel %vm3695_vm14, %v7655_v57, 0.0  ;;  %vm2899_vm14 = vcmp.eq.s32.totalorder %v7881_v37, 6 }
 0x782   :  { %3591 = vperm.xlu2 %4228, %v3470_v19   ;;  %v7923_v19 = vld [vmem:[#allocation48_spill] sm:$0xff]  ;;  %v2755_v8 = vpop.permute.xlu1 %2754 }
 0x783   :  { %2993 = vperm.xlu0 %4229, %v2920_v1   ;;  %vm2895_vm1 = vcmp.eq.s32.totalorder %v7923_v19, 6  ;;  %v7924_v1 = vld [vmem:[#allocation50_spill] sm:$0xff] }
 0x78a   :  { %3824 = vperm.xlu2 %4228, %v3723_v12   ;;  %v2927_v12 = vsel %vm2895_vm1, %v7924_v1, 0.0  ;;  %vm3703_vm1 = vcmp.eq.s32.totalorder %v7917_v16, 9 }
 0x78b   :  { %2999 = vperm.xlu0 %4229, %v2922_v14   ;;  %v6379_v14 = vpop.permute.xlu2 %2811 }
 0x792   :  { %3588 = vperm.xlu2 %4228, %v3469_v25   ;;  %v3473_v25 = vsel %vm3441_vm2, %v7830_v60, 0.0  ;;  %v2931_v60 = vsel %vm2899_vm14, %v7882_v59, 0.0  ;;  %vm2902_vm2 = vcmp.eq.s32.totalorder %v7915_v29, 6  ;;  %vm2911_vm14 = vcmp.eq.s32.totalorder %v7919_v35, 6 }
 0x793   :  { %3005 = vperm.xlu0 %4229, %v2924_v38   ;;  %v7925_v38 = vld [vmem:[#allocation59_spill] sm:$0xff]  ;;  %v6385_v62 = vpop.permute.xlu2 %2984  ;;  %v2934_v34 = vsel %vm2902_vm2, %v7916_v52, 0.0  ;;  %vm3147_vm2 = vcmp.eq.s32.totalorder %v7874_v47, 7 }
 0x794   :  { %vm2897_vm3 = vcmp.eq.s32.totalorder %v7925_v38, 6 }
 0x795   :  { %v2929_v2 = vsel %vm2897_vm3, %v7926_v5, 0.0  ;;  %vm2905_vm3 = vcmp.eq.s32.totalorder %v7883_v56, 6 }
 0x79a   :  { %3836 = vperm.xlu2 %4228, %v3727_v50   ;;  %v6387_v57 = vpop.xlane.xlu0 %2615  ;;  %v6389_v50 = vpop.permute.xlu1 %2760 }
 0x79b   :  { %3014 = vperm.xlu0 %4229, %v2927_v12   ;;  %7927 = vst [vmem:[#allocation92_spill] sm:$0xff] %v6387_v57  ;;  %v3733_v12 = vsel %vm3701_vm13, %v7826_v45, 0.0  ;;  %v6395_v30 = vpop.permute.xlu2 %2990  ;;  %vm2908_vm13 = vcmp.eq.s32.totalorder %v7907_v18, 6  ;;  %v2827_v18 = vperm.slane %v6321_v7, %v7651_v40 }
 0x79c   :  { %v2940_v41 = vsel %vm2908_vm13, %v7911_v43, 0.0  ;;  %v2835_v43 = vperm.slane %v6333_v32, %v5281_v26  ;;  %vm3151_vm13 = vcmp.eq.s32.totalorder %v7876_v31, 7 }
 0x7a2   :  { %3600 = vperm.xlu2 %4228, %v3473_v25   ;;  %v2770_v57 = vpop.permute.xlu1 %2769 }
 0x7a3   :  { %3020 = vperm.xlu0 %4229, %v2929_v2   ;;  %v3735_v2 = vsel %vm3703_vm1, %v7918_v61, 0.0  ;;  %v6401_v37 = vpop.permute.xlu2 %2996  ;;  %vm2914_vm1 = vcmp.eq.s32.totalorder %v7917_v16, 6  ;;  %v2841_v16 = vperm.slane %v6340_v44, %v7651_v40 }
 0x7aa   :  { %3854 = vperm.xlu2 %4228, %v3733_v12   ;;  %v2779_v12 = vpop.permute.xlu1 %2778 }
 0x7ab   :  { %3026 = vperm.xlu0 %4229, %v2931_v60   ;;  %v2937_v60 = vsel %vm2905_vm3, %v7884_v63, 0.0  ;;  %v6407_v29 = vpop.permute.xlu2 %3002  ;;  %v2848_v7 = vperm.slane %v2779_v12, %v7651_v40  ;;  %vm3149_vm3 = vcmp.eq.s32.totalorder %v7913_v24, 7 }
 0x7ad   :  { %v2749_v25 = vpop.permute.xlu0 %2748 }
 0x7ae   :  { %v2830_v27 = vperm.slane %v2749_v25, %v5287_v17  ;;  %v2842_v25 = vperm.slane %v2770_v57, %v5281_v26  ;;  %v2832_v57 = vperm.slane %v6327_v22, %v5293_v10 }
 0x7b2   :  { %3860 = vperm.xlu2 %4228, %v3735_v2   ;;  %v2788_v52 = vpop.permute.xlu1 %2787 }
 0x7b3   :  { %3035 = vperm.xlu0 %4229, %v2934_v34   ;;  %v2943_v34 = vsel %vm2911_vm14, %v7920_v21, 0.0  ;;  %v6411_v56 = vpop.permute.xlu2 %3008  ;;  %v2834_v21 = vperm.slane %v2755_v8, %v7651_v40  ;;  %v2837_v8 = vperm.slane %v6389_v50, %v5287_v17  ;;  %vm3153_vm14 = vcmp.eq.s32.totalorder %v7879_v33, 7 }
 0x7b4   :  { %7928 = vst [vmem:[#allocation99_spill] sm:$0xff] %v6411_v56 }
 0x7b5   :  { %v2764_v45 = vpop.permute.xlu0 %2763 }
 0x7bb   :  { %3044 = vperm.xlu0 %4229, %v2937_v60   ;;  %v2797_v60 = vpop.permute.xlu1 %2796 }
 0x7bd   :  { %v2773_v59 = vpop.permute.xlu0 %2772 }
 0x7be   :  { %v2844_v56 = vperm.slane %v2773_v59, %v5287_v17  ;;  %v2839_v59 = vperm.slane %v2764_v45, %v5293_v10 }
 0x7c3   :  { %3053 = vperm.xlu0 %4229, %v2940_v41   ;;  %v2946_v41 = vsel %vm2914_vm1, %v7918_v61, 0.0  ;;  %v6435_v61 = vpop.permute.xlu2 %3017  ;;  %v2806_v22 = vpop.permute.xlu1 %2805  ;;  %vm3155_vm1 = vcmp.eq.s32.totalorder %v7921_v54, 7 }
 0x7c5   :  { %v2782_v2 = vpop.permute.xlu0 %2781 }
 0x7c6   :  { %v2849_v35 = vperm.slane %v2782_v2, %v5281_v26 }
 0x7c8   :  { %v2850_v12 = vsel %vm1488_vm0, %v2849_v35, %v2848_v7  ;;  %v3179_v35 = vsel %vm3147_vm2, %v7875_v0, 0.0  ;;  %v2863_v0 = vperm.slane %v2806_v22, %v5281_v26  ;;  %vm2894_vm2 = vcmp.eq.s32.totalorder %v7790_v58, 6 }
 0x7cb   :  { %3062 = vperm.xlu0 %4229, %v2943_v34   ;;  %v2828_v34 = vperm.slane %v6373_v9, %v5281_v26 }
 0x7cd   :  { %v2791_v63 = vpop.permute.xlu0 %2790  ;;  %v2829_v2 = vsel %vm1488_vm0, %v2828_v34, %v2827_v18  ;;  %v2843_v18 = vsel %vm1488_vm0, %v2842_v25, %v2841_v16  ;;  %v2853_v34 = vperm.slane %v2788_v52, %v5293_v10  ;;  %v7929_v25 = vld [vmem:[#allocation109_spill] sm:$0xff] }
 0x7ce   :  { %v2855_v9 = vperm.slane %v2791_v63, %v7651_v40  ;;  %v2831_v44 = vsel %vm1492_vm6, %v2830_v27, %v2829_v2  ;;  %v2856_v63 = vperm.slane %v6361_v3, %v5281_v26  ;;  %v2845_v50 = vsel %vm1492_vm6, %v2844_v56, %v2843_v18  ;;  %v6478_v18 = vpop.permute.xlu2 %3023 }
 0x7cf   :  { %v2833_v16 = vsel %vm1496_vm5, %v2832_v57, %v2831_v44  ;;  %v2862_v56 = vperm.slane %v6368_v46, %v7651_v40  ;;  %v2867_v44 = vperm.slane %v6379_v14, %v5293_v10 }
 0x7d0   :  { %v2870_v2 = vsel %vm1549_vm4, %v2833_v16, %v7929_v25  ;;  %v3084_v25 = vperm.slane %v6401_v37, %v5281_v26  ;;  %v3088_v37 = vperm.slane %v6407_v29, %v5293_v10 }
 0x7d3   :  { %3071 = vperm.xlu0 %4229, %v2946_v41   ;;  %v2836_v41 = vsel %vm1488_vm0, %v2835_v43, %v2834_v21  ;;  %v2851_v43 = vperm.slane %v6355_v15, %v5287_v17  ;;  %v2846_v21 = vperm.slane %v6349_v53, %v5293_v10  ;;  %v2857_v15 = vsel %vm1488_vm0, %v2856_v63, %v2855_v9 }
 0x7d4   :  { %v2838_v27 = vsel %vm1492_vm6, %v2837_v8, %v2836_v41  ;;  %v2858_v53 = vperm.slane %v2797_v60, %v5287_v17  ;;  %v2864_v8 = vsel %vm1488_vm0, %v2863_v0, %v2862_v56 }
 0x7d5   :  { %v2800_v32 = vpop.permute.xlu0 %2799  ;;  %v2852_v45 = vsel %vm1492_vm6, %v2851_v43, %v2850_v12  ;;  %v2840_v7 = vsel %vm1496_vm5, %v2839_v59, %v2838_v27  ;;  %v2847_v47 = vsel %vm1496_vm5, %v2846_v21, %v2845_v50  ;;  %v3181_v21 = vsel %vm3149_vm3, %v7914_v42, 0.0 }
 0x7d6   :  { %v2860_v3 = vperm.slane %v2800_v32, %v5293_v10  ;;  %v2859_v41 = vsel %vm1492_vm6, %v2858_v53, %v2857_v15  ;;  %v2854_v52 = vsel %vm1496_vm5, %v2853_v34, %v2852_v45  ;;  %v2871_v60 = vsel %vm1551_vm15, %v2840_v7, %v2870_v2  ;;  %v6492_v15 = vpop.permute.xlu2 %3029 }
 0x7d7   :  { %v2872_v59 = vsel %vm1553_vm8, %v2847_v47, %v2871_v60  ;;  %v3183_v45 = vsel %vm3151_vm13, %v7877_v48, 0.0  ;;  %v3081_v53 = vperm.slane %v6395_v30, %v5293_v10  ;;  %v3185_v7 = vsel %vm3153_vm14, %v7880_v51, 0.0 }
 0x7d8   :  { %v2861_v9 = vsel %vm1496_vm5, %v2860_v3, %v2859_v41  ;;  %v2873_v57 = vsel %vm1555_vm9, %v2854_v52, %v2872_v59  ;;  %v3187_v30 = vsel %vm3155_vm1, %v7922_v20, 0.0  ;;  %vm3158_vm3 = vcmp.eq.s32.totalorder %v7923_v19, 7 }
 0x7d9   :  { %v2874_v63 = vsel %vm1557_vm11, %v2861_v9, %v2873_v57  ;;  %v3190_v59 = vsel %vm3158_vm3, %v7924_v1, 0.0  ;;  %vm2901_vm13 = vcmp.eq.s32.totalorder %v7785_v23, 6  ;;  %vm3160_vm14 = vcmp.eq.s32.totalorder %v7925_v38, 7 }
 0x7da   :  { %vm2904_vm1 = vcmp.eq.s32.totalorder %v7788_v11, 6 }
 0x7db   :  { %3244 = vperm.xlu0 %4229, %v3179_v35   ;;  %v3077_v35 = vperm.slane %v6385_v62, %v5281_v26 }
 0x7dd   :  { %v2809_v32 = vpop.permute.xlu0 %2808 }
 0x7de   :  { %v2865_v46 = vperm.slane %v2809_v32, %v5287_v17  ;;  %v6501_v47 = vpop.permute.xlu2 %3038  ;;  %v2926_v32 = vsel %vm2894_vm2, %v7791_v13, 0.0  ;;  %vm3411_vm2 = vcmp.eq.s32.totalorder %v7862_v39, 8 }
 0x7e0   :  { %v2866_v12 = vsel %vm1492_vm6, %v2865_v46, %v2864_v8 }
 0x7e1   :  { %v2868_v43 = vsel %vm1496_vm5, %v2867_v44, %v2866_v12  ;;  %v2933_v12 = vsel %vm2901_vm13, %v7786_v55, 0.0  ;;  %vm3161_vm13 = vcmp.eq.s32.totalorder %v7780_v36, 7  ;;  %v7935_v36 = vld [vmem:[#allocation6_spill] sm:$0xff] }
 0x7e2   :  { %v2875_v27 = vsel %vm1559_vm12, %v2868_v43, %v2874_v63  ;;  %v3192_v43 = vsel %vm3160_vm14, %v7926_v5, 0.0  ;;  %v2936_v63 = vsel %vm2904_vm1, %v7789_v4, 0.0  ;;  %vm3412_vm1 = vcmp.eq.s32.totalorder %v7913_v24, 8  ;;  %v7936_v24 = vld [vmem:[#allocation33_spill] sm:$0xff] }
 0x7e3   :  { %3250 = vperm.xlu0 %4229, %v3181_v21   ;;  %v2877_v14 = vsel %vm85_vm10, %v2875_v27, 0.0  ;;  %v3443_v27 = vsel %vm3411_vm2, %v7863_v28, 0.0 }
 0x7e4   :  { %2878 = vadd.xlane.f32.xlu1 %v2877_v14 }
 0x7e5   :  { %v2982_v50 = vpop.permute.xlu0 %2981 }
 0x7e6   :  { %v3076_v22 = vperm.slane %v2982_v50, %v7651_v40  ;;  %v6514_v9 = vpop.permute.xlu2 %3047  ;;  %v7930_v50 = vld [vmem:[#allocation61_spill] sm:$0xff] }
 0x7e7   :  { %vm2907_vm3 = vcmp.eq.s32.totalorder %v7930_v50, 6 }
 0x7e8   :  { %v3078_v16 = vsel %vm1488_vm0, %v3077_v35, %v3076_v22  ;;  %v7931_v35 = vld [vmem:[#allocation44_spill] sm:$0xff] }
 0x7e9   :  { %v2939_v22 = vsel %vm2907_vm3, %v7931_v35, 0.0  ;;  %vm3419_vm3 = vcmp.eq.s32.totalorder %v7872_v49, 8 }
 0x7eb   :  { %3256 = vperm.xlu0 %4229, %v3183_v45   ;;  %v3193_v45 = vsel %vm3161_vm13, %v7782_v6, 0.0  ;;  %vm3167_vm13 = vcmp.eq.s32.totalorder %v7788_v11, 7 }
 0x7ed   :  { %v2988_v3 = vpop.permute.xlu0 %2987 }
 0x7ee   :  { %v3079_v34 = vperm.slane %v2988_v3, %v5287_v17  ;;  %v6527_v29 = vpop.permute.xlu2 %3056  ;;  %v7932_v3 = vld [vmem:[#allocation4_spill] sm:$0xff] }
 0x7ef   :  { %vm2910_vm14 = vcmp.eq.s32.totalorder %v7932_v3, 6 }
 0x7f0   :  { %v3080_v56 = vsel %vm1492_vm6, %v3079_v34, %v3078_v16  ;;  %v7933_v34 = vld [vmem:[#allocation68_spill] sm:$0xff] }
 0x7f1   :  { %v3082_v62 = vsel %vm1496_vm5, %v3081_v53, %v3080_v56  ;;  %v2942_v53 = vsel %vm2910_vm14, %v7933_v34, 0.0 }
 0x7f3   :  { %3262 = vperm.xlu0 %4229, %v3185_v7   ;;  %v3444_v7 = vsel %vm3412_vm1, %v7914_v42, 0.0  ;;  %v3451_v42 = vsel %vm3419_vm3, %v7936_v24, 0.0  ;;  %vm3423_vm1 = vcmp.eq.s32.totalorder %v7925_v38, 8 }
 0x7f5   :  { %v2994_v0 = vpop.permute.xlu0 %2993 }
 0x7f6   :  { %v3083_v2 = vperm.slane %v2994_v0, %v7651_v40  ;;  %v6537_v14 = vpop.permute.xlu2 %3065  ;;  %v7934_v0 = vld [vmem:[#allocation12_spill] sm:$0xff] }
 0x7f7   :  { %vm2913_vm2 = vcmp.eq.s32.totalorder %v7934_v0, 6 }
 0x7f8   :  { %v3085_v41 = vsel %vm1488_vm0, %v3084_v25, %v3083_v2  ;;  %v2945_v25 = vsel %vm2913_vm2, %v7935_v36, 0.0  ;;  %v81_v2 = vld [vmem:[%s7325_s2 + $0x18] sm:$0xff]  ;;  %vm3677_vm2 = vcmp.eq.s32.totalorder %v7876_v31, 9 }
 0x7f9   :  { %101 = vmatpush.msra.mxu0 %v81_v2 }
 0x7fb   :  { %3268 = vperm.xlu0 %4229, %v3187_v30  }
 0x7fd   :  { %v3000_v52 = vpop.permute.xlu0 %2999  ;;  %3011 = vperm.xlu1 %4230, %v2926_v32   ;;  %v79_v32 = vld [vmem:[%s7325_s2 + $0x8] sm:$0xff] }
 0x7fe   :  { %v3086_v60 = vperm.slane %v3000_v52, %v5287_v17  ;;  %v6547_v56 = vpop.permute.xlu2 %3074 }
 0x800   :  { %v3087_v46 = vsel %vm1492_vm6, %v3086_v60, %v3085_v41  ;;  %v80_v41 = vld [vmem:[%s7325_s2 + $0x10] sm:$0xff]  ;;  %v78_v60 = vld [vmem:[%s7325_s2] sm:$0xff] }
 0x801   :  { %v3089_v8 = vsel %vm1496_vm5, %v3088_v37, %v3087_v46  ;;  %102 = vmatpush.msra.mxu0 %v80_v41  ;;  %v77_v37 = vld [vmem:[%s7326_s1] sm:$0xff]  ;;  %v3199_v46 = vsel %vm3167_vm13, %v7789_v4, 0.0  ;;  %vm3421_vm13 = vcmp.eq.s32.totalorder %v7923_v19, 8 }
 0x802   :  { %v6520_v44 = vsel %vm1547_vm7, %v3089_v8, %v3082_v62 }
 0x803   :  { %3277 = vperm.xlu0 %4229, %v3190_v59   ;;  %103 = vmatpush.msra.mxu0 %v79_v32  ;;  %v7937_v59 = vld [vmem:[#allocation52_spill] sm:$0xff]  ;;  %v7939_v32 = vld [vmem:[#allocation3_spill] sm:$0xff] }
 0x804   :  { %vm3417_vm14 = vcmp.eq.s32.totalorder %v7937_v59, 8  ;;  %vm3169_vm3 = vcmp.eq.s32.totalorder %v7939_v32, 7 }
 0x805   :  { %v6525_v57 = vpop.permute.xlu0 %3005  ;;  %3032 = vperm.xlu1 %4230, %v2933_v12   ;;  %104 = vmatpush.msra.mxu0 %v78_v60  ;;  %v7938_v12 = vld [vmem:[#allocation30_spill] sm:$0xff]  ;;  %v7940_v60 = vld [vmem:[#allocation15_spill] sm:$0xff] }
 0x806   :  { %v3248_v30 = vpop.permute.xlu2 %3247  ;;  %4164 = vmatmul.msk.f32.vlgmr.msra.gmra.mxu0 %vm85_vm10, %v77_v37  ;;  %v3201_v37 = vsel %vm3169_vm3, %v7940_v60, 0.0 }
 0x807   :  { %v3340_v2 = vperm.slane %v3248_v30, %v5281_v26 }
 0x80b   :  { %3283 = vperm.xlu0 %4229, %v3192_v43   ;;  %v3449_v43 = vsel %vm3417_vm14, %v7938_v12, 0.0  ;;  %vm3427_vm14 = vcmp.eq.s32.totalorder %v7785_v23, 8 }
 0x80d   :  { %v6533_v21 = vpop.permute.xlu0 %3014  ;;  %3041 = vperm.xlu1 %4230, %v2936_v63  }
 0x80e   :  { %v3254_v49 = vpop.permute.xlu2 %3253 }
 0x80f   :  { %v3344_v31 = vperm.slane %v3254_v49, %v5293_v10  ;;  %v3459_v49 = vsel %vm3427_vm14, %v7786_v55, 0.0  ;;  %vm3683_vm14 = vcmp.eq.s32.totalorder %v7790_v58, 9 }
 0x813   :  { %3510 = vperm.xlu0 %4229, %v3443_v27  }
 0x815   :  { %v6541_v16 = vpop.permute.xlu0 %3020  ;;  %3050 = vperm.xlu1 %4230, %v2939_v22   ;;  %v3455_v22 = vsel %vm3423_vm1, %v7926_v5, 0.0  ;;  %vm3681_vm1 = vcmp.eq.s32.totalorder %v7921_v54, 9 }
 0x816   :  { %v3260_v63 = vpop.permute.xlu2 %3259 }
 0x81b   :  { %3286 = vperm.xlu0 %4229, %v3193_v45  }
 0x81d   :  { %v6549_v62 = vpop.permute.xlu0 %3026  ;;  %3059 = vperm.xlu1 %4230, %v2942_v53  }
 0x81e   :  { %v3266_v45 = vpop.permute.xlu2 %3265 }
 0x823   :  { %3513 = vperm.xlu0 %4229, %v3444_v7   ;;  %v3709_v7 = vsel %vm3677_vm2, %v7877_v48, 0.0  ;;  %vm3173_vm2 = vcmp.eq.s32.totalorder %v7932_v3, 7 }
 0x825   :  { %v6555_v6 = vpop.permute.xlu0 %3035  ;;  %3068 = vperm.xlu1 %4230, %v2945_v25  }
 0x826   :  { %v3272_v24 = vpop.permute.xlu2 %3271 }
 0x82b   :  { %3534 = vperm.xlu0 %4229, %v3451_v42  }
 0x82d   :  { %v6568_v52 = vpop.permute.xlu0 %3044 }
 0x833   :  { %3304 = vperm.xlu0 %4229, %v3199_v46  }
 0x835   :  { %v6579_v8 = vpop.permute.xlu0 %3053 }
 0x83b   :  { %3528 = vperm.xlu0 %4229, %v3449_v43  }
 0x83d   :  { %v6583_v27 = vpop.permute.xlu0 %3062 }
 0x843   :  { %3546 = vperm.xlu0 %4229, %v3455_v22   ;;  %v3281_v22 = vpop.permute.xlu2 %3280 }
 0x844   :  { %v3360_v38 = vperm.slane %v3281_v22, %v7651_v40 }
 0x845   :  { %v6587_v53 = vpop.permute.xlu0 %3071 }
 0x84b   :  { %3782 = vperm.xlu0 %4229, %v3709_v7   ;;  %v3453_v7 = vsel %vm3421_vm13, %v7924_v1, 0.0 }
 0x84d   :  { %v3245_v25 = vpop.permute.xlu0 %3244 }
 0x84e   :  { %v3339_v41 = vperm.slane %v3245_v25, %v7651_v40 }
 0x850   :  { %v3341_v42 = vsel %vm1488_vm0, %v3340_v2, %v3339_v41  ;;  %v3347_v2 = vperm.slane %v3260_v63, %v5281_v26 }
 0x853   :  { %3310 = vperm.xlu0 %4229, %v3201_v37  }
 0x855   :  { %v3251_v46 = vpop.permute.xlu0 %3250 }
 0x856   :  { %v3342_v43 = vperm.slane %v3251_v46, %v5287_v17 }
 0x858   :  { %v3343_v48 = vsel %vm1492_vm6, %v3342_v43, %v3341_v42  ;;  %v3508_v42 = vpop.permute.xlu2 %3507 }
 0x859   :  { %v3345_v30 = vsel %vm1496_vm5, %v3344_v31, %v3343_v48  ;;  %v3351_v31 = vperm.slane %v3266_v45, %v5293_v10  ;;  %v6609_v48 = vpop.xlane.xlu1 %2878 }
 0x85b   :  { %3540 = vperm.xlu0 %4229, %v3453_v7  }
 0x85d   :  { %v3257_v25 = vpop.permute.xlu0 %3256 }
 0x85e   :  { %v3346_v41 = vperm.slane %v3257_v25, %v7651_v40 }
 0x860   :  { %v3348_v37 = vsel %vm1488_vm0, %v3347_v2, %v3346_v41  ;;  %v3713_v2 = vsel %vm3681_vm1, %v7922_v20, 0.0  ;;  %v6618_v41 = vpop.permute.xlu2 %3519 }
 0x861   :  { %7942 = vst [vmem:[#allocation88_spill] sm:$0xff] %v6618_v41 }
 0x863   :  { %3558 = vperm.xlu0 %4229, %v3459_v49  }
 0x865   :  { %v3263_v46 = vpop.permute.xlu0 %3262 }
 0x866   :  { %v3349_v43 = vperm.slane %v3263_v46, %v5287_v17  ;;  %v3354_v46 = vperm.slane %v3272_v24, %v5281_v26 }
 0x868   :  { %v3350_v7 = vsel %vm1492_vm6, %v3349_v43, %v3348_v37  ;;  %v3205_v43 = vsel %vm3173_vm2, %v7933_v34, 0.0  ;;  %vm3432_vm2 = vcmp.eq.s32.totalorder %v7939_v32, 8 }
 0x869   :  { %v3352_v63 = vsel %vm1496_vm5, %v3351_v31, %v3350_v7  ;;  %v6629_v31 = vpop.permute.xlu2 %3292 }
 0x86a   :  { %v6615_v25 = vsel %vm1547_vm7, %v3352_v63, %v3345_v30  ;;  %7945 = vst [vmem:[#allocation90_spill] sm:$0xff] %v6629_v31  ;;  %v7946_v63 = vld [vmem:[#allocation38_spill] sm:$0xff] }
 0x86b   :  { %7941 = vst [vmem:[#allocation101_spill] sm:$0xff] %v6615_v25  ;;  %3794 = vperm.xlu0 %4229, %v3713_v2   ;;  %vm3425_vm3 = vcmp.eq.s32.totalorder %v7946_v63, 8  ;;  %v7947_v2 = vld [vmem:[#allocation39_spill] sm:$0xff]  ;;  %v7950_v25 = vld [vmem:[#allocation65_spill] sm:$0xff] }
 0x86c   :  { %v3457_v24 = vsel %vm3425_vm3, %v7947_v2, 0.0  ;;  %vm3684_vm3 = vcmp.eq.s32.totalorder %v7923_v19, 9  ;;  %v4238_v19 = vld [vmem:[%s7323_s5] ss:$0 sm:$0xff] }
 0x86d   :  { %v3269_v49 = vpop.permute.xlu0 %3268 }
 0x86e   :  { %v3353_v45 = vperm.slane %v3269_v49, %v7651_v40 }
 0x86f   :  { %v3012_v5 = vpop.permute.xlu1 %3011 }
 0x870   :  { %v6623_v37 = vsel %vm1488_vm0, %v3354_v46, %v3353_v45 }
 0x871   :  { %7943 = vst [vmem:[#allocation94_spill] sm:$0xff] %v6623_v37  ;;  %v6636_v12 = vpop.permute.xlu2 %3525  ;;  %v3602_v37 = vperm.slane %v3508_v42, %v7651_v40 }
 0x872   :  { %7948 = vst [vmem:[#allocation85_spill] sm:$0xff] %v6636_v12  ;;  %v3093_v12 = vperm.slane %v3012_v5, %v5287_v17  ;;  %v3098_v5 = vperm.slane %v6541_v16, %v5281_v26 }
 0x873   :  { %3322 = vperm.xlu0 %4229, %v3205_v43   ;;  %v7949_v43 = vld [vmem:[#allocation64_spill] sm:$0xff] }
 0x874   :  { %vm3431_vm13 = vcmp.eq.s32.totalorder %v7949_v43, 8 }
 0x875   :  { %v6627_v30 = vpop.permute.xlu0 %3277  ;;  %v3463_v31 = vsel %vm3431_vm13, %v7950_v25, 0.0  ;;  %vm3690_vm13 = vcmp.eq.s32.totalorder %v7785_v23, 9 }
 0x876   :  { %7944 = vst [vmem:[#allocation83_spill] sm:$0xff] %v6627_v30 }
 0x877   :  { %v3033_v7 = vpop.permute.xlu1 %3032 }
 0x878   :  { %v3105_v42 = vperm.slane %v3033_v7, %v5281_v26 }
 0x87b   :  { %3552 = vperm.xlu0 %4229, %v3457_v24  }
 0x87d   :  { %v3284_v49 = vpop.permute.xlu0 %3283 }
 0x87e   :  { %v3361_v46 = vperm.slane %v3284_v49, %v5281_v26  ;;  %v3715_v49 = vsel %vm3683_vm14, %v7791_v13, 0.0  ;;  %vm3436_vm14 = vcmp.eq.s32.totalorder %v7932_v3, 8 }
 0x87f   :  { %v3042_v45 = vpop.permute.xlu1 %3041 }
 0x880   :  { %v3362_v41 = vsel %vm1488_vm0, %v3361_v46, %v3360_v38  ;;  %v3290_v38 = vpop.permute.xlu2 %3289  ;;  %v3090_v46 = vperm.slane %v6525_v57, %v7651_v40 }
 0x881   :  { %v3365_v36 = vperm.slane %v3290_v38, %v5293_v10  ;;  %v3118_v38 = vperm.slane %v6579_v8, %v7651_v40  ;;  %v3119_v8 = vperm.slane %v6527_v29, %v5281_v26  ;;  %v3109_v29 = vperm.slane %v6501_v47, %v5293_v10 }
 0x882   :  { %v3123_v47 = vperm.slane %v6583_v27, %v5293_v10 }
 0x883   :  { %3570 = vperm.xlu0 %4229, %v3463_v31   ;;  %v7951_v31 = vld [vmem:[#allocation99_spill] sm:$0xff] }
 0x884   :  { %v3091_v4 = vperm.slane %v7951_v31, %v5281_v26  ;;  %v3097_v31 = vperm.slane %v6435_v61, %v7651_v40  ;;  %v3107_v61 = vperm.slane %v6555_v6, %v5287_v17 }
 0x885   :  { %v3511_v59 = vpop.permute.xlu0 %3510 }
 0x886   :  { %v3603_v24 = vperm.slane %v3511_v59, %v5281_v26  ;;  %v3092_v57 = vsel %vm1488_vm0, %v3091_v4, %v3090_v46 }
 0x887   :  { %v3051_v30 = vpop.permute.xlu1 %3050  ;;  %v3094_v7 = vsel %vm1492_vm6, %v3093_v12, %v3092_v57  ;;  %v3112_v12 = vperm.slane %v6568_v52, %v5281_v26 }
 0x888   :  { %v3604_v22 = vsel %vm1488_vm0, %v3603_v24, %v3602_v37  ;;  %v7952_v37 = vld [vmem:[#allocation19_spill] sm:$0xff]  ;;  %v3104_v24 = vperm.slane %v6492_v15, %v7651_v40  ;;  %v3095_v15 = vperm.slane %v6533_v21, %v5293_v10  ;;  %v3116_v46 = vperm.slane %v3051_v30, %v5293_v10  ;;  %v3308_v57 = vpop.permute.xlu2 %3307 }
 0x889   :  { %vm3174_vm1 = vcmp.eq.s32.totalorder %v7952_v37, 7 }
 0x88a   :  { %v3106_v4 = vsel %vm1488_vm0, %v3105_v42, %v3104_v24  ;;  %v3100_v42 = vperm.slane %v6478_v18, %v5287_v17  ;;  %v3114_v24 = vperm.slane %v6514_v9, %v5287_v17 }
 0x88b   :  { %3800 = vperm.xlu0 %4229, %v3715_v49   ;;  %v3108_v6 = vsel %vm1492_vm6, %v3107_v61, %v3106_v4  ;;  %v3128_v61 = vperm.slane %v6587_v53, %v5287_v17 }
 0x88c   :  { %v3110_v9 = vsel %vm1496_vm5, %v3109_v29, %v3108_v6 }
 0x88d   :  { %v3287_v59 = vpop.permute.xlu0 %3286 }
 0x88e   :  { %v3363_v11 = vperm.slane %v3287_v59, %v5287_v17  ;;  %v3111_v59 = vperm.slane %v3042_v45, %v7651_v40 }
 0x88f   :  { %v3060_v49 = vpop.permute.xlu1 %3059 }
 0x890   :  { %v3364_v0 = vsel %vm1492_vm6, %v3363_v11, %v3362_v41  ;;  %v3121_v45 = vperm.slane %v3060_v49, %v5287_v17  ;;  %v7953_v11 = vld [vmem:[#allocation10_spill] sm:$0xff]  ;;  %v3099_v41 = vsel %vm1488_vm0, %v3098_v5, %v3097_v31  ;;  %v3113_v52 = vsel %vm1488_vm0, %v3112_v12, %v3111_v59 }
 0x891   :  { %v6670_v16 = vsel %vm1496_vm5, %v3365_v36, %v3364_v0  ;;  %v3206_v21 = vsel %vm3174_vm1, %v7953_v11, 0.0  ;;  %v3096_v0 = vsel %vm1496_vm5, %v3095_v15, %v3094_v7  ;;  %v3102_v36 = vperm.slane %v6549_v62, %v5293_v10 }
 0x892   :  { %v3120_v5 = vsel %vm1488_vm0, %v3119_v8, %v3118_v38  ;;  %v3125_v62 = vperm.slane %v6537_v14, %v7651_v40  ;;  %v3133_v31 = vsel %vm1549_vm4, %v3096_v0, %v6520_v44  ;;  %v3101_v7 = vsel %vm1492_vm6, %v3100_v42, %v3099_v41 }
 0x893   :  { %3325 = vperm.xlu0 %4229, %v3206_v21   ;;  %v3122_v30 = vsel %vm1492_vm6, %v3121_v45, %v3120_v5  ;;  %v3115_v59 = vsel %vm1492_vm6, %v3114_v24, %v3113_v52  ;;  %v3103_v38 = vsel %vm1496_vm5, %v3102_v36, %v3101_v7  ;;  %v3130_v45 = vperm.slane %v6547_v56, %v5293_v10  ;;  %v6731_v52 = vpop.permute.xlu2 %3537 }
 0x894   :  { %v3117_v14 = vsel %vm1496_vm5, %v3116_v46, %v3115_v59  ;;  %v3124_v27 = vsel %vm1496_vm5, %v3123_v47, %v3122_v30  ;;  %v3134_v12 = vsel %vm1551_vm15, %v3103_v38, %v3133_v31  ;;  %v3464_v8 = vsel %vm3432_vm2, %v7940_v60, 0.0 }
 0x895   :  { %v3514_v49 = vpop.permute.xlu0 %3513  ;;  %v3716_v60 = vsel %vm3684_vm3, %v7924_v1, 0.0  ;;  %v3375_v42 = vperm.slane %v3308_v57, %v5281_v26  ;;  %v3468_v31 = vsel %vm3436_vm14, %v7933_v34, 0.0  ;;  %v4279_v7 = vmov 8.0  }
 0x896   :  { %v3605_v18 = vperm.slane %v3514_v49, %v5287_v17  ;;  %v3722_v49 = vsel %vm3690_vm13, %v7786_v55, 0.0  ;;  %4263 = vrcp.f32 %v4279_v7  ;;  %vm3157_vm1 = vcmp.eq.s32.totalorder %v7790_v58, 7 }
 0x897   :  { %v3069_v15 = vpop.permute.xlu1 %3068  ;;  %vm3688_vm2 = vcmp.eq.s32.totalorder %v7946_v63, 9  ;;  %vm3694_vm14 = vcmp.eq.s32.totalorder %v7949_v43, 9 }
 0x898   :  { %v6710_v44 = vsel %vm1492_vm6, %v3605_v18, %v3604_v22  ;;  %v3126_v4 = vperm.slane %v3069_v15, %v5281_v26  ;;  %v3135_v22 = vsel %vm1553_vm8, %v3110_v9, %v3134_v12 }
 0x899   :  { %v3136_v53 = vsel %vm1555_vm9, %v3117_v14, %v3135_v22 }
 0x89a   :  { %v3127_v21 = vsel %vm1488_vm0, %v3126_v4, %v3125_v62  ;;  %v3137_v0 = vsel %vm1557_vm11, %v3124_v27, %v3136_v53  ;;  %v106_v62 = vpop.f32.mrf.mxu0  ;;  %v3189_v4 = vsel %vm3157_vm1, %v7791_v13, 0.0  ;;  %vm3164_vm1 = vcmp.eq.s32.totalorder %v7785_v23, 7 }
 0x89b   :  { %3573 = vperm.xlu0 %4229, %v3464_v8   ;;  %v3129_v41 = vsel %vm1492_vm6, %v3128_v61, %v3127_v21  ;;  %v6740_v5 = vpop.permute.xlu2 %3770  ;;  %v6749_v57 = vadd.f32 %v4238_v19, %v106_v62  ;;  %v3720_v21 = vsel %vm3688_vm2, %v7947_v2, 0.0 }
 0x89c   :  { %v3131_v32 = vsel %vm1496_vm5, %v3130_v45, %v3129_v41  ;;  %v4264_v61 = vpop.eup %4263 }
 0x89d   :  { %v6727_v36 = vpop.permute.xlu0 %3534  ;;  %v3138_v6 = vsel %vm1559_vm12, %v3131_v32, %v3137_v0  ;;  %v109_v30 = vrot.slane %v6749_v57, 4  ;;  %v123_v18 = vmul.f32 %v6749_v57, %v6749_v57  ;;  %v116_v45 = vmul.f32 8.0, %v4264_v61 }
 0x89e   :  { %v3140_v56 = vsel %vm85_vm10, %v3138_v6, 0.0  ;;  %vm120_vm13 = vweird.f32 %v4264_v61 }
 0x89f   :  { %3141 = vadd.xlane.f32.xlu1 %v3140_v56  ;;  %v110_v9 = vadd.f32 %v109_v30, %v6749_v57  ;;  %v124_v59 = vrot.slane %v123_v18, 4  ;;  %v117_v22 = vsub.f32 1.0, %v116_v45  ;;  %v7954_v56 = vld [vmem:[#allocation43_spill] sm:$0xff] }
 0x8a0   :  { %vm3415_vm3 = vcmp.eq.s32.totalorder %v7954_v56, 8 }
 0x8a1   :  { %v111_v38 = vrot.slane %v110_v9, 2  ;;  %v125_v14 = vadd.f32 %v124_v59, %v123_v18  ;;  %v118_v0 = vmul.f32 %v4264_v61, %v117_v22  ;;  %v70_v18 = vld [vmem:[%s7327_s4 + $0x68] sm:$0xff] }
 0x8a3   :  { %3803 = vperm.xlu0 %4229, %v3716_v60   ;;  %v3786_v47 = vpop.permute.xlu2 %3785  ;;  %v112_v27 = vadd.f32 %v111_v38, %v110_v9  ;;  %v126_v12 = vrot.slane %v125_v14, 2  ;;  %v7955_v60 = vld [vmem:[#allocation28_spill] sm:$0xff]  ;;  %v3196_v38 = vsel %vm3164_vm1, %v7786_v55, 0.0  ;;  %v66_v55 = vld [vmem:[%s7327_s4 + $0x48] sm:$0xff]  ;;  %vm3699_vm1 = vcmp.eq.s32.totalorder %v7932_v3, 9 }
 0x8a4   :  { %v3873_v13 = vperm.slane %v3786_v47, %v5281_v26  ;;  %v3447_v63 = vsel %vm3415_vm3, %v7955_v60, 0.0  ;;  %vm3418_vm3 = vcmp.eq.s32.totalorder %v7921_v54, 8 }
 0x8a5   :  { %v3305_v46 = vpop.permute.xlu0 %3304  ;;  %v127_v8 = vadd.f32 %v126_v12, %v125_v14  ;;  %v113_v41 = vrot.slane %v112_v27, 1  ;;  %v68_v14 = vld [vmem:[%s7327_s4 + $0x58] sm:$0xff]  ;;  %v3450_v22 = vsel %vm3418_vm3, %v7922_v20, 0.0  ;;  %v62_v20 = vld [vmem:[%s7327_s4 + $0x28] sm:$0xff] }
 0x8a6   :  { %v3374_v29 = vperm.slane %v3305_v46, %v7651_v40  ;;  %v119_v46 = vadd.f32 %v4264_v61, %v118_v0  ;;  %v7958_v0 = vld [vmem:[#allocation9_spill] sm:$0xff] }
 0x8a7   :  { %v128_v53 = vrot.slane %v127_v8, 1  ;;  %v114_v19 = vadd.f32 %v113_v41, %v112_v27  ;;  %v7957_v27 = vld [vmem:[#allocation62_spill] sm:$0xff]  ;;  %v64_v41 = vld [vmem:[%s7327_s4 + $0x38] sm:$0xff] }
 0x8a8   :  { %v6738_v24 = vsel %vm1488_vm0, %v3375_v42, %v3374_v29  ;;  %v72_v29 = vld [vmem:[%s7327_s4 + $0x78] sm:$0xff]  ;;  %v6779_v62 = vsel %vm120_vm13, %v4264_v61, %v119_v46  ;;  %v7956_v61 = vld [vmem:[#allocation66_spill] sm:$0xff]  ;;  %vm3698_vm13 = vcmp.eq.s32.totalorder %v7958_v0, 9 }
 0x8a9   :  { %v129_v42 = vadd.f32 %v128_v53, %v127_v8  ;;  %159 = vmatpush.msra.mxu1 %v72_v29  ;;  %v6783_v30 = vmul.f32 %v6779_v62, %v114_v19  ;;  %vm3692_vm2 = vcmp.eq.s32.totalorder %v7956_v61, 9  ;;  %v65_v8 = vld [vmem:[%s7327_s4 + $0x40] sm:$0xff]  ;;  %v63_v53 = vld [vmem:[%s7327_s4 + $0x30] sm:$0xff]  ;;  %v7961_v29 = vld [vmem:[#allocation41_spill] sm:$0xff] }
 0x8aa   :  { %v3724_v12 = vsel %vm3692_vm2, %v7957_v27, 0.0  ;;  %v7960_v46 = vld [vmem:[#allocation42_spill] sm:$0xff] }
 0x8ab   :  { %3821 = vperm.xlu0 %4229, %v3722_v49   ;;  %v6763_v32 = vpop.permute.xlu2 %3316  ;;  %v71_v49 = vld [vmem:[%s7327_s4 + $0x70] sm:$0xff]  ;;  %v130_v7 = vmul.f32 %v129_v42, %v6779_v62  ;;  %v131_v47 = vmul.f32 %v6783_v30, %v6783_v30  ;;  %v61_v42 = vld [vmem:[%s7327_s4 + $0x20] sm:$0xff] }
 0x8ac   :  { %160 = vmatpush.msra.mxu1 %v71_v49 }
 0x8ad   :  { %v6747_v1 = vpop.permute.xlu0 %3528  ;;  %v132_v9 = vsub.f32 %v130_v7, %v131_v47  ;;  %v3731_v47 = vsel %vm3699_vm1, %v7933_v34, 0.0  ;;  %vm3700_vm1 = vcmp.eq.s32.totalorder %v7952_v37, 9 }
 0x8ae   :  { %161 = vmatpush.msra.mxu1 %v70_v18  ;;  %v59_v18 = vld [vmem:[%s7327_s4 + $0x10] sm:$0xff] }
 0x8af   :  { %v133_v23 = vmax.f32 %v132_v9, 0.0 }
 0x8b1   :  { %v135_v45 = vadd.f32 1e-05, %v133_v23 }
 0x8b3   :  { %3585 = vperm.xlu0 %4229, %v3468_v31   ;;  %v3726_v31 = vsel %vm3694_vm14, %v7950_v25, 0.0  ;;  %v69_v25 = vld [vmem:[%s7327_s4 + $0x60] sm:$0xff]  ;;  %v6797_v59 = vpop.permute.xlu2 %3549  ;;  %4265 = vrsqrt.f32 %v135_v45  ;;  %vm3165_vm14 = vcmp.eq.s32.totalorder %v7960_v46, 7  ;;  %vm142_vm2 = vweird.f32 %v135_v45  ;;  %v7965_v46 = vld [vmem:[#allocation35_spill] sm:$0xff] }
 0x8b4   :  { %162 = vmatpush.msra.mxu1 %v69_v25  ;;  %v3197_v49 = vsel %vm3165_vm14, %v7961_v29, 0.0  ;;  %v58_v25 = vld [vmem:[%s7327_s4 + $0x8] sm:$0xff] }
 0x8b5   :  { %v6757_v15 = vpop.permute.xlu0 %3546 }
 0x8b6   :  { %163 = vmatpush.msra.mxu1 %v68_v14  ;;  %v134_v14 = vsub.f32 %v6749_v57, %v6783_v30  ;;  %v57_v57 = vld [vmem:[%s7327_s4] sm:$0xff] }
 0x8b8   :  { %3274 = vperm.xlu1 %4230, %v3189_v4   ;;  %v67_v4 = vld [vmem:[%s7327_s4 + $0x50] sm:$0xff] }
 0x8b9   :  { %164 = vmatpush.msra.mxu1 %v67_v4  ;;  %v4266_v54 = vpop.eup %4265 }
 0x8ba   :  { %v137_v56 = vmul.f32 %v4266_v54, %v135_v45  ;;  %vm143_vm3 = vweird.f32 %v4266_v54  ;;  %v7963_v45 = vld [vmem:[#allocation25_spill] sm:$0xff] }
 0x8bb   :  { %3815 = vperm.xlu0 %4229, %v3720_v21   ;;  %165 = vmatpush.msra.mxu1 %v66_v55 }
 0x8bd   :  { %v3783_v58 = vpop.permute.xlu0 %3782  ;;  %166 = vmatpush.msra.mxu1 %v65_v8  ;;  %v4239_v8 = vld [vmem:[%s7323_s5 + $0x1] ss:$0 sm:$0xff] }
 0x8be   :  { %v3872_v6 = vperm.slane %v3783_v58, %v7651_v40  ;;  %v6824_v58 = vpop.permute.xlu2 %3776 }
 0x8bf   :  { %167 = vmatpush.msra.mxu1 %v64_v41 }
 0x8c0   :  { %v6770_v2 = vsel %vm1488_vm0, %v3873_v13, %v3872_v6  ;;  %3522 = vperm.xlu1 %4230, %v3447_v63   ;;  %v7959_v13 = vld [vmem:[#allocation16_spill] sm:$0xff]  ;;  %v138_v63 = vmul.f32 %v4266_v54, %v137_v56 }
 0x8c1   :  { %v3730_v6 = vsel %vm3698_vm13, %v7959_v13, 0.0  ;;  %168 = vmatpush.msra.mxu1 %v63_v53  ;;  %vm144_vm13 = vmor %vm142_vm2, %vm143_vm3  ;;  %v4240_v53 = vld [vmem:[%s7323_s5 + $0x2] ss:$0 sm:$0xff]  ;;  %vm3674_vm3 = vcmp.eq.s32.totalorder %v7862_v39, 9  ;;  %v4233_v39 = vld [vmem:[%s7324_s3 + $0x81] ss:$0 sm:$0xff] }
 0x8c2   :  { %v139_v19 = vmul.f32 0.5, %v138_v63  ;;  %v7964_v63 = vld [vmem:[#allocation34_spill] sm:$0xff]  ;;  %v3706_v37 = vsel %vm3674_vm3, %v7863_v28, 0.0  ;;  %vm3170_vm3 = vcmp.eq.s32.totalorder %v7930_v50, 7 }
 0x8c3   :  { %3833 = vperm.xlu0 %4229, %v3726_v31   ;;  %169 = vmatpush.msra.mxu1 %v62_v20  ;;  %v60_v31 = vld [vmem:[%s7327_s4 + $0x18] sm:$0xff]  ;;  %vm3422_vm2 = vcmp.eq.s32.totalorder %v7964_v63, 8  ;;  %v4232_v28 = vld [vmem:[%s7324_s3 + $0x80] ss:$0 sm:$0xff] }
 0x8c4   :  { %v140_v7 = vsub.f32 1.5, %v139_v19 }
 0x8c5   :  { %v6791_v43 = vpop.permute.xlu0 %3310  ;;  %170 = vmatpush.msra.mxu1 %v61_v42  ;;  %v3454_v42 = vsel %vm3422_vm2, %v7965_v46, 0.0  ;;  %vm3679_vm2 = vcmp.eq.s32.totalorder %v7879_v33, 9  ;;  %v4241_v46 = vld [vmem:[%s7324_s3 + $0x86] ss:$0 sm:$0xff]  ;;  %v3202_v33 = vsel %vm3170_vm3, %v7931_v35, 0.0  ;;  %vm3429_vm3 = vcmp.eq.s32.totalorder %v7956_v61, 8 }
 0x8c6   :  { %v3798_v9 = vpop.permute.xlu2 %3797  ;;  %v3711_v63 = vsel %vm3679_vm2, %v7880_v51, 0.0 }
 0x8c7   :  { %171 = vmatpush.msra.mxu1 %v60_v31  ;;  %v3880_v23 = vperm.slane %v3798_v9, %v5281_v26  ;;  %v7967_v9 = vld [vmem:[#allocation98_spill] sm:$0xff] }
 0x8c8   :  { %3295 = vperm.xlu1 %4230, %v3196_v38   ;;  %v141_v38 = vmul.f32 %v4266_v54, %v140_v7 }
 0x8c9   :  { %172 = vmatpush.msra.mxu1 %v59_v18 }
 0x8ca   :  { %v145_v3 = vsel %vm144_vm13, %v4266_v54, %v141_v38  ;;  %v3732_v54 = vsel %vm3700_vm1, %v7953_v11, 0.0  ;;  %vm3166_vm13 = vcmp.eq.s32.totalorder %v7956_v61, 7  ;;  %v1830_v38 = vmul.f32 %v4233_v39, %v7967_v9  ;;  %v7975_v39 = vld [vmem:[#allocation57_spill] sm:$0xff] }
 0x8cb   :  { %3827 = vperm.xlu0 %4229, %v3724_v12   ;;  %173 = vmatpush.msra.mxu1 %v58_v25  ;;  %v7962_v12 = vld [vmem:[#allocation40_spill] sm:$0xff]  ;;  %v146_v55 = vmul.f32 %v145_v3, %v134_v14  ;;  %v3198_v11 = vsel %vm3166_vm13, %v7957_v27, 0.0  ;;  %v7966_v25 = vld [vmem:[#allocation63_spill] sm:$0xff]  ;;  %v4235_v14 = vld [vmem:[%s7324_s3 + $0x83] ss:$0 sm:$0xff] }
 0x8cc   :  { %vm3413_vm14 = vcmp.eq.s32.totalorder %v7962_v12, 8  ;;  %vm3426_vm1 = vcmp.eq.s32.totalorder %v7966_v25, 8  ;;  %v7970_v12 = vld [vmem:[#allocation11_spill] sm:$0xff] }
 0x8cd   :  { %v6811_v21 = vpop.permute.xlu0 %3540  ;;  %v150_v30 = vmul.f32 %v4239_v8, %v146_v55  ;;  %174 = vmatpush.msra.mxu1 %v57_v57  ;;  %v4236_v8 = vld [vmem:[%s7324_s3 + $0x84] ss:$0 sm:$0xff]  ;;  %v4237_v57 = vld [vmem:[%s7324_s3 + $0x85] ss:$0 sm:$0xff] }
 0x8d0   :  { %3531 = vperm.xlu1 %4230, %v3450_v22   ;;  %v3445_v22 = vsel %vm3413_vm14, %v7963_v45, 0.0  ;;  %vm3172_vm14 = vcmp.eq.s32.totalorder %v7958_v0, 7 }
 0x8d1   :  { %v3204_v18 = vsel %vm3172_vm14, %v7959_v13, 0.0  ;;  %vm3430_vm14 = vcmp.eq.s32.totalorder %v7975_v39, 8 }
 0x8d3   :  { %3845 = vperm.xlu0 %4229, %v3730_v6   ;;  %v154_v6 = vadd.f32 %v4240_v53, %v150_v30  ;;  %v7972_v53 = vld [vmem:[#allocation92_spill] sm:$0xff] }
 0x8d5   :  { %v6831_v60 = vpop.permute.xlu0 %3558  ;;  %v155_v20 = vmax.f32 %v154_v6, 0.0 }
 0x8d7   :  { %175 = vmatmul.f32.vlgmr.msra.gmra.mxu1 %v155_v20  ;;  %v2882_v20 = vmul.f32 %v4237_v57, %v6609_v48  ;;  %v7974_v48 = vld [vmem:[#allocation6_spill] sm:$0xff] }
 0x8d8   :  { %3298 = vperm.xlu1 %4230, %v3197_v49  }
 0x8db   :  { %3848 = vperm.xlu0 %4229, %v3731_v47   ;;  %v4234_v47 = vld [vmem:[%s7324_s3 + $0x82] ss:$0 sm:$0xff] }
 0x8dc   :  { %v2093_v55 = vmul.f32 %v4234_v47, %v7970_v12 }
 0x8dd   :  { %v3795_v4 = vpop.permute.xlu0 %3794 }
 0x8de   :  { %v3879_v34 = vperm.slane %v3795_v4, %v7651_v40  ;;  %v7968_v4 = vld [vmem:[#allocation58_spill] sm:$0xff] }
 0x8df   :  { %v3458_v3 = vsel %vm3426_vm1, %v7968_v4, 0.0 }
 0x8e0   :  { %v3881_v41 = vsel %vm1488_vm0, %v3880_v23, %v3879_v34  ;;  %3516 = vperm.xlu1 %4230, %v3445_v22   ;;  %v7969_v23 = vld [vmem:[#allocation70_spill] sm:$0xff]  ;;  %v7971_v22 = vld [vmem:[#allocation96_spill] sm:$0xff] }
 0x8e1   :  { %v1567_v34 = vmul.f32 %v4232_v28, %v7969_v23  ;;  %v7976_v28 = vld [vmem:[#allocation60_spill] sm:$0xff]  ;;  %v7978_v23 = vld [vmem:[#allocation94_spill] sm:$0xff] }
 0x8e2   :  { %v3462_v47 = vsel %vm3430_vm14, %v7976_v28, 0.0  ;;  %vm3689_vm14 = vcmp.eq.s32.totalorder %v7966_v25, 9 }
 0x8e3   :  { %3851 = vperm.xlu0 %4229, %v3732_v54   ;;  %v1831_v45 = vadd.f32 %v1830_v38, %v1567_v34  ;;  %v2619_v54 = vmul.f32 %v4236_v8, %v7972_v53  ;;  %v7980_v8 = vld [vmem:[#allocation101_spill] sm:$0xff]  ;;  %v7982_v53 = vld [vmem:[#allocation88_spill] sm:$0xff] }
 0x8e5   :  { %v6867_v56 = vpop.permute.xlu0 %3322  ;;  %v2094_v30 = vadd.f32 %v2093_v55, %v1831_v45  ;;  %v7979_v55 = vld [vmem:[#allocation52_spill] sm:$0xff] }
 0x8e6   :  { %vm3680_vm1 = vcmp.eq.s32.totalorder %v7979_v55, 9  ;;  %v3621_v55 = vperm.slane %v6811_v21, %v5293_v10  ;;  %v3721_v21 = vsel %vm3689_vm14, %v7968_v4, 0.0  ;;  %v3624_v4 = vperm.slane %v6757_v15, %v5281_v26  ;;  %v4242_v15 = vld [vmem:[%s7323_s5 + $0x3] ss:$0 sm:$0xff] }
 0x8e8   :  { %3543 = vperm.xlu1 %4230, %v3454_v42  }
 0x8ed   :  { %v6871_v29 = vpop.permute.xlu0 %3552 }
 0x8f0   :  { %3773 = vperm.xlu1 %4230, %v3706_v37  }
 0x8f5   :  { %v6875_v49 = vpop.permute.xlu0 %3570 }
 0x8f8   :  { %3301 = vperm.xlu1 %4230, %v3198_v11  }
 0x8fd   :  { %v3801_v19 = vpop.permute.xlu0 %3800 }
 0x8fe   :  { %v3882_v31 = vperm.slane %v3801_v19, %v5287_v17 }
 0x900   :  { %v6883_v7 = vsel %vm1492_vm6, %v3882_v31, %v3881_v41  ;;  %3319 = vperm.xlu1 %4230, %v3204_v18   ;;  %v2356_v41 = vmul.f32 %v4235_v14, %v7971_v22  ;;  %v7973_v18 = vld [vmem:[#allocation12_spill] sm:$0xff]  ;;  %v7977_v14 = vld [vmem:[#allocation83_spill] sm:$0xff]  ;;  %v7981_v22 = vld [vmem:[#allocation30_spill] sm:$0xff] }
 0x901   :  { %vm3176_vm13 = vcmp.eq.s32.totalorder %v7973_v18, 7 }
 0x902   :  { %v2357_v6 = vadd.f32 %v2356_v41, %v2094_v30  ;;  %v3208_v51 = vsel %vm3176_vm13, %v7974_v48, 0.0  ;;  %v3712_v41 = vsel %vm3680_vm1, %v7981_v22, 0.0  ;;  %vm3435_vm13 = vcmp.eq.s32.totalorder %v7958_v0, 8 }
 0x903   :  { %vm3433_vm1 = vcmp.eq.s32.totalorder %v7930_v50, 8 }
 0x904   :  { %v2620_v42 = vadd.f32 %v2619_v54, %v2357_v6  ;;  %v3609_v54 = vperm.slane %v7982_v53, %v7651_v40 }
 0x906   :  { %v2883_v11 = vadd.f32 %v2882_v20, %v2620_v42  ;;  %v7983_v20 = vld [vmem:[#allocation85_spill] sm:$0xff] }
 0x908   :  { %3555 = vperm.xlu1 %4230, %v3458_v3   ;;  %v3358_v3 = vperm.slane %v7977_v14, %v5293_v10 }
 0x910   :  { %3788 = vperm.xlu1 %4230, %v3711_v63   ;;  %v3612_v63 = vperm.slane %v7983_v20, %v5287_v17  ;;  %v3465_v20 = vsel %vm3433_vm1, %v7931_v35, 0.0 }
 0x912   :  { %v3142_v37 = vpop.xlane.xlu1 %3141 }
 0x913   :  { %v3145_v19 = vmul.f32 %v4241_v46, %v3142_v37  ;;  %v3614_v46 = vperm.slane %v6747_v1, %v5293_v10  ;;  %v3461_v1 = vsel %vm3429_vm3, %v7957_v27, 0.0  ;;  %v3467_v27 = vsel %vm3435_vm13, %v7959_v13, 0.0 }
 0x914   :  { %vm179_vm3 = vcmask 523264   ;;  %vm3693_vm13 = vcmp.eq.s32.totalorder %v7975_v39, 9 }
 0x915   :  { %v6916_v31 = vadd.f32 %v3145_v19, %v2883_v11  ;;  %v7984_v11 = vld [vmem:[#allocation59_spill] sm:$0xff] }
 0x916   :  { %vm3686_vm2 = vcmp.eq.s32.totalorder %v7984_v11, 9 }
 0x918   :  { %3313 = vperm.xlu1 %4230, %v3202_v33  }
 0x920   :  { %3331 = vperm.xlu1 %4230, %v3208_v51  }
 0x928   :  { %3567 = vperm.xlu1 %4230, %v3462_v47   ;;  %v7986_v47 = vld [vmem:[#allocation90_spill] sm:$0xff] }
 0x92a   :  { %v3275_v9 = vpop.permute.xlu1 %3274 }
 0x92b   :  { %v3356_v38 = vperm.slane %v3275_v9, %v5287_v17  ;;  %v3367_v9 = vperm.slane %v7986_v47, %v7651_v40 }
 0x92d   :  { %v3357_v34 = vsel %vm1492_vm6, %v3356_v38, %v7978_v23  ;;  %v3617_v23 = vperm.slane %v6727_v36, %v5281_v26 }
 0x92e   :  { %v3359_v12 = vsel %vm1496_vm5, %v3358_v3, %v3357_v34 }
 0x92f   :  { %v3396_v45 = vsel %vm1549_vm4, %v3359_v12, %v7980_v8  ;;  %v3619_v12 = vperm.slane %v6731_v52, %v5287_v17 }
 0x930   :  { %3791 = vperm.xlu1 %4230, %v3712_v41   ;;  %v6936_v57 = vsel %vm1551_vm15, %v6670_v16, %v3396_v45  ;;  %v7985_v16 = vld [vmem:[#allocation37_spill] sm:$0xff]  ;;  %v6969_v41 = vpop.permute.xlu2 %3328 }
 0x931   :  { %v3718_v19 = vsel %vm3686_vm2, %v7985_v16, 0.0  ;;  %vm3439_vm2 = vcmp.eq.s32.totalorder %v7973_v18, 8 }
 0x932   :  { %v3523_v30 = vpop.permute.xlu1 %3522  ;;  %v3471_v16 = vsel %vm3439_vm2, %v7974_v48, 0.0  ;;  %vm3696_vm2 = vcmp.eq.s32.totalorder %v7930_v50, 9  ;;  %v3381_v50 = vperm.slane %v6763_v32, %v7651_v40 }
 0x933   :  { %v3610_v6 = vperm.slane %v3523_v30, %v5281_v26 }
 0x935   :  { %v3611_v42 = vsel %vm1488_vm0, %v3610_v6, %v3609_v54 }
 0x936   :  { %v3613_v37 = vsel %vm1492_vm6, %v3612_v63, %v3611_v42 }
 0x937   :  { %v3615_v33 = vsel %vm1496_vm5, %v3614_v46, %v3613_v37  ;;  %v3628_v46 = vperm.slane %v6871_v29, %v5293_v10 }
 0x938   :  { %3809 = vperm.xlu1 %4230, %v3718_v19   ;;  %v6977_v13 = vpop.permute.xlu2 %3561 }
 0x93a   :  { %v3296_v51 = vpop.permute.xlu1 %3295 }
 0x93b   :  { %v3368_v38 = vperm.slane %v3296_v51, %v5281_v26 }
 0x93d   :  { %v3369_v14 = vsel %vm1488_vm0, %v3368_v38, %v3367_v9  ;;  %v3868_v9 = vperm.slane %v6824_v58, %v5287_v17 }
 0x940   :  { %3564 = vperm.xlu1 %4230, %v3461_v1   ;;  %v3780_v19 = vpop.permute.xlu2 %3779 }
 0x942   :  { %v3532_v3 = vpop.permute.xlu1 %3531 }
 0x943   :  { %v3616_v34 = vperm.slane %v3532_v3, %v7651_v40 }
 0x945   :  { %v3618_v8 = vsel %vm1488_vm0, %v3617_v23, %v3616_v34  ;;  %v3725_v34 = vsel %vm3693_vm13, %v7976_v28, 0.0  ;;  %vm3702_vm13 = vcmp.eq.s32.totalorder %v7973_v18, 9  ;;  %v45_v18 = vld [vmem:[%s7324_s3 + $0x20] sm:$0xff] }
 0x946   :  { %v3620_v45 = vsel %vm1492_vm6, %v3619_v12, %v3618_v8 }
 0x947   :  { %v3622_v61 = vsel %vm1496_vm5, %v3621_v55, %v3620_v45 }
 0x948   :  { %3582 = vperm.xlu1 %4230, %v3467_v27  }
 0x94a   :  { %v3299_v36 = vpop.permute.xlu1 %3298 }
 0x94b   :  { %v3370_v22 = vperm.slane %v3299_v36, %v5287_v17 }
 0x94d   :  { %v3371_v52 = vsel %vm1492_vm6, %v3370_v22, %v3369_v14  ;;  %v3870_v14 = vperm.slane %v3780_v19, %v5293_v10 }
 0x950   :  { %3818 = vperm.xlu1 %4230, %v3721_v21  }
 0x952   :  { %v3517_v30 = vpop.permute.xlu1 %3516 }
 0x953   :  { %v3607_v0 = vperm.slane %v3517_v30, %v5293_v10 }
 0x954   :  { %v176_v47 = vpop.f32.mrf.mxu1 }
 0x955   :  { %v3608_v53 = vsel %vm1496_vm5, %v3607_v0, %v6710_v44  ;;  %v3626_v44 = vperm.slane %v6797_v59, %v5287_v17  ;;  %v7006_v38 = vadd.f32 %v4242_v15, %v176_v47  ;;  %v3631_v47 = vperm.slane %v6831_v60, %v5281_v26 }
 0x956   :  { %v3658_v54 = vsel %vm1547_vm7, %v3615_v33, %v3608_v53  ;;  %v3865_v33 = vperm.slane %v6740_v5, %v7651_v40  ;;  %v7987_v53 = vld [vmem:[#allocation20_spill] sm:$0xff] }
 0x957   :  { %v3659_v6 = vsel %vm1549_vm4, %v3622_v61, %v3658_v54  ;;  %v180_v5 = vsel %vm179_vm3, %v7006_v38, 0.0  ;;  %v188_v23 = vmul.f32 %v7006_v38, %v7006_v38  ;;  %v7021_v61 = vpop.permute.xlu2 %3806  ;;  %vm3440_vm14 = vcmp.eq.s32.totalorder %v7987_v53, 8  ;;  %v7988_v54 = vld [vmem:[#allocation67_spill] sm:$0xff] }
 0x958   :  { %3576 = vperm.xlu1 %4230, %v3465_v20   ;;  %v181_v12 = vrot.slane %v180_v5, 4 }
 0x959   :  { %v189_v55 = vsel %vm179_vm3, %v188_v23, 0.0 }
 0x95a   :  { %v3544_v25 = vpop.permute.xlu1 %3543  ;;  %v182_v8 = vadd.f32 %v181_v12, %v180_v5  ;;  %v190_v45 = vrot.slane %v189_v55, 4  ;;  %v48_v5 = vld [vmem:[%s7324_s3 + $0x38] sm:$0xff] }
 0x95b   :  { %v3623_v63 = vperm.slane %v3544_v25, %v7651_v40  ;;  %3952 = vmatpush.msra.mxu2 %v48_v5 }
 0x95c   :  { %v183_v36 = vrot.slane %v182_v8, 2  ;;  %v191_v22 = vadd.f32 %v190_v45, %v189_v55 }
 0x95d   :  { %v3625_v42 = vsel %vm1488_vm0, %v3624_v4, %v3623_v63 }
 0x95e   :  { %v3627_v37 = vsel %vm1492_vm6, %v3626_v44, %v3625_v42  ;;  %v184_v30 = vadd.f32 %v183_v36, %v182_v8  ;;  %v192_v28 = vrot.slane %v191_v22, 2 }
 0x95f   :  { %v3629_v11 = vsel %vm1496_vm5, %v3628_v46, %v3627_v37  ;;  %v7034_v42 = vpop.permute.xlu2 %3334 }
 0x960   :  { %3594 = vperm.xlu1 %4230, %v3471_v16   ;;  %v6999_v59 = vsel %vm1551_vm15, %v3629_v11, %v3659_v6  ;;  %v3472_v6 = vsel %vm3440_vm14, %v7988_v54, 0.0  ;;  %v185_v20 = vrot.slane %v184_v30, 1  ;;  %v193_v25 = vadd.f32 %v192_v28, %v191_v22  ;;  %v7989_v11 = vld [vmem:[#allocation8_spill] sm:$0xff]  ;;  %v7990_v16 = vld [vmem:[#allocation5_spill] sm:$0xff] }
 0x961   :  { %vm3697_vm1 = vcmp.eq.s32.totalorder %v7989_v11, 9  ;;  %v3734_v22 = vsel %vm3702_vm13, %v7974_v48, 0.0  ;;  %v3391_v5 = vperm.slane %v7034_v42, %v5287_v17 }
 0x962   :  { %v3774_v29 = vpop.permute.xlu1 %3773  ;;  %v186_v4 = vadd.f32 %v185_v20, %v184_v30  ;;  %v194_v63 = vrot.slane %v193_v25, 1  ;;  %v3729_v19 = vsel %vm3697_vm1, %v7990_v16, 0.0  ;;  %v7992_v16 = vld [vmem:[#allocation13_spill] sm:$0xff] }
 0x963   :  { %v3866_v51 = vperm.slane %v3774_v29, %v5281_v26  ;;  %v3326_v29 = vpop.permute.xlu0 %3325 }
 0x964   :  { %v7032_v46 = vmul.f32 %v186_v4, %v6779_v62  ;;  %v3386_v4 = vperm.slane %v3326_v29, %v5293_v10  ;;  %v42_v29 = vld [vmem:[%s7324_s3 + $0x8] sm:$0xff] }
 0x965   :  { %v3867_v1 = vsel %vm1488_vm0, %v3866_v51, %v3865_v33 }
 0x966   :  { %v3869_v3 = vsel %vm1492_vm6, %v3868_v9, %v3867_v1  ;;  %v3633_v1 = vperm.slane %v6977_v13, %v5287_v17 }
 0x967   :  { %v7018_v58 = vsel %vm1496_vm5, %v3870_v14, %v3869_v3  ;;  %v7050_v23 = vpop.permute.xlu2 %3579 }
 0x968   :  { %3830 = vperm.xlu1 %4230, %v3725_v34   ;;  %v3728_v34 = vsel %vm3696_vm2, %v7931_v35, 0.0  ;;  %v3377_v35 = vperm.slane %v6791_v43, %v5287_v17  ;;  %v3384_v43 = vperm.slane %v6867_v56, %v5287_v17 }
 0x96a   :  { %v3302_v39 = vpop.permute.xlu1 %3301  ;;  %v3378_v56 = vsel %vm1492_vm6, %v3377_v35, %v6738_v24  ;;  %v3638_v35 = vperm.slane %v6875_v49, %v5281_v26 }
 0x96b   :  { %v3372_v27 = vperm.slane %v3302_v39, %v5293_v10  ;;  %v7057_v12 = vpop.permute.xlu0 %3573 }
 0x96d   :  { %v3373_v21 = vsel %vm1496_vm5, %v3372_v27, %v3371_v52  ;;  %v195_v52 = vadd.f32 %v194_v63, %v193_v25  ;;  %v44_v25 = vld [vmem:[%s7324_s3 + $0x18] sm:$0xff] }
 0x96e   :  { %v7027_v0 = vsel %vm1553_vm8, %v3373_v21, %v6936_v57  ;;  %v197_v57 = vmul.f32 %v7032_v46, %v7032_v46  ;;  %v47_v21 = vld [vmem:[%s7324_s3 + $0x30] sm:$0xff] }
 0x96f   :  { %v196_v37 = vmul.f32 %v195_v52, %v6779_v62  ;;  %v7077_v30 = vpop.permute.xlu2 %3812  ;;  %3953 = vmatpush.msra.mxu2 %v47_v21 }
 0x970   :  { %3597 = vperm.xlu1 %4230, %v3472_v6   ;;  %v200_v6 = vsub.f32 %v7006_v38, %v7032_v46 }
 0x971   :  { %v198_v15 = vsub.f32 %v196_v37, %v197_v57  ;;  %v7991_v57 = vld [vmem:[#allocation21_spill] sm:$0xff] }
 0x972   :  { %v3320_v44 = vpop.permute.xlu1 %3319  ;;  %vm3704_vm13 = vcmp.eq.s32.totalorder %v7991_v57, 9 }
 0x973   :  { %v199_v33 = vmax.f32 %v198_v15, 0.0  ;;  %v3382_v45 = vperm.slane %v3320_v44, %v5281_v26  ;;  %v3804_v63 = vpop.permute.xlu0 %3803  ;;  %v43_v15 = vld [vmem:[%s7324_s3 + $0x10] sm:$0xff] }
 0x975   :  { %v201_v14 = vadd.f32 1e-05, %v199_v33  ;;  %v3383_v32 = vsel %vm1488_vm0, %v3382_v45, %v3381_v50  ;;  %v4244_v33 = vld [vmem:[%s7323_s5 + $0x5] ss:$0 sm:$0xff] }
 0x976   :  { %v3385_v54 = vsel %vm1492_vm6, %v3384_v43, %v3383_v32  ;;  %v3884_v32 = vperm.slane %v3804_v63, %v5293_v10 }
 0x977   :  { %4267 = vrsqrt.f32 %v201_v14  ;;  %vm208_vm14 = vweird.f32 %v201_v14  ;;  %v3387_v38 = vsel %vm1496_vm5, %v3386_v4, %v3385_v54 }
 0x978   :  { %3842 = vperm.xlu1 %4230, %v3729_v19   ;;  %v3736_v19 = vsel %vm3704_vm13, %v7992_v16, 0.0  ;;  %v3644_v16 = vperm.slane %v7050_v23, %v7651_v40 }
 0x97a   :  { %v3556_v51 = vpop.permute.xlu1 %3555 }
 0x97b   :  { %v3630_v9 = vperm.slane %v3556_v51, %v7651_v40  ;;  %v41_v51 = vld [vmem:[%s7324_s3] sm:$0xff] }
 0x97d   :  { %v3632_v3 = vsel %vm1488_vm0, %v3631_v47, %v3630_v9  ;;  %v4268_v55 = vpop.eup %4267  ;;  %v3338_v47 = vpop.permute.xlu2 %3337 }
 0x97e   :  { %v7054_v60 = vsel %vm1492_vm6, %v3633_v1, %v3632_v3  ;;  %v203_v39 = vmul.f32 %v4268_v55, %v201_v14  ;;  %vm209_vm1 = vweird.f32 %v4268_v55  ;;  %v3388_v1 = vperm.slane %v6969_v41, %v7651_v40 }
 0x97f   :  { %vm210_vm2 = vmor %vm208_vm14, %vm209_vm1 }
 0x980   :  { %3839 = vperm.xlu1 %4230, %v3728_v34   ;;  %v204_v36 = vmul.f32 %v4268_v55, %v203_v39 }
 0x982   :  { %v3789_v13 = vpop.permute.xlu1 %3788  ;;  %v205_v28 = vmul.f32 0.5, %v204_v36 }
 0x983   :  { %v3875_v8 = vperm.slane %v3789_v13, %v5287_v17  ;;  %v3393_v13 = vperm.slane %v3338_v47, %v5293_v10 }
 0x984   :  { %v206_v48 = vsub.f32 1.5, %v205_v28 }
 0x985   :  { %v7063_v27 = vsel %vm1492_vm6, %v3875_v8, %v6770_v2  ;;  %v46_v2 = vld [vmem:[%s7324_s3 + $0x28] sm:$0xff]  ;;  %v7124_v8 = vpop.permute.xlu0 %3821 }
 0x986   :  { %3954 = vmatpush.msra.mxu2 %v46_v2  ;;  %v207_v44 = vmul.f32 %v4268_v55, %v206_v48  ;;  %v3885_v48 = vsel %vm1496_vm5, %v3884_v32, %v6883_v7 }
 0x988   :  { %3857 = vperm.xlu1 %4230, %v3734_v22   ;;  %3955 = vmatpush.msra.mxu2 %v45_v18  ;;  %v211_v37 = vsel %vm210_vm2, %v4268_v55, %v207_v44 }
 0x989   :  { %v212_v11 = vmul.f32 %v211_v37, %v200_v6 }
 0x98a   :  { %v3314_v53 = vpop.permute.xlu1 %3313  ;;  %3956 = vmatpush.msra.mxu2 %v44_v25 }
 0x98b   :  { %v3379_v20 = vperm.slane %v3314_v53, %v5293_v10 }
 0x98c   :  { %3957 = vmatpush.msra.mxu2 %v43_v15 }
 0x98d   :  { %v3380_v52 = vsel %vm1496_vm5, %v3379_v20, %v3378_v56  ;;  %v3586_v2 = vpop.permute.xlu0 %3585  ;;  %v3886_v20 = vperm.slane %v7021_v61, %v7651_v40  ;;  %v3889_v56 = vperm.slane %v7077_v30, %v5287_v17  ;;  %v3592_v61 = vpop.permute.xlu2 %3591 }
 0x98e   :  { %v3399_v46 = vsel %vm1555_vm9, %v3380_v52, %v7027_v0  ;;  %v4243_v0 = vld [vmem:[%s7323_s5 + $0x4] ss:$0 sm:$0xff]  ;;  %3958 = vmatpush.msra.mxu2 %v42_v29  ;;  %v3647_v15 = vperm.slane %v3586_v2, %v5287_v17  ;;  %v3640_v29 = vperm.slane %v7057_v12, %v5287_v17 }
 0x98f   :  { %v3400_v24 = vsel %vm1557_vm11, %v3387_v38, %v3399_v46  ;;  %v216_v14 = vmul.f32 %v4243_v0, %v212_v11 }
 0x990   :  { %3863 = vperm.xlu1 %4230, %v3736_v19   ;;  %3959 = vmatpush.msra.mxu2 %v41_v51 }
 0x991   :  { %v220_v34 = vadd.f32 %v4244_v33, %v216_v14 }
 0x992   :  { %v3332_v9 = vpop.permute.xlu1 %3331 }
 0x993   :  { %v3389_v3 = vperm.slane %v3332_v9, %v5281_v26  ;;  %v221_v39 = vmax.f32 %v220_v34, 0.0 }
 0x995   :  { %v3390_v55 = vsel %vm1488_vm0, %v3389_v3, %v3388_v1  ;;  %4165 = vmatmul.msk.f32.vlgmr.msra.gmra.mxu2 %vm179_vm3, %v221_v39  ;;  %v3816_v54 = vpop.permute.xlu0 %3815  ;;  %v3825_v38 = vpop.permute.xlu2 %3824 }
 0x996   :  { %v3392_v45 = vsel %vm1492_vm6, %v3391_v5, %v3390_v55 }
 0x997   :  { %v3394_v50 = vsel %vm1496_vm5, %v3393_v13, %v3392_v45  ;;  %v3651_v45 = vperm.slane %v3592_v61, %v7651_v40 }
 0x998   :  { %v3401_v41 = vsel %vm1559_vm12, %v3394_v50, %v3400_v24 }
 0x999   :  { %v3403_v36 = vsel %vm85_vm10, %v3401_v41, 0.0 }
 0x99a   :  { %3404 = vadd.xlane.f32.xlu0 %v3403_v36  ;;  %v3568_v42 = vpop.permute.xlu1 %3567 }
 0x99b   :  { %v3637_v22 = vperm.slane %v3568_v42, %v7651_v40 }
 0x99d   :  { %v3639_v21 = vsel %vm1488_vm0, %v3638_v35, %v3637_v22  ;;  %v3589_v24 = vpop.permute.xlu2 %3588  ;;  %v3834_v12 = vpop.permute.xlu0 %3833 }
 0x99e   :  { %v3649_v33 = vperm.slane %v3589_v24, %v5293_v10  ;;  %v3641_v51 = vsel %vm1492_vm6, %v3640_v29, %v3639_v21 }
 0x9a2   :  { %v3792_v28 = vpop.permute.xlu1 %3791 }
 0x9a3   :  { %v3877_v43 = vperm.slane %v3792_v28, %v5293_v10 }
 0x9a5   :  { %v3878_v18 = vsel %vm1496_vm5, %v3877_v43, %v7063_v27  ;;  %v3891_v27 = vperm.slane %v3816_v54, %v5293_v10  ;;  %v3837_v3 = vpop.permute.xlu2 %3836  ;;  %v3828_v55 = vpop.permute.xlu0 %3827 }
 0x9a6   :  { %v3921_v53 = vsel %vm1547_vm7, %v3878_v18, %v7018_v58 }
 0x9a7   :  { %v3922_v49 = vsel %vm1549_vm4, %v3885_v48, %v3921_v53  ;;  %v3894_v53 = vperm.slane %v7124_v8, %v5281_v26  ;;  %v3898_v8 = vperm.slane %v3828_v55, %v5293_v10  ;;  %v73_v55 = vld [vmem:[%s7327_s4 + $0x80] sm:$0xff] }
 0x9aa   :  { %v3810_v6 = vpop.permute.xlu1 %3809 }
 0x9ab   :  { %v3887_v25 = vperm.slane %v3810_v6, %v5281_v26  ;;  %v3896_v6 = vperm.slane %v3825_v38, %v5287_v17 }
 0x9ad   :  { %v3888_v4 = vsel %vm1488_vm0, %v3887_v25, %v3886_v20  ;;  %v3601_v13 = vpop.permute.xlu2 %3600  ;;  %v3846_v32 = vpop.permute.xlu0 %3845  ;;  %v3901_v20 = vperm.slane %v3834_v12, %v5281_v26 }
 0x9ae   :  { %v3890_v7 = vsel %vm1492_vm6, %v3889_v56, %v3888_v4  ;;  %v3656_v41 = vperm.slane %v3601_v13, %v5293_v10 }
 0x9af   :  { %v3892_v58 = vsel %vm1496_vm5, %v3891_v27, %v3890_v7 }
 0x9b0   :  { %v7154_v63 = vsel %vm1551_vm15, %v3892_v58, %v3922_v49  ;;  %v3903_v58 = vperm.slane %v3837_v3, %v5287_v17  ;;  %v4246_v3 = vld [vmem:[%s7324_s3 + $0x88] ss:$0 sm:$0xff] }
 0x9b2   :  { %v3565_v44 = vpop.permute.xlu1 %3564 }
 0x9b3   :  { %v3635_v52 = vperm.slane %v3565_v44, %v5293_v10  ;;  %v3908_v44 = vperm.slane %v3846_v32, %v5281_v26 }
 0x9b5   :  { %v3636_v37 = vsel %vm1496_vm5, %v3635_v52, %v7054_v60  ;;  %v3855_v18 = vpop.permute.xlu2 %3854  ;;  %v3849_v48 = vpop.permute.xlu0 %3848 }
 0x9b6   :  { %v3661_v30 = vsel %vm1553_vm8, %v3636_v37, %v6999_v59 }
 0x9ba   :  { %v3583_v57 = vpop.permute.xlu1 %3582 }
 0x9bb   :  { %v3645_v11 = vperm.slane %v3583_v57, %v5281_v26  ;;  %v3914_v57 = vperm.slane %v3855_v18, %v7651_v40 }
 0x9bd   :  { %v3646_v19 = vsel %vm1488_vm0, %v3645_v11, %v3644_v16  ;;  %v3861_v38 = vpop.permute.xlu2 %3860  ;;  %v3852_v11 = vpop.permute.xlu0 %3851 }
 0x9be   :  { %v3648_v0 = vsel %vm1492_vm6, %v3647_v15, %v3646_v19  ;;  %v3917_v15 = vperm.slane %v3861_v38, %v5287_v17  ;;  %v3912_v29 = vperm.slane %v3852_v11, %v5293_v10 }
 0x9bf   :  { %v3650_v23 = vsel %vm1496_vm5, %v3649_v33, %v3648_v0 }
 0x9c2   :  { %v3819_v46 = vpop.permute.xlu1 %3818 }
 0x9c3   :  { %v3893_v43 = vperm.slane %v3819_v46, %v7651_v40  ;;  %v3910_v46 = vperm.slane %v3849_v48, %v5287_v17 }
 0x9c5   :  { %v3895_v54 = vsel %vm1488_vm0, %v3894_v53, %v3893_v43  ;;  %v4248_v43 = vld [vmem:[%s7323_s5 + $0x7] ss:$0 sm:$0xff] }
 0x9c6   :  { %v3897_v27 = vsel %vm1492_vm6, %v3896_v6, %v3895_v54 }
 0x9c7   :  { %v3899_v61 = vsel %vm1496_vm5, %v3898_v8, %v3897_v27 }
 0x9ca   :  { %v3577_v60 = vpop.permute.xlu1 %3576 }
 0x9cb   :  { %v3642_v59 = vperm.slane %v3577_v60, %v5293_v10 }
 0x9cd   :  { %v3643_v47 = vsel %vm1496_vm5, %v3642_v59, %v3641_v51 }
 0x9ce   :  { %v3662_v9 = vsel %vm1555_vm9, %v3643_v47, %v3661_v30 }
 0x9cf   :  { %v3663_v14 = vsel %vm1557_vm11, %v3650_v23, %v3662_v9  ;;  %v4245_v9 = vld [vmem:[%s7324_s3 + $0x87] ss:$0 sm:$0xff] }
 0x9d2   :  { %v3595_v1 = vpop.permute.xlu1 %3594 }
 0x9d3   :  { %v3652_v34 = vperm.slane %v3595_v1, %v5281_v26  ;;  %v75_v1 = vld [vmem:[%s7327_s4 + $0x90] sm:$0xff] }
 0x9d5   :  { %v3653_v36 = vsel %vm1488_vm0, %v3652_v34, %v3651_v45  ;;  %v74_v34 = vld [vmem:[%s7327_s4 + $0x88] sm:$0xff] }
 0x9da   :  { %v3831_v5 = vpop.permute.xlu1 %3830 }
 0x9db   :  { %v3900_v49 = vperm.slane %v3831_v5, %v7651_v40 }
 0x9dd   :  { %v3902_v4 = vsel %vm1488_vm0, %v3901_v20, %v3900_v49 }
 0x9de   :  { %v3904_v30 = vsel %vm1492_vm6, %v3903_v58, %v3902_v4 }
 0x9e2   :  { %v3598_v39 = vpop.permute.xlu1 %3597 }
 0x9e3   :  { %v3654_v50 = vperm.slane %v3598_v39, %v5287_v17  ;;  %v7993_v17 = vld [vmem:[#allocation14_spill] sm:$0xff] }
 0x9e4   :  { %4269 = vlog2.f32 %v7993_v17  ;;  %v4251_v17 = vld [vmem:[%s7323_s5 + $0xa] ss:$0 sm:$0xff] }
 0x9e5   :  { %v3655_v42 = vsel %vm1492_vm6, %v3654_v50, %v3653_v36  ;;  %v4247_v50 = vld [vmem:[%s7324_s3 + $0x89] ss:$0 sm:$0xff]  ;;  %v7994_v36 = vld [vmem:[#allocation22_spill] sm:$0xff] }
 0x9e6   :  { %v3657_v35 = vsel %vm1496_vm5, %v3656_v41, %v3655_v42  ;;  %v4231_v41 = vld [vmem:[%s7323_s5 + $0x6] ss:$0 sm:$0xff] }
 0x9e7   :  { %v3664_v22 = vsel %vm1559_vm12, %v3657_v35, %v3663_v14  ;;  %v76_v14 = vld [vmem:[%s7327_s4 + $0x98] sm:$0xff] }
 0x9e8   :  { %v3666_v21 = vsel %vm85_vm10, %v3664_v22, 0.0  ;;  %4029 = vmatpush.msra.mxu3 %v76_v14 }
 0x9e9   :  { %3667 = vadd.xlane.f32.xlu2 %v3666_v21 }
 0x9ea   :  { %v3843_v2 = vpop.permute.xlu1 %3842  ;;  %v4270_v12 = vpop.eup %4269  ;;  %4030 = vmatpush.msra.mxu3 %v75_v1 }
 0x9eb   :  { %v3907_v25 = vperm.slane %v3843_v2, %v7651_v40  ;;  %v1054_v45 = vmul.f32 0.6931472, %v4270_v12 }
 0x9ec   :  { %4031 = vmatpush.msra.mxu3 %v74_v34 }
 0x9ed   :  { %v3909_v37 = vsel %vm1488_vm0, %v3908_v44, %v3907_v25  ;;  %v1059_v42 = vsub.f32 %v1054_v45, %v7994_v36 }
 0x9ee   :  { %v3911_v19 = vsel %vm1492_vm6, %v3910_v46, %v3909_v37  ;;  %4032 = vmatpush.msra.mxu3 %v73_v55 }
 0x9ef   :  { %v3913_v59 = vsel %vm1496_vm5, %v3912_v29, %v3911_v19  ;;  %v3939_v32 = vmul.f32 %v4231_v41, %v1059_v42  ;;  %v55_v42 = vld [vmem:[%s7324_s3 + $0x70] sm:$0xff] }
 0x9f2   :  { %v3840_v28 = vpop.permute.xlu1 %3839 }
 0x9f3   :  { %v3905_v7 = vperm.slane %v3840_v28, %v5293_v10 }
 0x9f5   :  { %v3906_v16 = vsel %vm1496_vm5, %v3905_v7, %v3904_v30 }
 0x9fa   :  { %v3858_v56 = vpop.permute.xlu1 %3857 }
 0x9fb   :  { %v3915_v52 = vperm.slane %v3858_v56, %v5281_v26  ;;  %v3924_v26 = vsel %vm1553_vm8, %v3899_v61, %v7154_v63 }
 0x9fc   :  { %v3925_v40 = vsel %vm1555_vm9, %v3906_v16, %v3924_v26 }
 0x9fd   :  { %v3916_v24 = vsel %vm1488_vm0, %v3915_v52, %v3914_v57  ;;  %v3926_v47 = vsel %vm1557_vm11, %v3913_v59, %v3925_v40 }
 0x9fe   :  { %v3918_v33 = vsel %vm1492_vm6, %v3917_v15, %v3916_v24 }
 0xa02   :  { %v3864_v60 = vpop.permute.xlu1 %3863 }
 0xa03   :  { %v3919_v0 = vperm.slane %v3864_v60, %v5293_v10 }
 0xa05   :  { %v3920_v51 = vsel %vm1496_vm5, %v3919_v0, %v3918_v33  ;;  %v4249_v0 = vld [vmem:[%s7323_s5 + $0x8] ss:$0 sm:$0xff] }
 0xa06   :  { %v3927_v23 = vsel %vm1559_vm12, %v3920_v51, %v3926_v47  ;;  %v4250_v51 = vld [vmem:[%s7323_s5 + $0x9] ss:$0 sm:$0xff]  ;;  %vm4158_vm12 = vcmask 7168  }
 0xa07   :  { %v3929_v63 = vsel %vm85_vm10, %v3927_v23, 0.0 }
 0xa08   :  { %3930 = vadd.xlane.f32.xlu1 %v3929_v63 }
 0xa0d   :  { %v3405_v10 = vpop.xlane.xlu0 %3404 }
 0xa0e   :  { %v3408_v13 = vmul.f32 %v4245_v9, %v3405_v10 }
 0xa10   :  { %v3409_v35 = vadd.f32 %v3408_v13, %v6916_v31 }
 0xa18   :  { %v3961_v48 = vpop.f32.mrf.mxu2 }
 0xa5c   :  { %v3668_v5 = vpop.xlane.xlu2 %3667 }
 0xa5d   :  { %v3671_v39 = vmul.f32 %v4246_v3, %v3668_v5 }
 0xa5f   :  { %v3672_v21 = vadd.f32 %v3671_v39, %v3409_v35 }
 0xa7b   :  { %v3931_v22 = vpop.xlane.xlu1 %3930 }
 0xa7c   :  { %v3934_v2 = vmul.f32 %v4247_v50, %v3931_v22  ;;  %v56_v50 = vld [vmem:[%s7324_s3 + $0x78] sm:$0xff] }
 0xa7d   :  { %4093 = vmatpush.msrb.mxu0 %v56_v50 }
 0xa7e   :  { %v3935_v28 = vadd.f32 %v3934_v2, %v3672_v21  ;;  %v54_v21 = vld [vmem:[%s7324_s3 + $0x68] sm:$0xff]  ;;  %v53_v2 = vld [vmem:[%s7324_s3 + $0x60] sm:$0xff] }
 0xa7f   :  { %4094 = vmatpush.msrb.mxu0 %v55_v42  ;;  %v4256_v42 = vld [vmem:[%s7323_s5 + $0xf] ss:$0 sm:$0xff] }
 0xa80   :  { %v3940_v18 = vadd.f32 %v3939_v32, %v3935_v28 }
 0xa81   :  { %4095 = vmatpush.msrb.mxu0 %v54_v21  ;;  %v4257_v21 = vld [vmem:[%s7323_s5 + $0x10] ss:$0 sm:$0xff] }
 0xa82   :  { %v3964_v53 = vadd.f32 %v3961_v48, %v3940_v18 }
 0xa83   :  { %4096 = vmatpush.msrb.mxu0 %v53_v2 }
 0xa84   :  { %v3968_v49 = vadd.f32 %v4248_v43, %v3964_v53  ;;  %v52_v43 = vld [vmem:[%s7324_s3 + $0x58] sm:$0xff]  ;;  %v51_v53 = vld [vmem:[%s7324_s3 + $0x50] sm:$0xff] }
 0xa85   :  { %4097 = vmatpush.msrb.mxu0 %v52_v43  ;;  %v4258_v43 = vld [vmem:[%s7323_s5 + $0x11] ss:$0 sm:$0xff] }
 0xa86   :  { %v3969_v54 = vsel %vm85_vm10, %v3968_v49, 0.0  ;;  %v3977_v6 = vmul.f32 %v3968_v49, %v3968_v49 }
 0xa87   :  { %v3970_v20 = vrot.slane %v3969_v54, 4  ;;  %4098 = vmatpush.msrb.mxu0 %v51_v53 }
 0xa88   :  { %v3978_v31 = vsel %vm85_vm10, %v3977_v6, 0.0 }
 0xa89   :  { %v3971_v25 = vadd.f32 %v3970_v20, %v3969_v54  ;;  %v3979_v56 = vrot.slane %v3978_v31, 4  ;;  %v50_v54 = vld [vmem:[%s7324_s3 + $0x48] sm:$0xff]  ;;  %v49_v20 = vld [vmem:[%s7324_s3 + $0x40] sm:$0xff] }
 0xa8a   :  { %4099 = vmatpush.msrb.mxu0 %v50_v54 }
 0xa8b   :  { %v3972_v27 = vrot.slane %v3971_v25, 2  ;;  %v3980_v4 = vadd.f32 %v3979_v56, %v3978_v31 }
 0xa8c   :  { %4100 = vmatpush.msrb.mxu0 %v49_v20 }
 0xa8d   :  { %v3973_v7 = vadd.f32 %v3972_v27, %v3971_v25  ;;  %v3981_v58 = vrot.slane %v3980_v4, 2 }
 0xa8f   :  { %v3982_v8 = vadd.f32 %v3981_v58, %v3980_v4  ;;  %v3974_v44 = vrot.slane %v3973_v7, 1 }
 0xa91   :  { %v3983_v52 = vrot.slane %v3982_v8, 1  ;;  %v3975_v61 = vadd.f32 %v3974_v44, %v3973_v7  ;;  %v4252_v44 = vld [vmem:[%s7323_s5 + $0xb] ss:$0 sm:$0xff] }
 0xa93   :  { %v3984_v37 = vadd.f32 %v3983_v52, %v3982_v8  ;;  %v3976_v30 = vmul.f32 %v3975_v61, %v6779_v62 }
 0xa95   :  { %v3985_v57 = vmul.f32 %v3984_v37, %v6779_v62  ;;  %v3986_v38 = vmul.f32 %v3976_v30, %v3976_v30  ;;  %v3989_v40 = vsub.f32 %v3968_v49, %v3976_v30  ;;  %v4253_v37 = vld [vmem:[%s7323_s5 + $0xc] ss:$0 sm:$0xff] }
 0xa97   :  { %v3987_v46 = vsub.f32 %v3985_v57, %v3986_v38 }
 0xa99   :  { %v3988_v11 = vmax.f32 %v3987_v46, 0.0  ;;  %v4254_v46 = vld [vmem:[%s7323_s5 + $0xd] ss:$0 sm:$0xff] }
 0xa9b   :  { %v3990_v16 = vadd.f32 1e-05, %v3988_v11 }
 0xa9d   :  { %4271 = vrsqrt.f32 %v3990_v16  ;;  %vm3997_vm6 = vweird.f32 %v3990_v16 }
 0xaa3   :  { %v4272_v19 = vpop.eup %4271 }
 0xaa4   :  { %v3992_v24 = vmul.f32 %v4272_v19, %v3990_v16  ;;  %vm3998_vm0 = vweird.f32 %v4272_v19 }
 0xaa5   :  { %vm3999_vm5 = vmor %vm3997_vm6, %vm3998_vm0 }
 0xaa6   :  { %v3993_v26 = vmul.f32 %v4272_v19, %v3992_v24 }
 0xaa8   :  { %v3994_v15 = vmul.f32 0.5, %v3993_v26 }
 0xaaa   :  { %v3995_v29 = vsub.f32 1.5, %v3994_v15 }
 0xaac   :  { %v3996_v60 = vmul.f32 %v4272_v19, %v3995_v29 }
 0xaae   :  { %v4000_v59 = vsel %vm3999_vm5, %v4272_v19, %v3996_v60 }
 0xaaf   :  { %v4001_v33 = vmul.f32 %v4000_v59, %v3989_v40 }
 0xab1   :  { %v4005_v47 = vmul.f32 %v4249_v0, %v4001_v33 }
 0xab3   :  { %v4009_v23 = vadd.f32 %v4250_v51, %v4005_v47 }
 0xab5   :  { %v4010_v63 = vmax.f32 %v4009_v23, 0.0 }
 0xab7   :  { %4166 = vmatmul.msk.f32.vlgmr.msra.gmra.mxu3 %vm85_vm10, %v4010_v63 }
 0xb3a   :  { %v4034_v9 = vpop.f32.mrf.mxu3 }
 0xb3b   :  { %v4035_v10 = vadd.f32 %v4251_v17, %v4034_v9 }
 0xb3d   :  { %v4037_v14 = vsel %vm179_vm3, %v4035_v10, 0.0  ;;  %v4045_v1 = vmul.f32 %v4035_v10, %v4035_v10 }
 0xb3e   :  { %v4038_v3 = vrot.slane %v4037_v14, 4 }
 0xb3f   :  { %v4046_v12 = vsel %vm179_vm3, %v4045_v1, 0.0 }
 0xb40   :  { %v4039_v5 = vadd.f32 %v4038_v3, %v4037_v14  ;;  %v4047_v34 = vrot.slane %v4046_v12, 4 }
 0xb42   :  { %v4040_v13 = vrot.slane %v4039_v5, 2  ;;  %v4048_v55 = vadd.f32 %v4047_v34, %v4046_v12 }
 0xb44   :  { %v4041_v45 = vadd.f32 %v4040_v13, %v4039_v5  ;;  %v4049_v39 = vrot.slane %v4048_v55, 2 }
 0xb46   :  { %v4042_v41 = vrot.slane %v4041_v45, 1  ;;  %v4050_v36 = vadd.f32 %v4049_v39, %v4048_v55 }
 0xb48   :  { %v4043_v35 = vadd.f32 %v4042_v41, %v4041_v45  ;;  %v4051_v22 = vrot.slane %v4050_v36, 1  ;;  %v4255_v41 = vld [vmem:[%s7323_s5 + $0xe] ss:$0 sm:$0xff] }
 0xb4a   :  { %v4044_v32 = vmul.f32 %v4043_v35, %v6779_v62  ;;  %v4052_v28 = vadd.f32 %v4051_v22, %v4050_v36 }
 0xb4c   :  { %v4053_v18 = vmul.f32 %v4052_v28, %v6779_v62  ;;  %v4054_v48 = vmul.f32 %v4044_v32, %v4044_v32  ;;  %v4057_v8 = vsub.f32 %v4035_v10, %v4044_v32 }
 0xb4e   :  { %v4055_v49 = vsub.f32 %v4053_v18, %v4054_v48 }
 0xb50   :  { %v4056_v6 = vmax.f32 %v4055_v49, 0.0 }
 0xb52   :  { %v4058_v31 = vadd.f32 1e-05, %v4056_v6 }
 0xb54   :  { %4273 = vrsqrt.f32 %v4058_v31  ;;  %vm4065_vm4 = vweird.f32 %v4058_v31 }
 0xb5a   :  { %v4274_v25 = vpop.eup %4273 }
 0xb5b   :  { %v4060_v56 = vmul.f32 %v4274_v25, %v4058_v31  ;;  %vm4066_vm7 = vweird.f32 %v4274_v25 }
 0xb5c   :  { %vm4067_vm15 = vmor %vm4065_vm4, %vm4066_vm7 }
 0xb5d   :  { %v4061_v27 = vmul.f32 %v4274_v25, %v4060_v56 }
 0xb5f   :  { %v4062_v4 = vmul.f32 0.5, %v4061_v27 }
 0xb61   :  { %v4063_v7 = vsub.f32 1.5, %v4062_v4 }
 0xb63   :  { %v4064_v58 = vmul.f32 %v4274_v25, %v4063_v7 }
 0xb65   :  { %v4068_v52 = vsel %vm4067_vm15, %v4274_v25, %v4064_v58 }
 0xb66   :  { %v4069_v61 = vmul.f32 %v4068_v52, %v4057_v8 }
 0xb68   :  { %v4073_v30 = vmul.f32 %v4252_v44, %v4069_v61 }
 0xb6a   :  { %v4077_v57 = vadd.f32 %v4253_v37, %v4073_v30 }
 0xb6c   :  { %v4078_v38 = vmax.f32 %v4077_v57, 0.0 }
 0xb6e   :  { %4167 = vmatmul.msk.f32.vlgmr.msrb.gmra.mxu0 %vm179_vm3, %v4078_v38 }
 0xbeb   :  { %v4102_v11 = vpop.f32.mrf.mxu0 }
 0xbec   :  { %v4103_v16 = vadd.f32 %v4254_v46, %v4102_v11 }
 0xbee   :  { %v4105_v19 = vsel %vm85_vm10, %v4103_v16, 0.0  ;;  %v4113_v24 = vmul.f32 %v4103_v16, %v4103_v16 }
 0xbef   :  { %v4106_v26 = vrot.slane %v4105_v19, 4 }
 0xbf0   :  { %v4114_v15 = vsel %vm85_vm10, %v4113_v24, 0.0 }
 0xbf1   :  { %v4107_v29 = vadd.f32 %v4106_v26, %v4105_v19  ;;  %v4115_v60 = vrot.slane %v4114_v15, 4 }
 0xbf3   :  { %v4108_v40 = vrot.slane %v4107_v29, 2  ;;  %v4116_v0 = vadd.f32 %v4115_v60, %v4114_v15 }
 0xbf5   :  { %v4109_v59 = vadd.f32 %v4108_v40, %v4107_v29  ;;  %v4117_v33 = vrot.slane %v4116_v0, 2 }
 0xbf7   :  { %v4110_v51 = vrot.slane %v4109_v59, 1  ;;  %v4118_v47 = vadd.f32 %v4117_v33, %v4116_v0 }
 0xbf9   :  { %v4111_v23 = vadd.f32 %v4110_v51, %v4109_v59  ;;  %v4119_v63 = vrot.slane %v4118_v47, 1 }
 0xbfb   :  { %v4112_v17 = vmul.f32 %v4111_v23, %v6779_v62  ;;  %v4120_v9 = vadd.f32 %v4119_v63, %v4118_v47 }
 0xbfd   :  { %v4121_v10 = vmul.f32 %v4120_v9, %v6779_v62  ;;  %v4122_v14 = vmul.f32 %v4112_v17, %v4112_v17  ;;  %v4125_v50 = vsub.f32 %v4103_v16, %v4112_v17 }
 0xbff   :  { %v4123_v1 = vsub.f32 %v4121_v10, %v4122_v14 }
 0xc01   :  { %v4124_v3 = vmax.f32 %v4123_v1, 0.0 }
 0xc03   :  { %v4126_v12 = vadd.f32 1e-05, %v4124_v3 }
 0xc05   :  { %4275 = vrsqrt.f32 %v4126_v12  ;;  %vm4133_vm9 = vweird.f32 %v4126_v12 }
 0xc0b   :  { %v4276_v5 = vpop.eup %4275 }
 0xc0c   :  { %v4128_v34 = vmul.f32 %v4276_v5, %v4126_v12  ;;  %vm4134_vm8 = vweird.f32 %v4276_v5 }
 0xc0d   :  { %vm4135_vm11 = vmor %vm4133_vm9, %vm4134_vm8 }
 0xc0e   :  { %v4129_v13 = vmul.f32 %v4276_v5, %v4128_v34 }
 0xc10   :  { %v4130_v55 = vmul.f32 0.5, %v4129_v13 }
 0xc12   :  { %v4131_v45 = vsub.f32 1.5, %v4130_v55 }
 0xc14   :  { %v4132_v39 = vmul.f32 %v4276_v5, %v4131_v45 }
 0xc16   :  { %v4136_v62 = vsel %vm4135_vm11, %v4276_v5, %v4132_v39 }
 0xc17   :  { %v4137_v36 = vmul.f32 %v4136_v62, %v4125_v50 }
 0xc19   :  { %v4141_v35 = vmul.f32 %v4255_v41, %v4137_v36 }
 0xc1b   :  { %v4145_v22 = vadd.f32 %v4256_v42, %v4141_v35 }
 0xc1d   :  { %v4146_v2 = vmax.f32 %v4145_v22, 0.0 }
 0xc1f   :  { %v4150_v32 = vmul.f32 %v4257_v21, %v4146_v2 }
 0xc21   :  { %v4151_v28 = vsel %vm85_vm10, %v4150_v32, 0.0 }
 0xc22   :  { %4152 = vadd.xlane.f32.xlu2 %v4151_v28 }
 0xc95   :  { %v4153_v18 = vpop.xlane.xlu2 %4152 }
 0xc96   :  { %v4157_v48 = vadd.f32 %v4258_v43, %v4153_v18 }
 0xc98   :  { %4159 = vst.msk [vmem:[%s7328_s6] sm:$0xff] %vm4158_vm12, %v4157_v48 }

</bundles_post_ra>
